<compile_context>
chip_gen: v7x
topology: tpu7x:2x2x1
jax: 0.10.0
libtpu: 0.0.40
codegen_flags: <defaults>
</compile_context>

<pallas_src>
import jax
import jax.numpy as jnp
import numpy as np
from jax.experimental import pallas as pl
from jax.experimental.pallas import tpu as pltpu

_EPS = 1e-5
_VMEM = pl.BlockSpec(memory_space=pltpu.MemorySpace.VMEM)


def _hardswish(x):
    # x * relu6(x + 3) / 6  (PyTorch nn.Hardswish), kept in f32 on the VPU.
    return x * jnp.clip(x + 3.0, 0.0, 6.0) * (1.0 / 6.0)


# ----------------------------------------------------------------------------
# Stage 1: per-branch Conv1d + IndicatorMixing + fc(F->1), gridded over stocks
# ----------------------------------------------------------------------------
def _build_branch_kernel(meta):
    TN = meta['TN']
    F = meta['F']
    branches = meta['branches']
    nb = len(branches)
    mxu = meta['mxu_dtype']

    def kernel(*refs):
        fcb = refs[0][...]                         # (1, 1) f32  shared fc bias
        fcw = refs[1][...]                         # (1, F)      shared fc weight
        out_refs = refs[2 + 7 * nb:]

        for b, bm in enumerate(branches):
            Tk = bm['Tk']
            (xc_ref, wc_ref, cb_ref, g_ref, be_ref,
             w1_ref, w2f_ref) = refs[2 + 7 * b: 2 + 7 * (b + 1)]
            out_ref = out_refs[b]

            wc = wc_ref[...]                       # (F, k*F)
            cb = cb_ref[...]                       # (F, 1)   f32
            g = g_ref[...]                         # (F, Tk)  f32 (un-tiled)
            be = be_ref[...]                       # (F, Tk)  f32 (un-tiled)
            w1 = w1_ref[...]                       # (H, F)
            w2f = w2f_ref[...]                     # (1, H)   = (W2 @ fc_w.T).T
            inv = 1.0 / float(Tk * F)

            for s in range(TN):                    # unrolled over the stock tile
                xc = xc_ref[s]                     # (k*F, Tk) im2col'd, transposed
                # strided Conv1d as one 2-D GEMM, bias added on the VPU
                y = jnp.dot(wc, xc,
                            preferred_element_type=jnp.float32) + cb     # (F, Tk)
                # per-sample LayerNorm over (Tk, F): plain in-block reductions,
                # two-pass (centered) variance, all stats in f32.
                mean = jnp.sum(y) * inv
                cen = y - mean
                var = jnp.sum(cen * cen) * inv
                ln = cen * jax.lax.rsqrt(var + _EPS) * g + be            # (F, Tk)
                # IndicatorMixing MLP with fc(F->1) folded in:
                #   row = fc_w @ y_T + (W2 @ fc_w.T).T @ hswish(W1.T @ ln_T) + fc_b
                t = _hardswish(jnp.dot(w1, ln.astype(mxu),
                                       preferred_element_type=jnp.float32))  # (H, Tk)
                # TODO(synk): fuse the two width-1 row dots into one
                # (1, F+H) @ (F+H, Tk) dot via a sublane concat when F % 8 == 0.
                row = (jnp.dot(fcw, y.astype(mxu),
                               preferred_element_type=jnp.float32)
                       + jnp.dot(w2f, t.astype(mxu),
                                 preferred_element_type=jnp.float32)
                       + fcb)                                            # (1, Tk)
                out_ref[pl.ds(s, 1), :] = row      # lane-dense row store

    return kernel


# ----------------------------------------------------------------------------
# Stage 2: StockMixing (global LN over (N, D) + market mixing + fc(2D -> 1))
# ----------------------------------------------------------------------------
def _build_stock_kernel(meta):
    N, D = meta['N'], meta['D']
    mxu = meta['mxu_dtype']
    inv = 1.0 / float(N * D)

    def kernel(h_ref, g_ref, b_ref, m1_ref, m2_ref, fw12_ref, fw2_ref,
               fcb_ref, out_ref):
        h = h_ref[...]                                                # (N, D) f32
        mean = jnp.sum(h) * inv
        cen = h - mean
        var = jnp.sum(cen * cen) * inv
        ln = cen * jax.lax.rsqrt(var + _EPS) * g_ref[...] + b_ref[...]
        mkt = _hardswish(jnp.dot(m1_ref[...], ln.astype(mxu),
                                 preferred_element_type=jnp.float32))  # (MK, D)
        s = jnp.dot(m2_ref[...], mkt.astype(mxu),
                    preferred_element_type=jnp.float32)                # (N, D)
        # fc(concat([h, h+s])) = h @ (w1+w2).T + s @ w2.T + b
        out_ref[...] = (jnp.dot(h.astype(mxu), fw12_ref[...],
                                preferred_element_type=jnp.float32)
                        + jnp.dot(s.astype(mxu), fw2_ref[...],
                                  preferred_element_type=jnp.float32)
                        + fcb_ref[...])

    return kernel


# ----------------------------------------------------------------------------
# One-time parameter preparation (all transposes / folds hoisted out of forward)
# ----------------------------------------------------------------------------
def prepare_params(params, stock_num, seq_len, mxu_dtype=jnp.float32):
    N = stock_num
    F = params['fc_w'].shape[1]
    H = params['branches'][0]['w1'].shape[1]
    fcw = params['fc_w'].astype(jnp.float32)                  # (1, F)
    fcwT = fcw.T                                              # (F, 1)

    b_meta, b_prep = [], []
    D = 0
    for bp in params['branches']:
        k = bp['k']
        assert seq_len % k == 0, "seq_len must be divisible by every scale factor"
        Tk = seq_len // k
        kF = k * F
        # Conv1d(F, F, k, stride=k) weight as a (F, k*F) GEMM, column c = j*F+f'
        wc2 = jnp.transpose(bp['conv_w'], (0, 2, 1)).reshape(F, kF)
        b_prep.append(dict(
            wc=wc2.astype(mxu_dtype),                         # (F, kF)
            cb=bp['conv_b'].reshape(F, 1).astype(jnp.float32),
            gT=bp['gamma'].T.astype(jnp.float32),             # (F, Tk), un-tiled
            bT=bp['beta'].T.astype(jnp.float32),
            w1T=bp['w1'].T.astype(mxu_dtype),                 # (H, F)
            w2f=(bp['w2'] @ fcwT).T.astype(mxu_dtype),        # (1, H)
        ))
        b_meta.append(dict(k=k, Tk=Tk, kF=kF))
        D += Tk

    sm = params['stock']
    fw1 = sm['fc_w'][:, :D]
    fw2 = sm['fc_w'][:, D:]
    prep = dict(
        fcb=params['fc_b'].reshape(1, 1).astype(jnp.float32),
        fcw=fcw.astype(mxu_dtype),
        branches=b_prep,
        gamma_s=sm['gamma'].astype(jnp.float32),
        beta_s=sm['beta'].astype(jnp.float32),
        m1=sm['m1'].astype(mxu_dtype),
        m2=sm['m2'].astype(mxu_dtype),
        fw12=(fw1 + fw2).T.astype(mxu_dtype),                 # (D, 1)
        fw2=fw2.T.astype(mxu_dtype),                          # (D, 1)
        fcb_s=sm['fc_b'].reshape(1, 1).astype(jnp.float32),
    )
    # Stock-tile size: second-to-last out-block dim must be a multiple of 8
    # (or the full N).  Tunable; 8 keeps per-step VMEM tiny and per-step
    # overhead amortized.
    TN = 8 if N % 8 == 0 else N
    meta = dict(N=N, T=seq_len, F=F, H=H, D=D, MK=sm['m1'].shape[0],
                TN=TN, mxu_dtype=mxu_dtype, branches=b_meta)
    return meta, prep


# ----------------------------------------------------------------------------
# Forward builder: gridded branch call + tiny stock-mixing call, jitted wrapper
# ----------------------------------------------------------------------------
def make_forward(meta):
    N, F, H, D = meta['N'], meta['F'], meta['H'], meta['D']
    TN = meta['TN']
    nb = len(meta['branches'])
    mxu = meta['mxu_dtype']
    grid = (N // TN,)

    def _const(shape):
        return pl.BlockSpec(shape, lambda i: (0, 0))

    in_specs = [_const((1, 1)), _const((1, F))]
    out_specs, out_shapes = [], []
    flops, bytes_acc = 0, 0
    for bm in meta['branches']:
        Tk, kF = bm['Tk'], bm['kF']
        in_specs += [
            pl.BlockSpec((TN, kF, Tk), lambda i: (i, 0, 0)),   # xcol, per stock tile
            _const((F, kF)), _const((F, 1)),                   # conv weight / bias
            _const((F, Tk)), _const((F, Tk)),                  # gamma / beta
            _const((H, F)), _const((1, H)),                    # W1.T / folded W2@fc
        ]
        out_specs.append(pl.BlockSpec((TN, Tk), lambda i: (i, 0)))
        out_shapes.append(jax.ShapeDtypeStruct((N, Tk), jnp.float32))
        flops += 2 * N * Tk * (F * kF + F * H + (F + H)) + 10 * N * Tk * F
        bytes_acc += (N * kF * Tk * jnp.dtype(mxu).itemsize + 4 * N * Tk
                      + 4 * (F * kF + F + 2 * F * Tk + H * F + H))
    cost1 = pl.CostEstimate(flops=int(flops),
                            transcendentals=int(N * nb),
                            bytes_accessed=int(bytes_acc))

    branch_call = pl.pallas_call(
        _build_branch_kernel(meta),
        grid=grid,
        in_specs=in_specs,
        out_specs=tuple(out_specs),
        out_shape=tuple(out_shapes),
        compiler_params=pltpu.CompilerParams(
            dimension_semantics=("parallel",),
            vmem_limit_bytes=32 * 1024 * 1024),
        cost_estimate=cost1,
    )

    # TODO(synk): for very large N, tile the StockMixing call over D column
    # groups (M1@ln and the final fc decompose per group); it is tiny relative
    # to the branch stage, so it stays a single grid-less VMEM-resident call.
    stock_call = pl.pallas_call(
        _build_stock_kernel(meta),
        in_specs=[_VMEM] * 8,
        out_specs=_VMEM,
        out_shape=jax.ShapeDtypeStruct((N, 1), jnp.float32),
        compiler_params=pltpu.CompilerParams(
            vmem_limit_bytes=32 * 1024 * 1024),
    )

    def forward(x, prep):
        args = [prep['fcb'], prep['fcw']]
        for bm, bp in zip(meta['branches'], prep['branches']):
            k, Tk = bm['k'], bm['Tk']
            # im2col for the stride-k / kernel-k Conv1d, transposed to
            # (N, k*F, Tk) so all in-kernel math is lane-dense along time.
            xcol = jnp.transpose(x.reshape(N, Tk, k * F), (0, 2, 1)).astype(mxu)
            args += [xcol, bp['wc'], bp['cb'], bp['gT'], bp['bT'],
                     bp['w1T'], bp['w2f']]
        branch_outs = branch_call(*args)               # nb arrays of (N, Tk_b)
        h = jnp.concatenate(list(branch_outs), axis=1)  # (N, D)
        return stock_call(h, prep['gamma_s'], prep['beta_s'], prep['m1'],
                          prep['m2'], prep['fw12'], prep['fw2'], prep['fcb_s'])

    return jax.jit(forward)


# ----------------------------------------------------------------------------
# Pure-JAX reference that mirrors the PyTorch module exactly
# ----------------------------------------------------------------------------
def reference_forward(x, params):
    N, T, F = x.shape
    outs = []
    for bp in params['branches']:
        k = bp['k']
        Tk = T // k
        # Conv1d(F, F, k, stride=k) on (N, F, T), back to (N, Tk, F)
        xr = x.reshape(N, Tk, k * F)
        wc = jnp.transpose(bp['conv_w'], (2, 1, 0)).reshape(k * F, F)
        y = jnp.einsum('ntk,kf->ntf', xr, wc) + bp['conv_b'][None, None, :]
        # LayerNorm((Tk, F)), biased variance, eps=1e-5
        mean = jnp.mean(y, axis=(1, 2), keepdims=True)
        var = jnp.mean((y - mean) ** 2, axis=(1, 2), keepdims=True)
        ln = (y - mean) / jnp.sqrt(var + _EPS) * bp['gamma'][None] + bp['beta'][None]
        h = _hardswish(ln @ bp['w1']) @ bp['w2']
        res = y + h                                   # residual on pre-LN input
        o = (res @ params['fc_w'].T)[..., 0] + params['fc_b'][0]
        outs.append(o)                                # (N, Tk)
    hcat = jnp.concatenate(outs, axis=1)              # (N, D)

    sm = params['stock']
    mean = jnp.mean(hcat)
    var = jnp.mean((hcat - mean) ** 2)
    lnh = (hcat - mean) / jnp.sqrt(var + _EPS) * sm['gamma'] + sm['beta']
    s = sm['m2'] @ _hardswish(sm['m1'] @ lnh)
    mixed = hcat + s
    cat = jnp.concatenate([hcat, mixed], axis=1)      # (N, 2D)
    return cat @ sm['fc_w'].T + sm['fc_b']


# ----------------------------------------------------------------------------
# Deterministic parameter construction (PyTorch-like shapes)
# ----------------------------------------------------------------------------
def make_params(key, feature_dim, seq_len, hidden_dim, market_dim, stock_num,
                scale_factors):
    keys = iter(jax.random.split(key, 64))
    nrm = lambda shp, s=0.1: (s * jax.random.normal(next(keys), shp)
                              ).astype(jnp.float32)
    branches = []
    for k in scale_factors:
        Tk = seq_len // k
        branches.append(dict(
            k=k,
            conv_w=nrm((feature_dim, feature_dim, k)),   # (F_out, F_in, k)
            conv_b=nrm((feature_dim,)),
            gamma=(1.0 + nrm((Tk, feature_dim))),
            beta=nrm((Tk, feature_dim)),
            w1=nrm((feature_dim, hidden_dim)),
            w2=nrm((hidden_dim, feature_dim)),
        ))
    mix_dim = sum(seq_len // k for k in scale_factors)
    stock = dict(
        gamma=(1.0 + nrm((stock_num, mix_dim))),
        beta=nrm((stock_num, mix_dim)),
        m1=nrm((market_dim, stock_num)),
        m2=nrm((stock_num, market_dim)),
        fc_w=nrm((1, 2 * mix_dim)),
        fc_b=nrm((1,)),
    )
    return dict(branches=branches,
                fc_w=nrm((1, feature_dim)),     # shared Linear(F, 1)
                fc_b=nrm((1,)),
                stock=stock)


if __name__ == "__main__":
    feature_dim, seq_len, hidden_dim = 16, 8, 32
    market_dim, stock_num = 4, 16
    scale_factors = [1, 2]

    key = jax.random.PRNGKey(0)
    kx, kp = jax.random.split(key)
    x = jax.random.normal(kx, (stock_num, seq_len, feature_dim),
                          dtype=jnp.float32)
    params = make_params(kp, feature_dim, seq_len, hidden_dim, market_dim,
                         stock_num, scale_factors)
    ref = np.asarray(jax.block_until_ready(reference_forward(x, params)))

    # --- f32 MXU operands: exact-precision check --------------------------
    meta32, prep32 = prepare_params(params, stock_num, seq_len,
                                    mxu_dtype=jnp.float32)
    fwd32 = make_forward(meta32)
    out32 = np.asarray(jax.block_until_ready(fwd32(x, prep32)))
    assert out32.shape == (stock_num, 1), out32.shape
    err32 = np.max(np.abs(out32 - ref))
    assert np.allclose(out32, ref, rtol=1e-4, atol=2e-4), err32

    # --- bf16 MXU operands (v6e/v7x fast path): loose sanity check --------
    metabf, prepbf = prepare_params(params, stock_num, seq_len,
                                    mxu_dtype=jnp.bfloat16)
    fwdbf = make_forward(metabf)
    outbf = np.asarray(jax.block_until_ready(fwdbf(x, prepbf)))
    errbf = np.max(np.abs(outbf - ref))
    assert np.allclose(outbf, ref, rtol=1e-1, atol=1e-1), errbf

    print("KERNEL_OK")
</pallas_src>

<mosaic_0001>
module attributes {stable_mosaic.version = 11 : i64} {
  func.func @kernel(%arg0: memref<16x12xf32, #tpu.memory_space<vmem>>, %arg1: memref<16x12xf32, #tpu.memory_space<vmem>>, %arg2: memref<16x12xf32, #tpu.memory_space<vmem>>, %arg3: memref<4x16xf32, #tpu.memory_space<vmem>>, %arg4: memref<16x4xf32, #tpu.memory_space<vmem>>, %arg5: memref<12x1xf32, #tpu.memory_space<vmem>>, %arg6: memref<12x1xf32, #tpu.memory_space<vmem>>, %arg7: memref<1x1xf32, #tpu.memory_space<vmem>>, %arg8: memref<16x1xf32, #tpu.memory_space<vmem>>) attributes {dimension_semantics = [], scalar_prefetch = 0 : i64, scratch_operands = 0 : i64, tpu.core_type = #tpu.core_type<tc>} {
    %c0 = arith.constant 0 : index
    %c0_0 = arith.constant 0 : index
    %0 = vector.load %arg0[%c0, %c0_0] : memref<16x12xf32, #tpu.memory_space<vmem>>, vector<16x12xf32>
    %1 = vector.shape_cast %0 : vector<16x12xf32> to vector<1x16x12xf32>
    %cst = arith.constant dense<0.000000e+00> : vector<1xf32>
    %2 = vector.multi_reduction <add>, %1, %cst [1, 2] : vector<1x16x12xf32> to vector<1xf32>
    %3 = vector.shape_cast %2 : vector<1xf32> to vector<1x1x1xf32>
    %4 = vector.extract %3[0, 0, 0] : f32 from vector<1x1x1xf32>
    %cst_1 = arith.constant 0.00520833349 : f32
    %5 = arith.mulf %4, %cst_1 : f32
    %6 = vector.broadcast %5 : f32 to vector<16x12xf32>
    %7 = arith.subf %0, %6 : vector<16x12xf32>
    %8 = arith.mulf %7, %7 : vector<16x12xf32>
    %9 = vector.shape_cast %8 : vector<16x12xf32> to vector<1x16x12xf32>
    %cst_2 = arith.constant dense<0.000000e+00> : vector<1xf32>
    %10 = vector.multi_reduction <add>, %9, %cst_2 [1, 2] : vector<1x16x12xf32> to vector<1xf32>
    %11 = vector.shape_cast %10 : vector<1xf32> to vector<1x1x1xf32>
    %12 = vector.extract %11[0, 0, 0] : f32 from vector<1x1x1xf32>
    %cst_3 = arith.constant 0.00520833349 : f32
    %13 = arith.mulf %12, %cst_3 : f32
    %cst_4 = arith.constant 9.99999974E-6 : f32
    %14 = arith.addf %13, %cst_4 : f32
    %15 = math.rsqrt %14 : f32
    %16 = vector.broadcast %15 : f32 to vector<16x12xf32>
    %17 = arith.mulf %7, %16 : vector<16x12xf32>
    %c0_5 = arith.constant 0 : index
    %c0_6 = arith.constant 0 : index
    %18 = vector.load %arg1[%c0_5, %c0_6] : memref<16x12xf32, #tpu.memory_space<vmem>>, vector<16x12xf32>
    %19 = arith.mulf %17, %18 : vector<16x12xf32>
    %c0_7 = arith.constant 0 : index
    %c0_8 = arith.constant 0 : index
    %20 = vector.load %arg2[%c0_7, %c0_8] : memref<16x12xf32, #tpu.memory_space<vmem>>, vector<16x12xf32>
    %21 = arith.addf %19, %20 : vector<16x12xf32>
    %c0_9 = arith.constant 0 : index
    %c0_10 = arith.constant 0 : index
    %22 = vector.load %arg3[%c0_9, %c0_10] : memref<4x16xf32, #tpu.memory_space<vmem>>, vector<4x16xf32>
    %cst_11 = arith.constant dense<0.000000e+00> : vector<4x12xf32>
    %23 = tpu.matmul %22, %21, %cst_11 {dimension_numbers = #tpu.dot_dimension_numbers<[1], [0], [0], [1], [0, 0, 1, 1], [], []>} : vector<4x16xf32>, vector<16x12xf32>, vector<4x12xf32> -> vector<4x12xf32>
    %cst_12 = arith.constant 3.000000e+00 : f32
    %24 = vector.broadcast %cst_12 : f32 to vector<4x12xf32>
    %25 = arith.addf %23, %24 : vector<4x12xf32>
    %cst_13 = arith.constant 0.000000e+00 : f32
    %cst_14 = arith.constant 6.000000e+00 : f32
    %26 = vector.broadcast %cst_13 : f32 to vector<4x12xf32>
    %27 = arith.maximumf %26, %25 : vector<4x12xf32>
    %28 = vector.broadcast %cst_14 : f32 to vector<4x12xf32>
    %29 = arith.minimumf %28, %27 : vector<4x12xf32>
    %30 = arith.mulf %23, %29 : vector<4x12xf32>
    %cst_15 = arith.constant 0.166666672 : f32
    %31 = vector.broadcast %cst_15 : f32 to vector<4x12xf32>
    %32 = arith.mulf %30, %31 : vector<4x12xf32>
    %c0_16 = arith.constant 0 : index
    %c0_17 = arith.constant 0 : index
    %33 = vector.load %arg4[%c0_16, %c0_17] : memref<16x4xf32, #tpu.memory_space<vmem>>, vector<16x4xf32>
    %cst_18 = arith.constant dense<0.000000e+00> : vector<16x12xf32>
    %34 = tpu.matmul %33, %32, %cst_18 {dimension_numbers = #tpu.dot_dimension_numbers<[1], [0], [0], [1], [0, 0, 1, 1], [], []>} : vector<16x4xf32>, vector<4x12xf32>, vector<16x12xf32> -> vector<16x12xf32>
    %c0_19 = arith.constant 0 : index
    %c0_20 = arith.constant 0 : index
    %35 = vector.load %arg5[%c0_19, %c0_20] : memref<12x1xf32, #tpu.memory_space<vmem>>, vector<12x1xf32>
    %cst_21 = arith.constant dense<0.000000e+00> : vector<16x1xf32>
    %36 = tpu.matmul %0, %35, %cst_21 {dimension_numbers = #tpu.dot_dimension_numbers<[1], [0], [0], [1], [0, 0, 1, 1], [], []>} : vector<16x12xf32>, vector<12x1xf32>, vector<16x1xf32> -> vector<16x1xf32>
    %c0_22 = arith.constant 0 : index
    %c0_23 = arith.constant 0 : index
    %37 = vector.load %arg6[%c0_22, %c0_23] : memref<12x1xf32, #tpu.memory_space<vmem>>, vector<12x1xf32>
    %cst_24 = arith.constant dense<0.000000e+00> : vector<16x1xf32>
    %38 = tpu.matmul %34, %37, %cst_24 {dimension_numbers = #tpu.dot_dimension_numbers<[1], [0], [0], [1], [0, 0, 1, 1], [], []>} : vector<16x12xf32>, vector<12x1xf32>, vector<16x1xf32> -> vector<16x1xf32>
    %39 = arith.addf %36, %38 : vector<16x1xf32>
    %c0_25 = arith.constant 0 : index
    %c0_26 = arith.constant 0 : index
    %40 = vector.load %arg7[%c0_25, %c0_26] : memref<1x1xf32, #tpu.memory_space<vmem>>, vector<1x1xf32>
    %41 = vector.broadcast %40 : vector<1x1xf32> to vector<16x1xf32>
    %42 = arith.addf %39, %41 : vector<16x1xf32>
    %c0_27 = arith.constant 0 : index
    %c0_28 = arith.constant 0 : index
    %43 = vector.load %arg8[%c0_27, %c0_28] : memref<16x1xf32, #tpu.memory_space<vmem>>, vector<16x1xf32>
    tpu.vector_store %arg8[%c0_27, %c0_28], %42 {strides = array<i32>} : memref<16x1xf32, #tpu.memory_space<vmem>>, vector<16x1xf32>,
    return
  }
}

module attributes {stable_mosaic.version = 11 : i64} {
  func.func @kernel(%arg0: i32, %arg1: memref<1x1xf32, #tpu.memory_space<vmem>>, %arg2: memref<1x16xf32, #tpu.memory_space<vmem>>, %arg3: memref<8x16x8xf32, #tpu.memory_space<vmem>>, %arg4: memref<16x16xf32, #tpu.memory_space<vmem>>, %arg5: memref<16x1xf32, #tpu.memory_space<vmem>>, %arg6: memref<16x8xf32, #tpu.memory_space<vmem>>, %arg7: memref<16x8xf32, #tpu.memory_space<vmem>>, %arg8: memref<32x16xf32, #tpu.memory_space<vmem>>, %arg9: memref<1x32xf32, #tpu.memory_space<vmem>>, %arg10: memref<8x32x4xf32, #tpu.memory_space<vmem>>, %arg11: memref<16x32xf32, #tpu.memory_space<vmem>>, %arg12: memref<16x1xf32, #tpu.memory_space<vmem>>, %arg13: memref<16x4xf32, #tpu.memory_space<vmem>>, %arg14: memref<16x4xf32, #tpu.memory_space<vmem>>, %arg15: memref<32x16xf32, #tpu.memory_space<vmem>>, %arg16: memref<1x32xf32, #tpu.memory_space<vmem>>, %arg17: memref<8x8xf32, #tpu.memory_space<vmem>>, %arg18: memref<8x4xf32, #tpu.memory_space<vmem>>) attributes {dimension_semantics = [#tpu.dimension_semantics<parallel>], iteration_bounds = array<i64: 2>, scalar_prefetch = 0 : i64, scratch_operands = 0 : i64, tpu.core_type = #tpu.core_type<tc>, window_params = [{pipeline_mode = #tpu.pipeline_mode<synchronous>, transform_indices = @transform_0, window_bounds = array<i64: 1, 1>}, {pipeline_mode = #tpu.pipeline_mode<synchronous>, transform_indices = @transform_1, window_bounds = array<i64: 1, 16>}, {transform_indices = @transform_2, window_bounds = array<i64: 8, 16, 8>}, {pipeline_mode = #tpu.pipeline_mode<synchronous>, transform_indices = @transform_3, window_bounds = array<i64: 16, 16>}, {pipeline_mode = #tpu.pipeline_mode<synchronous>, transform_indices = @transform_4, window_bounds = array<i64: 16, 1>}, {pipeline_mode = #tpu.pipeline_mode<synchronous>, transform_indices = @transform_5, window_bounds = array<i64: 16, 8>}, {pipeline_mode = #tpu.pipeline_mode<synchronous>, transform_indices = @transform_6, window_bounds = array<i64: 16, 8>}, {pipeline_mode = #tpu.pipeline_mode<synchronous>, transform_indices = @transform_7, window_bounds = array<i64: 32, 16>}, {pipeline_mode = #tpu.pipeline_mode<synchronous>, transform_indices = @transform_8, window_bounds = array<i64: 1, 32>}, {transform_indices = @transform_9, window_bounds = array<i64: 8, 32, 4>}, {pipeline_mode = #tpu.pipeline_mode<synchronous>, transform_indices = @transform_10, window_bounds = array<i64: 16, 32>}, {pipeline_mode = #tpu.pipeline_mode<synchronous>, transform_indices = @transform_11, window_bounds = array<i64: 16, 1>}, {pipeline_mode = #tpu.pipeline_mode<synchronous>, transform_indices = @transform_12, window_bounds = array<i64: 16, 4>}, {pipeline_mode = #tpu.pipeline_mode<synchronous>, transform_indices = @transform_13, window_bounds = array<i64: 16, 4>}, {pipeline_mode = #tpu.pipeline_mode<synchronous>, transform_indices = @transform_14, window_bounds = array<i64: 32, 16>}, {pipeline_mode = #tpu.pipeline_mode<synchronous>, transform_indices = @transform_15, window_bounds = array<i64: 1, 32>}, {transform_indices = @transform_16, window_bounds = array<i64: 8, 8>}, {transform_indices = @transform_17, window_bounds = array<i64: 8, 4>}]} {
    %c0 = arith.constant 0 : index
    %c0_0 = arith.constant 0 : index
    %0 = vector.load %arg1[%c0, %c0_0] : memref<1x1xf32, #tpu.memory_space<vmem>>, vector<1x1xf32>
    %c0_1 = arith.constant 0 : index
    %c0_2 = arith.constant 0 : index
    %1 = vector.load %arg2[%c0_1, %c0_2] : memref<1x16xf32, #tpu.memory_space<vmem>>, vector<1x16xf32>
    %c0_3 = arith.constant 0 : index
    %c0_4 = arith.constant 0 : index
    %2 = vector.load %arg4[%c0_3, %c0_4] : memref<16x16xf32, #tpu.memory_space<vmem>>, vector<16x16xf32>
    %c0_5 = arith.constant 0 : index
    %c0_6 = arith.constant 0 : index
    %3 = vector.load %arg5[%c0_5, %c0_6] : memref<16x1xf32, #tpu.memory_space<vmem>>, vector<16x1xf32>
    %c0_7 = arith.constant 0 : index
    %c0_8 = arith.constant 0 : index
    %4 = vector.load %arg6[%c0_7, %c0_8] : memref<16x8xf32, #tpu.memory_space<vmem>>, vector<16x8xf32>
    %c0_9 = arith.constant 0 : index
    %c0_10 = arith.constant 0 : index
    %5 = vector.load %arg7[%c0_9, %c0_10] : memref<16x8xf32, #tpu.memory_space<vmem>>, vector<16x8xf32>
    %c0_11 = arith.constant 0 : index
    %c0_12 = arith.constant 0 : index
    %6 = vector.load %arg8[%c0_11, %c0_12] : memref<32x16xf32, #tpu.memory_space<vmem>>, vector<32x16xf32>
    %c0_13 = arith.constant 0 : index
    %c0_14 = arith.constant 0 : index
    %7 = vector.load %arg9[%c0_13, %c0_14] : memref<1x32xf32, #tpu.memory_space<vmem>>, vector<1x32xf32>
    %c0_15 = arith.constant 0 : index
    %c0_16 = arith.constant 0 : index
    %c0_17 = arith.constant 0 : index
    %8 = vector.load %arg3[%c0_15, %c0_16, %c0_17] : memref<8x16x8xf32, #tpu.memory_space<vmem>>, vector<1x16x8xf32>
    %9 = vector.shape_cast %8 : vector<1x16x8xf32> to vector<16x8xf32>
    %cst = arith.constant dense<0.000000e+00> : vector<16x8xf32>
    %10 = tpu.matmul %2, %9, %cst {dimension_numbers = #tpu.dot_dimension_numbers<[1], [0], [0], [1], [0, 0, 1, 1], [], []>} : vector<16x16xf32>, vector<16x8xf32>, vector<16x8xf32> -> vector<16x8xf32>
    %11 = vector.broadcast %3 : vector<16x1xf32> to vector<16x8xf32>
    %12 = arith.addf %10, %11 : vector<16x8xf32>
    %13 = vector.shape_cast %12 : vector<16x8xf32> to vector<1x16x8xf32>
    %cst_18 = arith.constant dense<0.000000e+00> : vector<1xf32>
    %14 = vector.multi_reduction <add>, %13, %cst_18 [1, 2] : vector<1x16x8xf32> to vector<1xf32>
    %15 = vector.shape_cast %14 : vector<1xf32> to vector<1x1x1xf32>
    %16 = vector.extract %15[0, 0, 0] : f32 from vector<1x1x1xf32>
    %cst_19 = arith.constant 7.812500e-03 : f32
    %17 = arith.mulf %16, %cst_19 : f32
    %18 = vector.broadcast %17 : f32 to vector<16x8xf32>
    %19 = arith.subf %12, %18 : vector<16x8xf32>
    %20 = arith.mulf %19, %19 : vector<16x8xf32>
    %21 = vector.shape_cast %20 : vector<16x8xf32> to vector<1x16x8xf32>
    %cst_20 = arith.constant dense<0.000000e+00> : vector<1xf32>
    %22 = vector.multi_reduction <add>, %21, %cst_20 [1, 2] : vector<1x16x8xf32> to vector<1xf32>
    %23 = vector.shape_cast %22 : vector<1xf32> to vector<1x1x1xf32>
    %24 = vector.extract %23[0, 0, 0] : f32 from vector<1x1x1xf32>
    %cst_21 = arith.constant 7.812500e-03 : f32
    %25 = arith.mulf %24, %cst_21 : f32
    %cst_22 = arith.constant 9.99999974E-6 : f32
    %26 = arith.addf %25, %cst_22 : f32
    %27 = math.rsqrt %26 : f32
    %28 = vector.broadcast %27 : f32 to vector<16x8xf32>
    %29 = arith.mulf %19, %28 : vector<16x8xf32>
    %30 = arith.mulf %29, %4 : vector<16x8xf32>
    %31 = arith.addf %30, %5 : vector<16x8xf32>
    %cst_23 = arith.constant dense<0.000000e+00> : vector<32x8xf32>
    %32 = tpu.matmul %6, %31, %cst_23 {dimension_numbers = #tpu.dot_dimension_numbers<[1], [0], [0], [1], [0, 0, 1, 1], [], []>} : vector<32x16xf32>, vector<16x8xf32>, vector<32x8xf32> -> vector<32x8xf32>
    %cst_24 = arith.constant 3.000000e+00 : f32
    %33 = vector.broadcast %cst_24 : f32 to vector<32x8xf32>
    %34 = arith.addf %32, %33 : vector<32x8xf32>
    %cst_25 = arith.constant 0.000000e+00 : f32
    %cst_26 = arith.constant 6.000000e+00 : f32
    %35 = vector.broadcast %cst_25 : f32 to vector<32x8xf32>
    %36 = arith.maximumf %35, %34 : vector<32x8xf32>
    %37 = vector.broadcast %cst_26 : f32 to vector<32x8xf32>
    %38 = arith.minimumf %37, %36 : vector<32x8xf32>
    %39 = arith.mulf %32, %38 : vector<32x8xf32>
    %cst_27 = arith.constant 0.166666672 : f32
    %40 = vector.broadcast %cst_27 : f32 to vector<32x8xf32>
    %41 = arith.mulf %39, %40 : vector<32x8xf32>
    %cst_28 = arith.constant dense<0.000000e+00> : vector<1x8xf32>
    %42 = tpu.matmul %1, %12, %cst_28 {dimension_numbers = #tpu.dot_dimension_numbers<[1], [0], [0], [1], [0, 0, 1, 1], [], []>} : vector<1x16xf32>, vector<16x8xf32>, vector<1x8xf32> -> vector<1x8xf32>
    %cst_29 = arith.constant dense<0.000000e+00> : vector<1x8xf32>
    %43 = tpu.matmul %7, %41, %cst_29 {dimension_numbers = #tpu.dot_dimension_numbers<[1], [0], [0], [1], [0, 0, 1, 1], [], []>} : vector<1x32xf32>, vector<32x8xf32>, vector<1x8xf32> -> vector<1x8xf32>
    %44 = arith.addf %42, %43 : vector<1x8xf32>
    %45 = vector.broadcast %0 : vector<1x1xf32> to vector<1x8xf32>
    %46 = arith.addf %44, %45 : vector<1x8xf32>
    %c0_30 = arith.constant 0 : index
    %c0_31 = arith.constant 0 : index
    %47 = vector.load %arg17[%c0_30, %c0_31] : memref<8x8xf32, #tpu.memory_space<vmem>>, vector<1x8xf32>
    tpu.vector_store %arg17[%c0_30, %c0_31], %46 {strides = array<i32>} : memref<8x8xf32, #tpu.memory_space<vmem>>, vector<1x8xf32>,
    %c1 = arith.constant 1 : index
    %c0_32 = arith.constant 0 : index
    %c0_33 = arith.constant 0 : index
    %48 = vector.load %arg3[%c1, %c0_32, %c0_33] : memref<8x16x8xf32, #tpu.memory_space<vmem>>, vector<1x16x8xf32>
    %49 = vector.shape_cast %48 : vector<1x16x8xf32> to vector<16x8xf32>
    %cst_34 = arith.constant dense<0.000000e+00> : vector<16x8xf32>
    %50 = tpu.matmul %2, %49, %cst_34 {dimension_numbers = #tpu.dot_dimension_numbers<[1], [0], [0], [1], [0, 0, 1, 1], [], []>} : vector<16x16xf32>, vector<16x8xf32>, vector<16x8xf32> -> vector<16x8xf32>
    %51 = vector.broadcast %3 : vector<16x1xf32> to vector<16x8xf32>
    %52 = arith.addf %50, %51 : vector<16x8xf32>
    %53 = vector.shape_cast %52 : vector<16x8xf32> to vector<1x16x8xf32>
    %cst_35 = arith.constant dense<0.000000e+00> : vector<1xf32>
    %54 = vector.multi_reduction <add>, %53, %cst_35 [1, 2] : vector<1x16x8xf32> to vector<1xf32>
    %55 = vector.shape_cast %54 : vector<1xf32> to vector<1x1x1xf32>
    %56 = vector.extract %55[0, 0, 0] : f32 from vector<1x1x1xf32>
    %cst_36 = arith.constant 7.812500e-03 : f32
    %57 = arith.mulf %56, %cst_36 : f32
    %58 = vector.broadcast %57 : f32 to vector<16x8xf32>
    %59 = arith.subf %52, %58 : vector<16x8xf32>
    %60 = arith.mulf %59, %59 : vector<16x8xf32>
    %61 = vector.shape_cast %60 : vector<16x8xf32> to vector<1x16x8xf32>
    %cst_37 = arith.constant dense<0.000000e+00> : vector<1xf32>
    %62 = vector.multi_reduction <add>, %61, %cst_37 [1, 2] : vector<1x16x8xf32> to vector<1xf32>
    %63 = vector.shape_cast %62 : vector<1xf32> to vector<1x1x1xf32>
    %64 = vector.extract %63[0, 0, 0] : f32 from vector<1x1x1xf32>
    %cst_38 = arith.constant 7.812500e-03 : f32
    %65 = arith.mulf %64, %cst_38 : f32
    %cst_39 = arith.constant 9.99999974E-6 : f32
    %66 = arith.addf %65, %cst_39 : f32
    %67 = math.rsqrt %66 : f32
    %68 = vector.broadcast %67 : f32 to vector<16x8xf32>
    %69 = arith.mulf %59, %68 : vector<16x8xf32>
    %70 = arith.mulf %69, %4 : vector<16x8xf32>
    %71 = arith.addf %70, %5 : vector<16x8xf32>
    %cst_40 = arith.constant dense<0.000000e+00> : vector<32x8xf32>
    %72 = tpu.matmul %6, %71, %cst_40 {dimension_numbers = #tpu.dot_dimension_numbers<[1], [0], [0], [1], [0, 0, 1, 1], [], []>} : vector<32x16xf32>, vector<16x8xf32>, vector<32x8xf32> -> vector<32x8xf32>
    %cst_41 = arith.constant 3.000000e+00 : f32
    %73 = vector.broadcast %cst_41 : f32 to vector<32x8xf32>
    %74 = arith.addf %72, %73 : vector<32x8xf32>
    %cst_42 = arith.constant 0.000000e+00 : f32
    %cst_43 = arith.constant 6.000000e+00 : f32
    %75 = vector.broadcast %cst_42 : f32 to vector<32x8xf32>
    %76 = arith.maximumf %75, %74 : vector<32x8xf32>
    %77 = vector.broadcast %cst_43 : f32 to vector<32x8xf32>
    %78 = arith.minimumf %77, %76 : vector<32x8xf32>
    %79 = arith.mulf %72, %78 : vector<32x8xf32>
    %cst_44 = arith.constant 0.166666672 : f32
    %80 = vector.broadcast %cst_44 : f32 to vector<32x8xf32>
    %81 = arith.mulf %79, %80 : vector<32x8xf32>
    %cst_45 = arith.constant dense<0.000000e+00> : vector<1x8xf32>
    %82 = tpu.matmul %1, %52, %cst_45 {dimension_numbers = #tpu.dot_dimension_numbers<[1], [0], [0], [1], [0, 0, 1, 1], [], []>} : vector<1x16xf32>, vector<16x8xf32>, vector<1x8xf32> -> vector<1x8xf32>
    %cst_46 = arith.constant dense<0.000000e+00> : vector<1x8xf32>
    %83 = tpu.matmul %7, %81, %cst_46 {dimension_numbers = #tpu.dot_dimension_numbers<[1], [0], [0], [1], [0, 0, 1, 1], [], []>} : vector<1x32xf32>, vector<32x8xf32>, vector<1x8xf32> -> vector<1x8xf32>
    %84 = arith.addf %82, %83 : vector<1x8xf32>
    %85 = vector.broadcast %0 : vector<1x1xf32> to vector<1x8xf32>
    %86 = arith.addf %84, %85 : vector<1x8xf32>
    %c1_47 = arith.constant 1 : index
    %c0_48 = arith.constant 0 : index
    %87 = vector.load %arg17[%c1_47, %c0_48] : memref<8x8xf32, #tpu.memory_space<vmem>>, vector<1x8xf32>
    tpu.vector_store %arg17[%c1_47, %c0_48], %86 {strides = array<i32>} : memref<8x8xf32, #tpu.memory_space<vmem>>, vector<1x8xf32>,
    %c2 = arith.constant 2 : index
    %c0_49 = arith.constant 0 : index
    %c0_50 = arith.constant 0 : index
    %88 = vector.load %arg3[%c2, %c0_49, %c0_50] : memref<8x16x8xf32, #tpu.memory_space<vmem>>, vector<1x16x8xf32>
    %89 = vector.shape_cast %88 : vector<1x16x8xf32> to vector<16x8xf32>
    %cst_51 = arith.constant dense<0.000000e+00> : vector<16x8xf32>
    %90 = tpu.matmul %2, %89, %cst_51 {dimension_numbers = #tpu.dot_dimension_numbers<[1], [0], [0], [1], [0, 0, 1, 1], [], []>} : vector<16x16xf32>, vector<16x8xf32>, vector<16x8xf32> -> vector<16x8xf32>
    %91 = vector.broadcast %3 : vector<16x1xf32> to vector<16x8xf32>
    %92 = arith.addf %90, %91 : vector<16x8xf32>
    %93 = vector.shape_cast %92 : vector<16x8xf32> to vector<1x16x8xf32>
    %cst_52 = arith.constant dense<0.000000e+00> : vector<1xf32>
    %94 = vector.multi_reduction <add>, %93, %cst_52 [1, 2] : vector<1x16x8xf32> to vector<1xf32>
    %95 = vector.shape_cast %94 : vector<1xf32> to vector<1x1x1xf32>
    %96 = vector.extract %95[0, 0, 0] : f32 from vector<1x1x1xf32>
    %cst_53 = arith.constant 7.812500e-03 : f32
    %97 = arith.mulf %96, %cst_53 : f32
    %98 = vector.broadcast %97 : f32 to vector<16x8xf32>
    %99 = arith.subf %92, %98 : vector<16x8xf32>
    %100 = arith.mulf %99, %99 : vector<16x8xf32>
    %101 = vector.shape_cast %100 : vector<16x8xf32> to vector<1x16x8xf32>
    %cst_54 = arith.constant dense<0.000000e+00> : vector<1xf32>
    %102 = vector.multi_reduction <add>, %101, %cst_54 [1, 2] : vector<1x16x8xf32> to vector<1xf32>
    %103 = vector.shape_cast %102 : vector<1xf32> to vector<1x1x1xf32>
    %104 = vector.extract %103[0, 0, 0] : f32 from vector<1x1x1xf32>
    %cst_55 = arith.constant 7.812500e-03 : f32
    %105 = arith.mulf %104, %cst_55 : f32
    %cst_56 = arith.constant 9.99999974E-6 : f32
    %106 = arith.addf %105, %cst_56 : f32
    %107 = math.rsqrt %106 : f32
    %108 = vector.broadcast %107 : f32 to vector<16x8xf32>
    %109 = arith.mulf %99, %108 : vector<16x8xf32>
    %110 = arith.mulf %109, %4 : vector<16x8xf32>
    %111 = arith.addf %110, %5 : vector<16x8xf32>
    %cst_57 = arith.constant dense<0.000000e+00> : vector<32x8xf32>
    %112 = tpu.matmul %6, %111, %cst_57 {dimension_numbers = #tpu.dot_dimension_numbers<[1], [0], [0], [1], [0, 0, 1, 1], [], []>} : vector<32x16xf32>, vector<16x8xf32>, vector<32x8xf32> -> vector<32x8xf32>
    %cst_58 = arith.constant 3.000000e+00 : f32
    %113 = vector.broadcast %cst_58 : f32 to vector<32x8xf32>
    %114 = arith.addf %112, %113 : vector<32x8xf32>
    %cst_59 = arith.constant 0.000000e+00 : f32
    %cst_60 = arith.constant 6.000000e+00 : f32
    %115 = vector.broadcast %cst_59 : f32 to vector<32x8xf32>
    %116 = arith.maximumf %115, %114 : vector<32x8xf32>
    %117 = vector.broadcast %cst_60 : f32 to vector<32x8xf32>
    %118 = arith.minimumf %117, %116 : vector<32x8xf32>
    %119 = arith.mulf %112, %118 : vector<32x8xf32>
    %cst_61 = arith.constant 0.166666672 : f32
    %120 = vector.broadcast %cst_61 : f32 to vector<32x8xf32>
    %121 = arith.mulf %119, %120 : vector<32x8xf32>
    %cst_62 = arith.constant dense<0.000000e+00> : vector<1x8xf32>
    %122 = tpu.matmul %1, %92, %cst_62 {dimension_numbers = #tpu.dot_dimension_numbers<[1], [0], [0], [1], [0, 0, 1, 1], [], []>} : vector<1x16xf32>, vector<16x8xf32>, vector<1x8xf32> -> vector<1x8xf32>
    %cst_63 = arith.constant dense<0.000000e+00> : vector<1x8xf32>
    %123 = tpu.matmul %7, %121, %cst_63 {dimension_numbers = #tpu.dot_dimension_numbers<[1], [0], [0], [1], [0, 0, 1, 1], [], []>} : vector<1x32xf32>, vector<32x8xf32>, vector<1x8xf32> -> vector<1x8xf32>
    %124 = arith.addf %122, %123 : vector<1x8xf32>
    %125 = vector.broadcast %0 : vector<1x1xf32> to vector<1x8xf32>
    %126 = arith.addf %124, %125 : vector<1x8xf32>
    %c2_64 = arith.constant 2 : index
    %c0_65 = arith.constant 0 : index
    %127 = vector.load %arg17[%c2_64, %c0_65] : memref<8x8xf32, #tpu.memory_space<vmem>>, vector<1x8xf32>
    tpu.vector_store %arg17[%c2_64, %c0_65], %126 {strides = array<i32>} : memref<8x8xf32, #tpu.memory_space<vmem>>, vector<1x8xf32>,
    %c3 = arith.constant 3 : index
    %c0_66 = arith.constant 0 : index
    %c0_67 = arith.constant 0 : index
    %128 = vector.load %arg3[%c3, %c0_66, %c0_67] : memref<8x16x8xf32, #tpu.memory_space<vmem>>, vector<1x16x8xf32>
    %129 = vector.shape_cast %128 : vector<1x16x8xf32> to vector<16x8xf32>
    %cst_68 = arith.constant dense<0.000000e+00> : vector<16x8xf32>
    %130 = tpu.matmul %2, %129, %cst_68 {dimension_numbers = #tpu.dot_dimension_numbers<[1], [0], [0], [1], [0, 0, 1, 1], [], []>} : vector<16x16xf32>, vector<16x8xf32>, vector<16x8xf32> -> vector<16x8xf32>
    %131 = vector.broadcast %3 : vector<16x1xf32> to vector<16x8xf32>
    %132 = arith.addf %130, %131 : vector<16x8xf32>
    %133 = vector.shape_cast %132 : vector<16x8xf32> to vector<1x16x8xf32>
    %cst_69 = arith.constant dense<0.000000e+00> : vector<1xf32>
    %134 = vector.multi_reduction <add>, %133, %cst_69 [1, 2] : vector<1x16x8xf32> to vector<1xf32>
    %135 = vector.shape_cast %134 : vector<1xf32> to vector<1x1x1xf32>
    %136 = vector.extract %135[0, 0, 0] : f32 from vector<1x1x1xf32>
    %cst_70 = arith.constant 7.812500e-03 : f32
    %137 = arith.mulf %136, %cst_70 : f32
    %138 = vector.broadcast %137 : f32 to vector<16x8xf32>
    %139 = arith.subf %132, %138 : vector<16x8xf32>
    %140 = arith.mulf %139, %139 : vector<16x8xf32>
    %141 = vector.shape_cast %140 : vector<16x8xf32> to vector<1x16x8xf32>
    %cst_71 = arith.constant dense<0.000000e+00> : vector<1xf32>
    %142 = vector.multi_reduction <add>, %141, %cst_71 [1, 2] : vector<1x16x8xf32> to vector<1xf32>
    %143 = vector.shape_cast %142 : vector<1xf32> to vector<1x1x1xf32>
    %144 = vector.extract %143[0, 0, 0] : f32 from vector<1x1x1xf32>
    %cst_72 = arith.constant 7.812500e-03 : f32
    %145 = arith.mulf %144, %cst_72 : f32
    %cst_73 = arith.constant 9.99999974E-6 : f32
    %146 = arith.addf %145, %cst_73 : f32
    %147 = math.rsqrt %146 : f32
    %148 = vector.broadcast %147 : f32 to vector<16x8xf32>
    %149 = arith.mulf %139, %148 : vector<16x8xf32>
    %150 = arith.mulf %149, %4 : vector<16x8xf32>
    %151 = arith.addf %150, %5 : vector<16x8xf32>
    %cst_74 = arith.constant dense<0.000000e+00> : vector<32x8xf32>
    %152 = tpu.matmul %6, %151, %cst_74 {dimension_numbers = #tpu.dot_dimension_numbers<[1], [0], [0], [1], [0, 0, 1, 1], [], []>} : vector<32x16xf32>, vector<16x8xf32>, vector<32x8xf32> -> vector<32x8xf32>
    %cst_75 = arith.constant 3.000000e+00 : f32
    %153 = vector.broadcast %cst_75 : f32 to vector<32x8xf32>
    %154 = arith.addf %152, %153 : vector<32x8xf32>
    %cst_76 = arith.constant 0.000000e+00 : f32
    %cst_77 = arith.constant 6.000000e+00 : f32
    %155 = vector.broadcast %cst_76 : f32 to vector<32x8xf32>
    %156 = arith.maximumf %155, %154 : vector<32x8xf32>
    %157 = vector.broadcast %cst_77 : f32 to vector<32x8xf32>
    %158 = arith.minimumf %157, %156 : vector<32x8xf32>
    %159 = arith.mulf %152, %158 : vector<32x8xf32>
    %cst_78 = arith.constant 0.166666672 : f32
    %160 = vector.broadcast %cst_78 : f32 to vector<32x8xf32>
    %161 = arith.mulf %159, %160 : vector<32x8xf32>
    %cst_79 = arith.constant dense<0.000000e+00> : vector<1x8xf32>
    %162 = tpu.matmul %1, %132, %cst_79 {dimension_numbers = #tpu.dot_dimension_numbers<[1], [0], [0], [1], [0, 0, 1, 1], [], []>} : vector<1x16xf32>, vector<16x8xf32>, vector<1x8xf32> -> vector<1x8xf32>
    %cst_80 = arith.constant dense<0.000000e+00> : vector<1x8xf32>
    %163 = tpu.matmul %7, %161, %cst_80 {dimension_numbers = #tpu.dot_dimension_numbers<[1], [0], [0], [1], [0, 0, 1, 1], [], []>} : vector<1x32xf32>, vector<32x8xf32>, vector<1x8xf32> -> vector<1x8xf32>
    %164 = arith.addf %162, %163 : vector<1x8xf32>
    %165 = vector.broadcast %0 : vector<1x1xf32> to vector<1x8xf32>
    %166 = arith.addf %164, %165 : vector<1x8xf32>
    %c3_81 = arith.constant 3 : index
    %c0_82 = arith.constant 0 : index
    %167 = vector.load %arg17[%c3_81, %c0_82] : memref<8x8xf32, #tpu.memory_space<vmem>>, vector<1x8xf32>
    tpu.vector_store %arg17[%c3_81, %c0_82], %166 {strides = array<i32>} : memref<8x8xf32, #tpu.memory_space<vmem>>, vector<1x8xf32>,
    %c4 = arith.constant 4 : index
    %c0_83 = arith.constant 0 : index
    %c0_84 = arith.constant 0 : index
    %168 = vector.load %arg3[%c4, %c0_83, %c0_84] : memref<8x16x8xf32, #tpu.memory_space<vmem>>, vector<1x16x8xf32>
    %169 = vector.shape_cast %168 : vector<1x16x8xf32> to vector<16x8xf32>
    %cst_85 = arith.constant dense<0.000000e+00> : vector<16x8xf32>
    %170 = tpu.matmul %2, %169, %cst_85 {dimension_numbers = #tpu.dot_dimension_numbers<[1], [0], [0], [1], [0, 0, 1, 1], [], []>} : vector<16x16xf32>, vector<16x8xf32>, vector<16x8xf32> -> vector<16x8xf32>
    %171 = vector.broadcast %3 : vector<16x1xf32> to vector<16x8xf32>
    %172 = arith.addf %170, %171 : vector<16x8xf32>
    %173 = vector.shape_cast %172 : vector<16x8xf32> to vector<1x16x8xf32>
    %cst_86 = arith.constant dense<0.000000e+00> : vector<1xf32>
    %174 = vector.multi_reduction <add>, %173, %cst_86 [1, 2] : vector<1x16x8xf32> to vector<1xf32>
    %175 = vector.shape_cast %174 : vector<1xf32> to vector<1x1x1xf32>
    %176 = vector.extract %175[0, 0, 0] : f32 from vector<1x1x1xf32>
    %cst_87 = arith.constant 7.812500e-03 : f32
    %177 = arith.mulf %176, %cst_87 : f32
    %178 = vector.broadcast %177 : f32 to vector<16x8xf32>
    %179 = arith.subf %172, %178 : vector<16x8xf32>
    %180 = arith.mulf %179, %179 : vector<16x8xf32>
    %181 = vector.shape_cast %180 : vector<16x8xf32> to vector<1x16x8xf32>
    %cst_88 = arith.constant dense<0.000000e+00> : vector<1xf32>
    %182 = vector.multi_reduction <add>, %181, %cst_88 [1, 2] : vector<1x16x8xf32> to vector<1xf32>
    %183 = vector.shape_cast %182 : vector<1xf32> to vector<1x1x1xf32>
    %184 = vector.extract %183[0, 0, 0] : f32 from vector<1x1x1xf32>
    %cst_89 = arith.constant 7.812500e-03 : f32
    %185 = arith.mulf %184, %cst_89 : f32
    %cst_90 = arith.constant 9.99999974E-6 : f32
    %186 = arith.addf %185, %cst_90 : f32
    %187 = math.rsqrt %186 : f32
    %188 = vector.broadcast %187 : f32 to vector<16x8xf32>
    %189 = arith.mulf %179, %188 : vector<16x8xf32>
    %190 = arith.mulf %189, %4 : vector<16x8xf32>
    %191 = arith.addf %190, %5 : vector<16x8xf32>
    %cst_91 = arith.constant dense<0.000000e+00> : vector<32x8xf32>
    %192 = tpu.matmul %6, %191, %cst_91 {dimension_numbers = #tpu.dot_dimension_numbers<[1], [0], [0], [1], [0, 0, 1, 1], [], []>} : vector<32x16xf32>, vector<16x8xf32>, vector<32x8xf32> -> vector<32x8xf32>
    %cst_92 = arith.constant 3.000000e+00 : f32
    %193 = vector.broadcast %cst_92 : f32 to vector<32x8xf32>
    %194 = arith.addf %192, %193 : vector<32x8xf32>
    %cst_93 = arith.constant 0.000000e+00 : f32
    %cst_94 = arith.constant 6.000000e+00 : f32
    %195 = vector.broadcast %cst_93 : f32 to vector<32x8xf32>
    %196 = arith.maximumf %195, %194 : vector<32x8xf32>
    %197 = vector.broadcast %cst_94 : f32 to vector<32x8xf32>
    %198 = arith.minimumf %197, %196 : vector<32x8xf32>
    %199 = arith.mulf %192, %198 : vector<32x8xf32>
    %cst_95 = arith.constant 0.166666672 : f32
    %200 = vector.broadcast %cst_95 : f32 to vector<32x8xf32>
    %201 = arith.mulf %199, %200 : vector<32x8xf32>
    %cst_96 = arith.constant dense<0.000000e+00> : vector<1x8xf32>
    %202 = tpu.matmul %1, %172, %cst_96 {dimension_numbers = #tpu.dot_dimension_numbers<[1], [0], [0], [1], [0, 0, 1, 1], [], []>} : vector<1x16xf32>, vector<16x8xf32>, vector<1x8xf32> -> vector<1x8xf32>
    %cst_97 = arith.constant dense<0.000000e+00> : vector<1x8xf32>
    %203 = tpu.matmul %7, %201, %cst_97 {dimension_numbers = #tpu.dot_dimension_numbers<[1], [0], [0], [1], [0, 0, 1, 1], [], []>} : vector<1x32xf32>, vector<32x8xf32>, vector<1x8xf32> -> vector<1x8xf32>
    %204 = arith.addf %202, %203 : vector<1x8xf32>
    %205 = vector.broadcast %0 : vector<1x1xf32> to vector<1x8xf32>
    %206 = arith.addf %204, %205 : vector<1x8xf32>
    %c4_98 = arith.constant 4 : index
    %c0_99 = arith.constant 0 : index
    %207 = vector.load %arg17[%c4_98, %c0_99] : memref<8x8xf32, #tpu.memory_space<vmem>>, vector<1x8xf32>
    tpu.vector_store %arg17[%c4_98, %c0_99], %206 {strides = array<i32>} : memref<8x8xf32, #tpu.memory_space<vmem>>, vector<1x8xf32>,
    %c5 = arith.constant 5 : index
    %c0_100 = arith.constant 0 : index
    %c0_101 = arith.constant 0 : index
    %208 = vector.load %arg3[%c5, %c0_100, %c0_101] : memref<8x16x8xf32, #tpu.memory_space<vmem>>, vector<1x16x8xf32>
    %209 = vector.shape_cast %208 : vector<1x16x8xf32> to vector<16x8xf32>
    %cst_102 = arith.constant dense<0.000000e+00> : vector<16x8xf32>
    %210 = tpu.matmul %2, %209, %cst_102 {dimension_numbers = #tpu.dot_dimension_numbers<[1], [0], [0], [1], [0, 0, 1, 1], [], []>} : vector<16x16xf32>, vector<16x8xf32>, vector<16x8xf32> -> vector<16x8xf32>
    %211 = vector.broadcast %3 : vector<16x1xf32> to vector<16x8xf32>
    %212 = arith.addf %210, %211 : vector<16x8xf32>
    %213 = vector.shape_cast %212 : vector<16x8xf32> to vector<1x16x8xf32>
    %cst_103 = arith.constant dense<0.000000e+00> : vector<1xf32>
    %214 = vector.multi_reduction <add>, %213, %cst_103 [1, 2] : vector<1x16x8xf32> to vector<1xf32>
    %215 = vector.shape_cast %214 : vector<1xf32> to vector<1x1x1xf32>
    %216 = vector.extract %215[0, 0, 0] : f32 from vector<1x1x1xf32>
    %cst_104 = arith.constant 7.812500e-03 : f32
    %217 = arith.mulf %216, %cst_104 : f32
    %218 = vector.broadcast %217 : f32 to vector<16x8xf32>
    %219 = arith.subf %212, %218 : vector<16x8xf32>
    %220 = arith.mulf %219, %219 : vector<16x8xf32>
    %221 = vector.shape_cast %220 : vector<16x8xf32> to vector<1x16x8xf32>
    %cst_105 = arith.constant dense<0.000000e+00> : vector<1xf32>
    %222 = vector.multi_reduction <add>, %221, %cst_105 [1, 2] : vector<1x16x8xf32> to vector<1xf32>
    %223 = vector.shape_cast %222 : vector<1xf32> to vector<1x1x1xf32>
    %224 = vector.extract %223[0, 0, 0] : f32 from vector<1x1x1xf32>
    %cst_106 = arith.constant 7.812500e-03 : f32
    %225 = arith.mulf %224, %cst_106 : f32
    %cst_107 = arith.constant 9.99999974E-6 : f32
    %226 = arith.addf %225, %cst_107 : f32
    %227 = math.rsqrt %226 : f32
    %228 = vector.broadcast %227 : f32 to vector<16x8xf32>
    %229 = arith.mulf %219, %228 : vector<16x8xf32>
    %230 = arith.mulf %229, %4 : vector<16x8xf32>
    %231 = arith.addf %230, %5 : vector<16x8xf32>
    %cst_108 = arith.constant dense<0.000000e+00> : vector<32x8xf32>
    %232 = tpu.matmul %6, %231, %cst_108 {dimension_numbers = #tpu.dot_dimension_numbers<[1], [0], [0], [1], [0, 0, 1, 1], [], []>} : vector<32x16xf32>, vector<16x8xf32>, vector<32x8xf32> -> vector<32x8xf32>
    %cst_109 = arith.constant 3.000000e+00 : f32
    %233 = vector.broadcast %cst_109 : f32 to vector<32x8xf32>
    %234 = arith.addf %232, %233 : vector<32x8xf32>
    %cst_110 = arith.constant 0.000000e+00 : f32
    %cst_111 = arith.constant 6.000000e+00 : f32
    %235 = vector.broadcast %cst_110 : f32 to vector<32x8xf32>
    %236 = arith.maximumf %235, %234 : vector<32x8xf32>
    %237 = vector.broadcast %cst_111 : f32 to vector<32x8xf32>
    %238 = arith.minimumf %237, %236 : vector<32x8xf32>
    %239 = arith.mulf %232, %238 : vector<32x8xf32>
    %cst_112 = arith.constant 0.166666672 : f32
    %240 = vector.broadcast %cst_112 : f32 to vector<32x8xf32>
    %241 = arith.mulf %239, %240 : vector<32x8xf32>
    %cst_113 = arith.constant dense<0.000000e+00> : vector<1x8xf32>
    %242 = tpu.matmul %1, %212, %cst_113 {dimension_numbers = #tpu.dot_dimension_numbers<[1], [0], [0], [1], [0, 0, 1, 1], [], []>} : vector<1x16xf32>, vector<16x8xf32>, vector<1x8xf32> -> vector<1x8xf32>
    %cst_114 = arith.constant dense<0.000000e+00> : vector<1x8xf32>
    %243 = tpu.matmul %7, %241, %cst_114 {dimension_numbers = #tpu.dot_dimension_numbers<[1], [0], [0], [1], [0, 0, 1, 1], [], []>} : vector<1x32xf32>, vector<32x8xf32>, vector<1x8xf32> -> vector<1x8xf32>
    %244 = arith.addf %242, %243 : vector<1x8xf32>
    %245 = vector.broadcast %0 : vector<1x1xf32> to vector<1x8xf32>
    %246 = arith.addf %244, %245 : vector<1x8xf32>
    %c5_115 = arith.constant 5 : index
    %c0_116 = arith.constant 0 : index
    %247 = vector.load %arg17[%c5_115, %c0_116] : memref<8x8xf32, #tpu.memory_space<vmem>>, vector<1x8xf32>
    tpu.vector_store %arg17[%c5_115, %c0_116], %246 {strides = array<i32>} : memref<8x8xf32, #tpu.memory_space<vmem>>, vector<1x8xf32>,
    %c6 = arith.constant 6 : index
    %c0_117 = arith.constant 0 : index
    %c0_118 = arith.constant 0 : index
    %248 = vector.load %arg3[%c6, %c0_117, %c0_118] : memref<8x16x8xf32, #tpu.memory_space<vmem>>, vector<1x16x8xf32>
    %249 = vector.shape_cast %248 : vector<1x16x8xf32> to vector<16x8xf32>
    %cst_119 = arith.constant dense<0.000000e+00> : vector<16x8xf32>
    %250 = tpu.matmul %2, %249, %cst_119 {dimension_numbers = #tpu.dot_dimension_numbers<[1], [0], [0], [1], [0, 0, 1, 1], [], []>} : vector<16x16xf32>, vector<16x8xf32>, vector<16x8xf32> -> vector<16x8xf32>
    %251 = vector.broadcast %3 : vector<16x1xf32> to vector<16x8xf32>
    %252 = arith.addf %250, %251 : vector<16x8xf32>
    %253 = vector.shape_cast %252 : vector<16x8xf32> to vector<1x16x8xf32>
    %cst_120 = arith.constant dense<0.000000e+00> : vector<1xf32>
    %254 = vector.multi_reduction <add>, %253, %cst_120 [1, 2] : vector<1x16x8xf32> to vector<1xf32>
    %255 = vector.shape_cast %254 : vector<1xf32> to vector<1x1x1xf32>
    %256 = vector.extract %255[0, 0, 0] : f32 from vector<1x1x1xf32>
    %cst_121 = arith.constant 7.812500e-03 : f32
    %257 = arith.mulf %256, %cst_121 : f32
    %258 = vector.broadcast %257 : f32 to vector<16x8xf32>
    %259 = arith.subf %252, %258 : vector<16x8xf32>
    %260 = arith.mulf %259, %259 : vector<16x8xf32>
    %261 = vector.shape_cast %260 : vector<16x8xf32> to vector<1x16x8xf32>
    %cst_122 = arith.constant dense<0.000000e+00> : vector<1xf32>
    %262 = vector.multi_reduction <add>, %261, %cst_122 [1, 2] : vector<1x16x8xf32> to vector<1xf32>
    %263 = vector.shape_cast %262 : vector<1xf32> to vector<1x1x1xf32>
    %264 = vector.extract %263[0, 0, 0] : f32 from vector<1x1x1xf32>
    %cst_123 = arith.constant 7.812500e-03 : f32
    %265 = arith.mulf %264, %cst_123 : f32
    %cst_124 = arith.constant 9.99999974E-6 : f32
    %266 = arith.addf %265, %cst_124 : f32
    %267 = math.rsqrt %266 : f32
    %268 = vector.broadcast %267 : f32 to vector<16x8xf32>
    %269 = arith.mulf %259, %268 : vector<16x8xf32>
    %270 = arith.mulf %269, %4 : vector<16x8xf32>
    %271 = arith.addf %270, %5 : vector<16x8xf32>
    %cst_125 = arith.constant dense<0.000000e+00> : vector<32x8xf32>
    %272 = tpu.matmul %6, %271, %cst_125 {dimension_numbers = #tpu.dot_dimension_numbers<[1], [0], [0], [1], [0, 0, 1, 1], [], []>} : vector<32x16xf32>, vector<16x8xf32>, vector<32x8xf32> -> vector<32x8xf32>
    %cst_126 = arith.constant 3.000000e+00 : f32
    %273 = vector.broadcast %cst_126 : f32 to vector<32x8xf32>
    %274 = arith.addf %272, %273 : vector<32x8xf32>
    %cst_127 = arith.constant 0.000000e+00 : f32
    %cst_128 = arith.constant 6.000000e+00 : f32
    %275 = vector.broadcast %cst_127 : f32 to vector<32x8xf32>
    %276 = arith.maximumf %275, %274 : vector<32x8xf32>
    %277 = vector.broadcast %cst_128 : f32 to vector<32x8xf32>
    %278 = arith.minimumf %277, %276 : vector<32x8xf32>
    %279 = arith.mulf %272, %278 : vector<32x8xf32>
    %cst_129 = arith.constant 0.166666672 : f32
    %280 = vector.broadcast %cst_129 : f32 to vector<32x8xf32>
    %281 = arith.mulf %279, %280 : vector<32x8xf32>
    %cst_130 = arith.constant dense<0.000000e+00> : vector<1x8xf32>
    %282 = tpu.matmul %1, %252, %cst_130 {dimension_numbers = #tpu.dot_dimension_numbers<[1], [0], [0], [1], [0, 0, 1, 1], [], []>} : vector<1x16xf32>, vector<16x8xf32>, vector<1x8xf32> -> vector<1x8xf32>
    %cst_131 = arith.constant dense<0.000000e+00> : vector<1x8xf32>
    %283 = tpu.matmul %7, %281, %cst_131 {dimension_numbers = #tpu.dot_dimension_numbers<[1], [0], [0], [1], [0, 0, 1, 1], [], []>} : vector<1x32xf32>, vector<32x8xf32>, vector<1x8xf32> -> vector<1x8xf32>
    %284 = arith.addf %282, %283 : vector<1x8xf32>
    %285 = vector.broadcast %0 : vector<1x1xf32> to vector<1x8xf32>
    %286 = arith.addf %284, %285 : vector<1x8xf32>
    %c6_132 = arith.constant 6 : index
    %c0_133 = arith.constant 0 : index
    %287 = vector.load %arg17[%c6_132, %c0_133] : memref<8x8xf32, #tpu.memory_space<vmem>>, vector<1x8xf32>
    tpu.vector_store %arg17[%c6_132, %c0_133], %286 {strides = array<i32>} : memref<8x8xf32, #tpu.memory_space<vmem>>, vector<1x8xf32>,
    %c7 = arith.constant 7 : index
    %c0_134 = arith.constant 0 : index
    %c0_135 = arith.constant 0 : index
    %288 = vector.load %arg3[%c7, %c0_134, %c0_135] : memref<8x16x8xf32, #tpu.memory_space<vmem>>, vector<1x16x8xf32>
    %289 = vector.shape_cast %288 : vector<1x16x8xf32> to vector<16x8xf32>
    %cst_136 = arith.constant dense<0.000000e+00> : vector<16x8xf32>
    %290 = tpu.matmul %2, %289, %cst_136 {dimension_numbers = #tpu.dot_dimension_numbers<[1], [0], [0], [1], [0, 0, 1, 1], [], []>} : vector<16x16xf32>, vector<16x8xf32>, vector<16x8xf32> -> vector<16x8xf32>
    %291 = vector.broadcast %3 : vector<16x1xf32> to vector<16x8xf32>
    %292 = arith.addf %290, %291 : vector<16x8xf32>
    %293 = vector.shape_cast %292 : vector<16x8xf32> to vector<1x16x8xf32>
    %cst_137 = arith.constant dense<0.000000e+00> : vector<1xf32>
    %294 = vector.multi_reduction <add>, %293, %cst_137 [1, 2] : vector<1x16x8xf32> to vector<1xf32>
    %295 = vector.shape_cast %294 : vector<1xf32> to vector<1x1x1xf32>
    %296 = vector.extract %295[0, 0, 0] : f32 from vector<1x1x1xf32>
    %cst_138 = arith.constant 7.812500e-03 : f32
    %297 = arith.mulf %296, %cst_138 : f32
    %298 = vector.broadcast %297 : f32 to vector<16x8xf32>
    %299 = arith.subf %292, %298 : vector<16x8xf32>
    %300 = arith.mulf %299, %299 : vector<16x8xf32>
    %301 = vector.shape_cast %300 : vector<16x8xf32> to vector<1x16x8xf32>
    %cst_139 = arith.constant dense<0.000000e+00> : vector<1xf32>
    %302 = vector.multi_reduction <add>, %301, %cst_139 [1, 2] : vector<1x16x8xf32> to vector<1xf32>
    %303 = vector.shape_cast %302 : vector<1xf32> to vector<1x1x1xf32>
    %304 = vector.extract %303[0, 0, 0] : f32 from vector<1x1x1xf32>
    %cst_140 = arith.constant 7.812500e-03 : f32
    %305 = arith.mulf %304, %cst_140 : f32
    %cst_141 = arith.constant 9.99999974E-6 : f32
    %306 = arith.addf %305, %cst_141 : f32
    %307 = math.rsqrt %306 : f32
    %308 = vector.broadcast %307 : f32 to vector<16x8xf32>
    %309 = arith.mulf %299, %308 : vector<16x8xf32>
    %310 = arith.mulf %309, %4 : vector<16x8xf32>
    %311 = arith.addf %310, %5 : vector<16x8xf32>
    %cst_142 = arith.constant dense<0.000000e+00> : vector<32x8xf32>
    %312 = tpu.matmul %6, %311, %cst_142 {dimension_numbers = #tpu.dot_dimension_numbers<[1], [0], [0], [1], [0, 0, 1, 1], [], []>} : vector<32x16xf32>, vector<16x8xf32>, vector<32x8xf32> -> vector<32x8xf32>
    %cst_143 = arith.constant 3.000000e+00 : f32
    %313 = vector.broadcast %cst_143 : f32 to vector<32x8xf32>
    %314 = arith.addf %312, %313 : vector<32x8xf32>
    %cst_144 = arith.constant 0.000000e+00 : f32
    %cst_145 = arith.constant 6.000000e+00 : f32
    %315 = vector.broadcast %cst_144 : f32 to vector<32x8xf32>
    %316 = arith.maximumf %315, %314 : vector<32x8xf32>
    %317 = vector.broadcast %cst_145 : f32 to vector<32x8xf32>
    %318 = arith.minimumf %317, %316 : vector<32x8xf32>
    %319 = arith.mulf %312, %318 : vector<32x8xf32>
    %cst_146 = arith.constant 0.166666672 : f32
    %320 = vector.broadcast %cst_146 : f32 to vector<32x8xf32>
    %321 = arith.mulf %319, %320 : vector<32x8xf32>
    %cst_147 = arith.constant dense<0.000000e+00> : vector<1x8xf32>
    %322 = tpu.matmul %1, %292, %cst_147 {dimension_numbers = #tpu.dot_dimension_numbers<[1], [0], [0], [1], [0, 0, 1, 1], [], []>} : vector<1x16xf32>, vector<16x8xf32>, vector<1x8xf32> -> vector<1x8xf32>
    %cst_148 = arith.constant dense<0.000000e+00> : vector<1x8xf32>
    %323 = tpu.matmul %7, %321, %cst_148 {dimension_numbers = #tpu.dot_dimension_numbers<[1], [0], [0], [1], [0, 0, 1, 1], [], []>} : vector<1x32xf32>, vector<32x8xf32>, vector<1x8xf32> -> vector<1x8xf32>
    %324 = arith.addf %322, %323 : vector<1x8xf32>
    %325 = vector.broadcast %0 : vector<1x1xf32> to vector<1x8xf32>
    %326 = arith.addf %324, %325 : vector<1x8xf32>
    %c7_149 = arith.constant 7 : index
    %c0_150 = arith.constant 0 : index
    %327 = vector.load %arg17[%c7_149, %c0_150] : memref<8x8xf32, #tpu.memory_space<vmem>>, vector<1x8xf32>
    tpu.vector_store %arg17[%c7_149, %c0_150], %326 {strides = array<i32>} : memref<8x8xf32, #tpu.memory_space<vmem>>, vector<1x8xf32>,
    %c0_151 = arith.constant 0 : index
    %c0_152 = arith.constant 0 : index
    %328 = vector.load %arg11[%c0_151, %c0_152] : memref<16x32xf32, #tpu.memory_space<vmem>>, vector<16x32xf32>
    %c0_153 = arith.constant 0 : index
    %c0_154 = arith.constant 0 : index
    %329 = vector.load %arg12[%c0_153, %c0_154] : memref<16x1xf32, #tpu.memory_space<vmem>>, vector<16x1xf32>
    %c0_155 = arith.constant 0 : index
    %c0_156 = arith.constant 0 : index
    %330 = vector.load %arg13[%c0_155, %c0_156] : memref<16x4xf32, #tpu.memory_space<vmem>>, vector<16x4xf32>
    %c0_157 = arith.constant 0 : index
    %c0_158 = arith.constant 0 : index
    %331 = vector.load %arg14[%c0_157, %c0_158] : memref<16x4xf32, #tpu.memory_space<vmem>>, vector<16x4xf32>
    %c0_159 = arith.constant 0 : index
    %c0_160 = arith.constant 0 : index
    %332 = vector.load %arg15[%c0_159, %c0_160] : memref<32x16xf32, #tpu.memory_space<vmem>>, vector<32x16xf32>
    %c0_161 = arith.constant 0 : index
    %c0_162 = arith.constant 0 : index
    %333 = vector.load %arg16[%c0_161, %c0_162] : memref<1x32xf32, #tpu.memory_space<vmem>>, vector<1x32xf32>
    %c0_163 = arith.constant 0 : index
    %c0_164 = arith.constant 0 : index
    %c0_165 = arith.constant 0 : index
    %334 = vector.load %arg10[%c0_163, %c0_164, %c0_165] : memref<8x32x4xf32, #tpu.memory_space<vmem>>, vector<1x32x4xf32>
    %335 = vector.shape_cast %334 : vector<1x32x4xf32> to vector<32x4xf32>
    %cst_166 = arith.constant dense<0.000000e+00> : vector<16x4xf32>
    %336 = tpu.matmul %328, %335, %cst_166 {dimension_numbers = #tpu.dot_dimension_numbers<[1], [0], [0], [1], [0, 0, 1, 1], [], []>} : vector<16x32xf32>, vector<32x4xf32>, vector<16x4xf32> -> vector<16x4xf32>
    %337 = vector.broadcast %329 : vector<16x1xf32> to vector<16x4xf32>
    %338 = arith.addf %336, %337 : vector<16x4xf32>
    %339 = vector.shape_cast %338 : vector<16x4xf32> to vector<1x16x4xf32>
    %cst_167 = arith.constant dense<0.000000e+00> : vector<1xf32>
    %340 = vector.multi_reduction <add>, %339, %cst_167 [1, 2] : vector<1x16x4xf32> to vector<1xf32>
    %341 = vector.shape_cast %340 : vector<1xf32> to vector<1x1x1xf32>
    %342 = vector.extract %341[0, 0, 0] : f32 from vector<1x1x1xf32>
    %cst_168 = arith.constant 1.562500e-02 : f32
    %343 = arith.mulf %342, %cst_168 : f32
    %344 = vector.broadcast %343 : f32 to vector<16x4xf32>
    %345 = arith.subf %338, %344 : vector<16x4xf32>
    %346 = arith.mulf %345, %345 : vector<16x4xf32>
    %347 = vector.shape_cast %346 : vector<16x4xf32> to vector<1x16x4xf32>
    %cst_169 = arith.constant dense<0.000000e+00> : vector<1xf32>
    %348 = vector.multi_reduction <add>, %347, %cst_169 [1, 2] : vector<1x16x4xf32> to vector<1xf32>
    %349 = vector.shape_cast %348 : vector<1xf32> to vector<1x1x1xf32>
    %350 = vector.extract %349[0, 0, 0] : f32 from vector<1x1x1xf32>
    %cst_170 = arith.constant 1.562500e-02 : f32
    %351 = arith.mulf %350, %cst_170 : f32
    %cst_171 = arith.constant 9.99999974E-6 : f32
    %352 = arith.addf %351, %cst_171 : f32
    %353 = math.rsqrt %352 : f32
    %354 = vector.broadcast %353 : f32 to vector<16x4xf32>
    %355 = arith.mulf %345, %354 : vector<16x4xf32>
    %356 = arith.mulf %355, %330 : vector<16x4xf32>
    %357 = arith.addf %356, %331 : vector<16x4xf32>
    %cst_172 = arith.constant dense<0.000000e+00> : vector<32x4xf32>
    %358 = tpu.matmul %332, %357, %cst_172 {dimension_numbers = #tpu.dot_dimension_numbers<[1], [0], [0], [1], [0, 0, 1, 1], [], []>} : vector<32x16xf32>, vector<16x4xf32>, vector<32x4xf32> -> vector<32x4xf32>
    %cst_173 = arith.constant 3.000000e+00 : f32
    %359 = vector.broadcast %cst_173 : f32 to vector<32x4xf32>
    %360 = arith.addf %358, %359 : vector<32x4xf32>
    %cst_174 = arith.constant 0.000000e+00 : f32
    %cst_175 = arith.constant 6.000000e+00 : f32
    %361 = vector.broadcast %cst_174 : f32 to vector<32x4xf32>
    %362 = arith.maximumf %361, %360 : vector<32x4xf32>
    %363 = vector.broadcast %cst_175 : f32 to vector<32x4xf32>
    %364 = arith.minimumf %363, %362 : vector<32x4xf32>
    %365 = arith.mulf %358, %364 : vector<32x4xf32>
    %cst_176 = arith.constant 0.166666672 : f32
    %366 = vector.broadcast %cst_176 : f32 to vector<32x4xf32>
    %367 = arith.mulf %365, %366 : vector<32x4xf32>
    %cst_177 = arith.constant dense<0.000000e+00> : vector<1x4xf32>
    %368 = tpu.matmul %1, %338, %cst_177 {dimension_numbers = #tpu.dot_dimension_numbers<[1], [0], [0], [1], [0, 0, 1, 1], [], []>} : vector<1x16xf32>, vector<16x4xf32>, vector<1x4xf32> -> vector<1x4xf32>
    %cst_178 = arith.constant dense<0.000000e+00> : vector<1x4xf32>
    %369 = tpu.matmul %333, %367, %cst_178 {dimension_numbers = #tpu.dot_dimension_numbers<[1], [0], [0], [1], [0, 0, 1, 1], [], []>} : vector<1x32xf32>, vector<32x4xf32>, vector<1x4xf32> -> vector<1x4xf32>
    %370 = arith.addf %368, %369 : vector<1x4xf32>
    %371 = vector.broadcast %0 : vector<1x1xf32> to vector<1x4xf32>
    %372 = arith.addf %370, %371 : vector<1x4xf32>
    %c0_179 = arith.constant 0 : index
    %c0_180 = arith.constant 0 : index
    %373 = vector.load %arg18[%c0_179, %c0_180] : memref<8x4xf32, #tpu.memory_space<vmem>>, vector<1x4xf32>
    tpu.vector_store %arg18[%c0_179, %c0_180], %372 {strides = array<i32>} : memref<8x4xf32, #tpu.memory_space<vmem>>, vector<1x4xf32>,
    %c1_181 = arith.constant 1 : index
    %c0_182 = arith.constant 0 : index
    %c0_183 = arith.constant 0 : index
    %374 = vector.load %arg10[%c1_181, %c0_182, %c0_183] : memref<8x32x4xf32, #tpu.memory_space<vmem>>, vector<1x32x4xf32>
    %375 = vector.shape_cast %374 : vector<1x32x4xf32> to vector<32x4xf32>
    %cst_184 = arith.constant dense<0.000000e+00> : vector<16x4xf32>
    %376 = tpu.matmul %328, %375, %cst_184 {dimension_numbers = #tpu.dot_dimension_numbers<[1], [0], [0], [1], [0, 0, 1, 1], [], []>} : vector<16x32xf32>, vector<32x4xf32>, vector<16x4xf32> -> vector<16x4xf32>
    %377 = vector.broadcast %329 : vector<16x1xf32> to vector<16x4xf32>
    %378 = arith.addf %376, %377 : vector<16x4xf32>
    %379 = vector.shape_cast %378 : vector<16x4xf32> to vector<1x16x4xf32>
    %cst_185 = arith.constant dense<0.000000e+00> : vector<1xf32>
    %380 = vector.multi_reduction <add>, %379, %cst_185 [1, 2] : vector<1x16x4xf32> to vector<1xf32>
    %381 = vector.shape_cast %380 : vector<1xf32> to vector<1x1x1xf32>
    %382 = vector.extract %381[0, 0, 0] : f32 from vector<1x1x1xf32>
    %cst_186 = arith.constant 1.562500e-02 : f32
    %383 = arith.mulf %382, %cst_186 : f32
    %384 = vector.broadcast %383 : f32 to vector<16x4xf32>
    %385 = arith.subf %378, %384 : vector<16x4xf32>
    %386 = arith.mulf %385, %385 : vector<16x4xf32>
    %387 = vector.shape_cast %386 : vector<16x4xf32> to vector<1x16x4xf32>
    %cst_187 = arith.constant dense<0.000000e+00> : vector<1xf32>
    %388 = vector.multi_reduction <add>, %387, %cst_187 [1, 2] : vector<1x16x4xf32> to vector<1xf32>
    %389 = vector.shape_cast %388 : vector<1xf32> to vector<1x1x1xf32>
    %390 = vector.extract %389[0, 0, 0] : f32 from vector<1x1x1xf32>
    %cst_188 = arith.constant 1.562500e-02 : f32
    %391 = arith.mulf %390, %cst_188 : f32
    %cst_189 = arith.constant 9.99999974E-6 : f32
    %392 = arith.addf %391, %cst_189 : f32
    %393 = math.rsqrt %392 : f32
    %394 = vector.broadcast %393 : f32 to vector<16x4xf32>
    %395 = arith.mulf %385, %394 : vector<16x4xf32>
    %396 = arith.mulf %395, %330 : vector<16x4xf32>
    %397 = arith.addf %396, %331 : vector<16x4xf32>
    %cst_190 = arith.constant dense<0.000000e+00> : vector<32x4xf32>
    %398 = tpu.matmul %332, %397, %cst_190 {dimension_numbers = #tpu.dot_dimension_numbers<[1], [0], [0], [1], [0, 0, 1, 1], [], []>} : vector<32x16xf32>, vector<16x4xf32>, vector<32x4xf32> -> vector<32x4xf32>
    %cst_191 = arith.constant 3.000000e+00 : f32
    %399 = vector.broadcast %cst_191 : f32 to vector<32x4xf32>
    %400 = arith.addf %398, %399 : vector<32x4xf32>
    %cst_192 = arith.constant 0.000000e+00 : f32
    %cst_193 = arith.constant 6.000000e+00 : f32
    %401 = vector.broadcast %cst_192 : f32 to vector<32x4xf32>
    %402 = arith.maximumf %401, %400 : vector<32x4xf32>
    %403 = vector.broadcast %cst_193 : f32 to vector<32x4xf32>
    %404 = arith.minimumf %403, %402 : vector<32x4xf32>
    %405 = arith.mulf %398, %404 : vector<32x4xf32>
    %cst_194 = arith.constant 0.166666672 : f32
    %406 = vector.broadcast %cst_194 : f32 to vector<32x4xf32>
    %407 = arith.mulf %405, %406 : vector<32x4xf32>
    %cst_195 = arith.constant dense<0.000000e+00> : vector<1x4xf32>
    %408 = tpu.matmul %1, %378, %cst_195 {dimension_numbers = #tpu.dot_dimension_numbers<[1], [0], [0], [1], [0, 0, 1, 1], [], []>} : vector<1x16xf32>, vector<16x4xf32>, vector<1x4xf32> -> vector<1x4xf32>
    %cst_196 = arith.constant dense<0.000000e+00> : vector<1x4xf32>
    %409 = tpu.matmul %333, %407, %cst_196 {dimension_numbers = #tpu.dot_dimension_numbers<[1], [0], [0], [1], [0, 0, 1, 1], [], []>} : vector<1x32xf32>, vector<32x4xf32>, vector<1x4xf32> -> vector<1x4xf32>
    %410 = arith.addf %408, %409 : vector<1x4xf32>
    %411 = vector.broadcast %0 : vector<1x1xf32> to vector<1x4xf32>
    %412 = arith.addf %410, %411 : vector<1x4xf32>
    %c1_197 = arith.constant 1 : index
    %c0_198 = arith.constant 0 : index
    %413 = vector.load %arg18[%c1_197, %c0_198] : memref<8x4xf32, #tpu.memory_space<vmem>>, vector<1x4xf32>
    tpu.vector_store %arg18[%c1_197, %c0_198], %412 {strides = array<i32>} : memref<8x4xf32, #tpu.memory_space<vmem>>, vector<1x4xf32>,
    %c2_199 = arith.constant 2 : index
    %c0_200 = arith.constant 0 : index
    %c0_201 = arith.constant 0 : index
    %414 = vector.load %arg10[%c2_199, %c0_200, %c0_201] : memref<8x32x4xf32, #tpu.memory_space<vmem>>, vector<1x32x4xf32>
    %415 = vector.shape_cast %414 : vector<1x32x4xf32> to vector<32x4xf32>
    %cst_202 = arith.constant dense<0.000000e+00> : vector<16x4xf32>
    %416 = tpu.matmul %328, %415, %cst_202 {dimension_numbers = #tpu.dot_dimension_numbers<[1], [0], [0], [1], [0, 0, 1, 1], [], []>} : vector<16x32xf32>, vector<32x4xf32>, vector<16x4xf32> -> vector<16x4xf32>
    %417 = vector.broadcast %329 : vector<16x1xf32> to vector<16x4xf32>
    %418 = arith.addf %416, %417 : vector<16x4xf32>
    %419 = vector.shape_cast %418 : vector<16x4xf32> to vector<1x16x4xf32>
    %cst_203 = arith.constant dense<0.000000e+00> : vector<1xf32>
    %420 = vector.multi_reduction <add>, %419, %cst_203 [1, 2] : vector<1x16x4xf32> to vector<1xf32>
    %421 = vector.shape_cast %420 : vector<1xf32> to vector<1x1x1xf32>
    %422 = vector.extract %421[0, 0, 0] : f32 from vector<1x1x1xf32>
    %cst_204 = arith.constant 1.562500e-02 : f32
    %423 = arith.mulf %422, %cst_204 : f32
    %424 = vector.broadcast %423 : f32 to vector<16x4xf32>
    %425 = arith.subf %418, %424 : vector<16x4xf32>
    %426 = arith.mulf %425, %425 : vector<16x4xf32>
    %427 = vector.shape_cast %426 : vector<16x4xf32> to vector<1x16x4xf32>
    %cst_205 = arith.constant dense<0.000000e+00> : vector<1xf32>
    %428 = vector.multi_reduction <add>, %427, %cst_205 [1, 2] : vector<1x16x4xf32> to vector<1xf32>
    %429 = vector.shape_cast %428 : vector<1xf32> to vector<1x1x1xf32>
    %430 = vector.extract %429[0, 0, 0] : f32 from vector<1x1x1xf32>
    %cst_206 = arith.constant 1.562500e-02 : f32
    %431 = arith.mulf %430, %cst_206 : f32
    %cst_207 = arith.constant 9.99999974E-6 : f32
    %432 = arith.addf %431, %cst_207 : f32
    %433 = math.rsqrt %432 : f32
    %434 = vector.broadcast %433 : f32 to vector<16x4xf32>
    %435 = arith.mulf %425, %434 : vector<16x4xf32>
    %436 = arith.mulf %435, %330 : vector<16x4xf32>
    %437 = arith.addf %436, %331 : vector<16x4xf32>
    %cst_208 = arith.constant dense<0.000000e+00> : vector<32x4xf32>
    %438 = tpu.matmul %332, %437, %cst_208 {dimension_numbers = #tpu.dot_dimension_numbers<[1], [0], [0], [1], [0, 0, 1, 1], [], []>} : vector<32x16xf32>, vector<16x4xf32>, vector<32x4xf32> -> vector<32x4xf32>
    %cst_209 = arith.constant 3.000000e+00 : f32
    %439 = vector.broadcast %cst_209 : f32 to vector<32x4xf32>
    %440 = arith.addf %438, %439 : vector<32x4xf32>
    %cst_210 = arith.constant 0.000000e+00 : f32
    %cst_211 = arith.constant 6.000000e+00 : f32
    %441 = vector.broadcast %cst_210 : f32 to vector<32x4xf32>
    %442 = arith.maximumf %441, %440 : vector<32x4xf32>
    %443 = vector.broadcast %cst_211 : f32 to vector<32x4xf32>
    %444 = arith.minimumf %443, %442 : vector<32x4xf32>
    %445 = arith.mulf %438, %444 : vector<32x4xf32>
    %cst_212 = arith.constant 0.166666672 : f32
    %446 = vector.broadcast %cst_212 : f32 to vector<32x4xf32>
    %447 = arith.mulf %445, %446 : vector<32x4xf32>
    %cst_213 = arith.constant dense<0.000000e+00> : vector<1x4xf32>
    %448 = tpu.matmul %1, %418, %cst_213 {dimension_numbers = #tpu.dot_dimension_numbers<[1], [0], [0], [1], [0, 0, 1, 1], [], []>} : vector<1x16xf32>, vector<16x4xf32>, vector<1x4xf32> -> vector<1x4xf32>
    %cst_214 = arith.constant dense<0.000000e+00> : vector<1x4xf32>
    %449 = tpu.matmul %333, %447, %cst_214 {dimension_numbers = #tpu.dot_dimension_numbers<[1], [0], [0], [1], [0, 0, 1, 1], [], []>} : vector<1x32xf32>, vector<32x4xf32>, vector<1x4xf32> -> vector<1x4xf32>
    %450 = arith.addf %448, %449 : vector<1x4xf32>
    %451 = vector.broadcast %0 : vector<1x1xf32> to vector<1x4xf32>
    %452 = arith.addf %450, %451 : vector<1x4xf32>
    %c2_215 = arith.constant 2 : index
    %c0_216 = arith.constant 0 : index
    %453 = vector.load %arg18[%c2_215, %c0_216] : memref<8x4xf32, #tpu.memory_space<vmem>>, vector<1x4xf32>
    tpu.vector_store %arg18[%c2_215, %c0_216], %452 {strides = array<i32>} : memref<8x4xf32, #tpu.memory_space<vmem>>, vector<1x4xf32>,
    %c3_217 = arith.constant 3 : index
    %c0_218 = arith.constant 0 : index
    %c0_219 = arith.constant 0 : index
    %454 = vector.load %arg10[%c3_217, %c0_218, %c0_219] : memref<8x32x4xf32, #tpu.memory_space<vmem>>, vector<1x32x4xf32>
    %455 = vector.shape_cast %454 : vector<1x32x4xf32> to vector<32x4xf32>
    %cst_220 = arith.constant dense<0.000000e+00> : vector<16x4xf32>
    %456 = tpu.matmul %328, %455, %cst_220 {dimension_numbers = #tpu.dot_dimension_numbers<[1], [0], [0], [1], [0, 0, 1, 1], [], []>} : vector<16x32xf32>, vector<32x4xf32>, vector<16x4xf32> -> vector<16x4xf32>
    %457 = vector.broadcast %329 : vector<16x1xf32> to vector<16x4xf32>
    %458 = arith.addf %456, %457 : vector<16x4xf32>
    %459 = vector.shape_cast %458 : vector<16x4xf32> to vector<1x16x4xf32>
    %cst_221 = arith.constant dense<0.000000e+00> : vector<1xf32>
    %460 = vector.multi_reduction <add>, %459, %cst_221 [1, 2] : vector<1x16x4xf32> to vector<1xf32>
    %461 = vector.shape_cast %460 : vector<1xf32> to vector<1x1x1xf32>
    %462 = vector.extract %461[0, 0, 0] : f32 from vector<1x1x1xf32>
    %cst_222 = arith.constant 1.562500e-02 : f32
    %463 = arith.mulf %462, %cst_222 : f32
    %464 = vector.broadcast %463 : f32 to vector<16x4xf32>
    %465 = arith.subf %458, %464 : vector<16x4xf32>
    %466 = arith.mulf %465, %465 : vector<16x4xf32>
    %467 = vector.shape_cast %466 : vector<16x4xf32> to vector<1x16x4xf32>
    %cst_223 = arith.constant dense<0.000000e+00> : vector<1xf32>
    %468 = vector.multi_reduction <add>, %467, %cst_223 [1, 2] : vector<1x16x4xf32> to vector<1xf32>
    %469 = vector.shape_cast %468 : vector<1xf32> to vector<1x1x1xf32>
    %470 = vector.extract %469[0, 0, 0] : f32 from vector<1x1x1xf32>
    %cst_224 = arith.constant 1.562500e-02 : f32
    %471 = arith.mulf %470, %cst_224 : f32
    %cst_225 = arith.constant 9.99999974E-6 : f32
    %472 = arith.addf %471, %cst_225 : f32
    %473 = math.rsqrt %472 : f32
    %474 = vector.broadcast %473 : f32 to vector<16x4xf32>
    %475 = arith.mulf %465, %474 : vector<16x4xf32>
    %476 = arith.mulf %475, %330 : vector<16x4xf32>
    %477 = arith.addf %476, %331 : vector<16x4xf32>
    %cst_226 = arith.constant dense<0.000000e+00> : vector<32x4xf32>
    %478 = tpu.matmul %332, %477, %cst_226 {dimension_numbers = #tpu.dot_dimension_numbers<[1], [0], [0], [1], [0, 0, 1, 1], [], []>} : vector<32x16xf32>, vector<16x4xf32>, vector<32x4xf32> -> vector<32x4xf32>
    %cst_227 = arith.constant 3.000000e+00 : f32
    %479 = vector.broadcast %cst_227 : f32 to vector<32x4xf32>
    %480 = arith.addf %478, %479 : vector<32x4xf32>
    %cst_228 = arith.constant 0.000000e+00 : f32
    %cst_229 = arith.constant 6.000000e+00 : f32
    %481 = vector.broadcast %cst_228 : f32 to vector<32x4xf32>
    %482 = arith.maximumf %481, %480 : vector<32x4xf32>
    %483 = vector.broadcast %cst_229 : f32 to vector<32x4xf32>
    %484 = arith.minimumf %483, %482 : vector<32x4xf32>
    %485 = arith.mulf %478, %484 : vector<32x4xf32>
    %cst_230 = arith.constant 0.166666672 : f32
    %486 = vector.broadcast %cst_230 : f32 to vector<32x4xf32>
    %487 = arith.mulf %485, %486 : vector<32x4xf32>
    %cst_231 = arith.constant dense<0.000000e+00> : vector<1x4xf32>
    %488 = tpu.matmul %1, %458, %cst_231 {dimension_numbers = #tpu.dot_dimension_numbers<[1], [0], [0], [1], [0, 0, 1, 1], [], []>} : vector<1x16xf32>, vector<16x4xf32>, vector<1x4xf32> -> vector<1x4xf32>
    %cst_232 = arith.constant dense<0.000000e+00> : vector<1x4xf32>
    %489 = tpu.matmul %333, %487, %cst_232 {dimension_numbers = #tpu.dot_dimension_numbers<[1], [0], [0], [1], [0, 0, 1, 1], [], []>} : vector<1x32xf32>, vector<32x4xf32>, vector<1x4xf32> -> vector<1x4xf32>
    %490 = arith.addf %488, %489 : vector<1x4xf32>
    %491 = vector.broadcast %0 : vector<1x1xf32> to vector<1x4xf32>
    %492 = arith.addf %490, %491 : vector<1x4xf32>
    %c3_233 = arith.constant 3 : index
    %c0_234 = arith.constant 0 : index
    %493 = vector.load %arg18[%c3_233, %c0_234] : memref<8x4xf32, #tpu.memory_space<vmem>>, vector<1x4xf32>
    tpu.vector_store %arg18[%c3_233, %c0_234], %492 {strides = array<i32>} : memref<8x4xf32, #tpu.memory_space<vmem>>, vector<1x4xf32>,
    %c4_235 = arith.constant 4 : index
    %c0_236 = arith.constant 0 : index
    %c0_237 = arith.constant 0 : index
    %494 = vector.load %arg10[%c4_235, %c0_236, %c0_237] : memref<8x32x4xf32, #tpu.memory_space<vmem>>, vector<1x32x4xf32>
    %495 = vector.shape_cast %494 : vector<1x32x4xf32> to vector<32x4xf32>
    %cst_238 = arith.constant dense<0.000000e+00> : vector<16x4xf32>
    %496 = tpu.matmul %328, %495, %cst_238 {dimension_numbers = #tpu.dot_dimension_numbers<[1], [0], [0], [1], [0, 0, 1, 1], [], []>} : vector<16x32xf32>, vector<32x4xf32>, vector<16x4xf32> -> vector<16x4xf32>
    %497 = vector.broadcast %329 : vector<16x1xf32> to vector<16x4xf32>
    %498 = arith.addf %496, %497 : vector<16x4xf32>
    %499 = vector.shape_cast %498 : vector<16x4xf32> to vector<1x16x4xf32>
    %cst_239 = arith.constant dense<0.000000e+00> : vector<1xf32>
    %500 = vector.multi_reduction <add>, %499, %cst_239 [1, 2] : vector<1x16x4xf32> to vector<1xf32>
    %501 = vector.shape_cast %500 : vector<1xf32> to vector<1x1x1xf32>
    %502 = vector.extract %501[0, 0, 0] : f32 from vector<1x1x1xf32>
    %cst_240 = arith.constant 1.562500e-02 : f32
    %503 = arith.mulf %502, %cst_240 : f32
    %504 = vector.broadcast %503 : f32 to vector<16x4xf32>
    %505 = arith.subf %498, %504 : vector<16x4xf32>
    %506 = arith.mulf %505, %505 : vector<16x4xf32>
    %507 = vector.shape_cast %506 : vector<16x4xf32> to vector<1x16x4xf32>
    %cst_241 = arith.constant dense<0.000000e+00> : vector<1xf32>
    %508 = vector.multi_reduction <add>, %507, %cst_241 [1, 2] : vector<1x16x4xf32> to vector<1xf32>
    %509 = vector.shape_cast %508 : vector<1xf32> to vector<1x1x1xf32>
    %510 = vector.extract %509[0, 0, 0] : f32 from vector<1x1x1xf32>
    %cst_242 = arith.constant 1.562500e-02 : f32
    %511 = arith.mulf %510, %cst_242 : f32
    %cst_243 = arith.constant 9.99999974E-6 : f32
    %512 = arith.addf %511, %cst_243 : f32
    %513 = math.rsqrt %512 : f32
    %514 = vector.broadcast %513 : f32 to vector<16x4xf32>
    %515 = arith.mulf %505, %514 : vector<16x4xf32>
    %516 = arith.mulf %515, %330 : vector<16x4xf32>
    %517 = arith.addf %516, %331 : vector<16x4xf32>
    %cst_244 = arith.constant dense<0.000000e+00> : vector<32x4xf32>
    %518 = tpu.matmul %332, %517, %cst_244 {dimension_numbers = #tpu.dot_dimension_numbers<[1], [0], [0], [1], [0, 0, 1, 1], [], []>} : vector<32x16xf32>, vector<16x4xf32>, vector<32x4xf32> -> vector<32x4xf32>
    %cst_245 = arith.constant 3.000000e+00 : f32
    %519 = vector.broadcast %cst_245 : f32 to vector<32x4xf32>
    %520 = arith.addf %518, %519 : vector<32x4xf32>
    %cst_246 = arith.constant 0.000000e+00 : f32
    %cst_247 = arith.constant 6.000000e+00 : f32
    %521 = vector.broadcast %cst_246 : f32 to vector<32x4xf32>
    %522 = arith.maximumf %521, %520 : vector<32x4xf32>
    %523 = vector.broadcast %cst_247 : f32 to vector<32x4xf32>
    %524 = arith.minimumf %523, %522 : vector<32x4xf32>
    %525 = arith.mulf %518, %524 : vector<32x4xf32>
    %cst_248 = arith.constant 0.166666672 : f32
    %526 = vector.broadcast %cst_248 : f32 to vector<32x4xf32>
    %527 = arith.mulf %525, %526 : vector<32x4xf32>
    %cst_249 = arith.constant dense<0.000000e+00> : vector<1x4xf32>
    %528 = tpu.matmul %1, %498, %cst_249 {dimension_numbers = #tpu.dot_dimension_numbers<[1], [0], [0], [1], [0, 0, 1, 1], [], []>} : vector<1x16xf32>, vector<16x4xf32>, vector<1x4xf32> -> vector<1x4xf32>
    %cst_250 = arith.constant dense<0.000000e+00> : vector<1x4xf32>
    %529 = tpu.matmul %333, %527, %cst_250 {dimension_numbers = #tpu.dot_dimension_numbers<[1], [0], [0], [1], [0, 0, 1, 1], [], []>} : vector<1x32xf32>, vector<32x4xf32>, vector<1x4xf32> -> vector<1x4xf32>
    %530 = arith.addf %528, %529 : vector<1x4xf32>
    %531 = vector.broadcast %0 : vector<1x1xf32> to vector<1x4xf32>
    %532 = arith.addf %530, %531 : vector<1x4xf32>
    %c4_251 = arith.constant 4 : index
    %c0_252 = arith.constant 0 : index
    %533 = vector.load %arg18[%c4_251, %c0_252] : memref<8x4xf32, #tpu.memory_space<vmem>>, vector<1x4xf32>
    tpu.vector_store %arg18[%c4_251, %c0_252], %532 {strides = array<i32>} : memref<8x4xf32, #tpu.memory_space<vmem>>, vector<1x4xf32>,
    %c5_253 = arith.constant 5 : index
    %c0_254 = arith.constant 0 : index
    %c0_255 = arith.constant 0 : index
    %534 = vector.load %arg10[%c5_253, %c0_254, %c0_255] : memref<8x32x4xf32, #tpu.memory_space<vmem>>, vector<1x32x4xf32>
    %535 = vector.shape_cast %534 : vector<1x32x4xf32> to vector<32x4xf32>
    %cst_256 = arith.constant dense<0.000000e+00> : vector<16x4xf32>
    %536 = tpu.matmul %328, %535, %cst_256 {dimension_numbers = #tpu.dot_dimension_numbers<[1], [0], [0], [1], [0, 0, 1, 1], [], []>} : vector<16x32xf32>, vector<32x4xf32>, vector<16x4xf32> -> vector<16x4xf32>
    %537 = vector.broadcast %329 : vector<16x1xf32> to vector<16x4xf32>
    %538 = arith.addf %536, %537 : vector<16x4xf32>
    %539 = vector.shape_cast %538 : vector<16x4xf32> to vector<1x16x4xf32>
    %cst_257 = arith.constant dense<0.000000e+00> : vector<1xf32>
    %540 = vector.multi_reduction <add>, %539, %cst_257 [1, 2] : vector<1x16x4xf32> to vector<1xf32>
    %541 = vector.shape_cast %540 : vector<1xf32> to vector<1x1x1xf32>
    %542 = vector.extract %541[0, 0, 0] : f32 from vector<1x1x1xf32>
    %cst_258 = arith.constant 1.562500e-02 : f32
    %543 = arith.mulf %542, %cst_258 : f32
    %544 = vector.broadcast %543 : f32 to vector<16x4xf32>
    %545 = arith.subf %538, %544 : vector<16x4xf32>
    %546 = arith.mulf %545, %545 : vector<16x4xf32>
    %547 = vector.shape_cast %546 : vector<16x4xf32> to vector<1x16x4xf32>
    %cst_259 = arith.constant dense<0.000000e+00> : vector<1xf32>
    %548 = vector.multi_reduction <add>, %547, %cst_259 [1, 2] : vector<1x16x4xf32> to vector<1xf32>
    %549 = vector.shape_cast %548 : vector<1xf32> to vector<1x1x1xf32>
    %550 = vector.extract %549[0, 0, 0] : f32 from vector<1x1x1xf32>
    %cst_260 = arith.constant 1.562500e-02 : f32
    %551 = arith.mulf %550, %cst_260 : f32
    %cst_261 = arith.constant 9.99999974E-6 : f32
    %552 = arith.addf %551, %cst_261 : f32
    %553 = math.rsqrt %552 : f32
    %554 = vector.broadcast %553 : f32 to vector<16x4xf32>
    %555 = arith.mulf %545, %554 : vector<16x4xf32>
    %556 = arith.mulf %555, %330 : vector<16x4xf32>
    %557 = arith.addf %556, %331 : vector<16x4xf32>
    %cst_262 = arith.constant dense<0.000000e+00> : vector<32x4xf32>
    %558 = tpu.matmul %332, %557, %cst_262 {dimension_numbers = #tpu.dot_dimension_numbers<[1], [0], [0], [1], [0, 0, 1, 1], [], []>} : vector<32x16xf32>, vector<16x4xf32>, vector<32x4xf32> -> vector<32x4xf32>
    %cst_263 = arith.constant 3.000000e+00 : f32
    %559 = vector.broadcast %cst_263 : f32 to vector<32x4xf32>
    %560 = arith.addf %558, %559 : vector<32x4xf32>
    %cst_264 = arith.constant 0.000000e+00 : f32
    %cst_265 = arith.constant 6.000000e+00 : f32
    %561 = vector.broadcast %cst_264 : f32 to vector<32x4xf32>
    %562 = arith.maximumf %561, %560 : vector<32x4xf32>
    %563 = vector.broadcast %cst_265 : f32 to vector<32x4xf32>
    %564 = arith.minimumf %563, %562 : vector<32x4xf32>
    %565 = arith.mulf %558, %564 : vector<32x4xf32>
    %cst_266 = arith.constant 0.166666672 : f32
    %566 = vector.broadcast %cst_266 : f32 to vector<32x4xf32>
    %567 = arith.mulf %565, %566 : vector<32x4xf32>
    %cst_267 = arith.constant dense<0.000000e+00> : vector<1x4xf32>
    %568 = tpu.matmul %1, %538, %cst_267 {dimension_numbers = #tpu.dot_dimension_numbers<[1], [0], [0], [1], [0, 0, 1, 1], [], []>} : vector<1x16xf32>, vector<16x4xf32>, vector<1x4xf32> -> vector<1x4xf32>
    %cst_268 = arith.constant dense<0.000000e+00> : vector<1x4xf32>
    %569 = tpu.matmul %333, %567, %cst_268 {dimension_numbers = #tpu.dot_dimension_numbers<[1], [0], [0], [1], [0, 0, 1, 1], [], []>} : vector<1x32xf32>, vector<32x4xf32>, vector<1x4xf32> -> vector<1x4xf32>
    %570 = arith.addf %568, %569 : vector<1x4xf32>
    %571 = vector.broadcast %0 : vector<1x1xf32> to vector<1x4xf32>
    %572 = arith.addf %570, %571 : vector<1x4xf32>
    %c5_269 = arith.constant 5 : index
    %c0_270 = arith.constant 0 : index
    %573 = vector.load %arg18[%c5_269, %c0_270] : memref<8x4xf32, #tpu.memory_space<vmem>>, vector<1x4xf32>
    tpu.vector_store %arg18[%c5_269, %c0_270], %572 {strides = array<i32>} : memref<8x4xf32, #tpu.memory_space<vmem>>, vector<1x4xf32>,
    %c6_271 = arith.constant 6 : index
    %c0_272 = arith.constant 0 : index
    %c0_273 = arith.constant 0 : index
    %574 = vector.load %arg10[%c6_271, %c0_272, %c0_273] : memref<8x32x4xf32, #tpu.memory_space<vmem>>, vector<1x32x4xf32>
    %575 = vector.shape_cast %574 : vector<1x32x4xf32> to vector<32x4xf32>
    %cst_274 = arith.constant dense<0.000000e+00> : vector<16x4xf32>
    %576 = tpu.matmul %328, %575, %cst_274 {dimension_numbers = #tpu.dot_dimension_numbers<[1], [0], [0], [1], [0, 0, 1, 1], [], []>} : vector<16x32xf32>, vector<32x4xf32>, vector<16x4xf32> -> vector<16x4xf32>
    %577 = vector.broadcast %329 : vector<16x1xf32> to vector<16x4xf32>
    %578 = arith.addf %576, %577 : vector<16x4xf32>
    %579 = vector.shape_cast %578 : vector<16x4xf32> to vector<1x16x4xf32>
    %cst_275 = arith.constant dense<0.000000e+00> : vector<1xf32>
    %580 = vector.multi_reduction <add>, %579, %cst_275 [1, 2] : vector<1x16x4xf32> to vector<1xf32>
    %581 = vector.shape_cast %580 : vector<1xf32> to vector<1x1x1xf32>
    %582 = vector.extract %581[0, 0, 0] : f32 from vector<1x1x1xf32>
    %cst_276 = arith.constant 1.562500e-02 : f32
    %583 = arith.mulf %582, %cst_276 : f32
    %584 = vector.broadcast %583 : f32 to vector<16x4xf32>
    %585 = arith.subf %578, %584 : vector<16x4xf32>
    %586 = arith.mulf %585, %585 : vector<16x4xf32>
    %587 = vector.shape_cast %586 : vector<16x4xf32> to vector<1x16x4xf32>
    %cst_277 = arith.constant dense<0.000000e+00> : vector<1xf32>
    %588 = vector.multi_reduction <add>, %587, %cst_277 [1, 2] : vector<1x16x4xf32> to vector<1xf32>
    %589 = vector.shape_cast %588 : vector<1xf32> to vector<1x1x1xf32>
    %590 = vector.extract %589[0, 0, 0] : f32 from vector<1x1x1xf32>
    %cst_278 = arith.constant 1.562500e-02 : f32
    %591 = arith.mulf %590, %cst_278 : f32
    %cst_279 = arith.constant 9.99999974E-6 : f32
    %592 = arith.addf %591, %cst_279 : f32
    %593 = math.rsqrt %592 : f32
    %594 = vector.broadcast %593 : f32 to vector<16x4xf32>
    %595 = arith.mulf %585, %594 : vector<16x4xf32>
    %596 = arith.mulf %595, %330 : vector<16x4xf32>
    %597 = arith.addf %596, %331 : vector<16x4xf32>
    %cst_280 = arith.constant dense<0.000000e+00> : vector<32x4xf32>
    %598 = tpu.matmul %332, %597, %cst_280 {dimension_numbers = #tpu.dot_dimension_numbers<[1], [0], [0], [1], [0, 0, 1, 1], [], []>} : vector<32x16xf32>, vector<16x4xf32>, vector<32x4xf32> -> vector<32x4xf32>
    %cst_281 = arith.constant 3.000000e+00 : f32
    %599 = vector.broadcast %cst_281 : f32 to vector<32x4xf32>
    %600 = arith.addf %598, %599 : vector<32x4xf32>
    %cst_282 = arith.constant 0.000000e+00 : f32
    %cst_283 = arith.constant 6.000000e+00 : f32
    %601 = vector.broadcast %cst_282 : f32 to vector<32x4xf32>
    %602 = arith.maximumf %601, %600 : vector<32x4xf32>
    %603 = vector.broadcast %cst_283 : f32 to vector<32x4xf32>
    %604 = arith.minimumf %603, %602 : vector<32x4xf32>
    %605 = arith.mulf %598, %604 : vector<32x4xf32>
    %cst_284 = arith.constant 0.166666672 : f32
    %606 = vector.broadcast %cst_284 : f32 to vector<32x4xf32>
    %607 = arith.mulf %605, %606 : vector<32x4xf32>
    %cst_285 = arith.constant dense<0.000000e+00> : vector<1x4xf32>
    %608 = tpu.matmul %1, %578, %cst_285 {dimension_numbers = #tpu.dot_dimension_numbers<[1], [0], [0], [1], [0, 0, 1, 1], [], []>} : vector<1x16xf32>, vector<16x4xf32>, vector<1x4xf32> -> vector<1x4xf32>
    %cst_286 = arith.constant dense<0.000000e+00> : vector<1x4xf32>
    %609 = tpu.matmul %333, %607, %cst_286 {dimension_numbers = #tpu.dot_dimension_numbers<[1], [0], [0], [1], [0, 0, 1, 1], [], []>} : vector<1x32xf32>, vector<32x4xf32>, vector<1x4xf32> -> vector<1x4xf32>
    %610 = arith.addf %608, %609 : vector<1x4xf32>
    %611 = vector.broadcast %0 : vector<1x1xf32> to vector<1x4xf32>
    %612 = arith.addf %610, %611 : vector<1x4xf32>
    %c6_287 = arith.constant 6 : index
    %c0_288 = arith.constant 0 : index
    %613 = vector.load %arg18[%c6_287, %c0_288] : memref<8x4xf32, #tpu.memory_space<vmem>>, vector<1x4xf32>
    tpu.vector_store %arg18[%c6_287, %c0_288], %612 {strides = array<i32>} : memref<8x4xf32, #tpu.memory_space<vmem>>, vector<1x4xf32>,
    %c7_289 = arith.constant 7 : index
    %c0_290 = arith.constant 0 : index
    %c0_291 = arith.constant 0 : index
    %614 = vector.load %arg10[%c7_289, %c0_290, %c0_291] : memref<8x32x4xf32, #tpu.memory_space<vmem>>, vector<1x32x4xf32>
    %615 = vector.shape_cast %614 : vector<1x32x4xf32> to vector<32x4xf32>
    %cst_292 = arith.constant dense<0.000000e+00> : vector<16x4xf32>
    %616 = tpu.matmul %328, %615, %cst_292 {dimension_numbers = #tpu.dot_dimension_numbers<[1], [0], [0], [1], [0, 0, 1, 1], [], []>} : vector<16x32xf32>, vector<32x4xf32>, vector<16x4xf32> -> vector<16x4xf32>
    %617 = vector.broadcast %329 : vector<16x1xf32> to vector<16x4xf32>
    %618 = arith.addf %616, %617 : vector<16x4xf32>
    %619 = vector.shape_cast %618 : vector<16x4xf32> to vector<1x16x4xf32>
    %cst_293 = arith.constant dense<0.000000e+00> : vector<1xf32>
    %620 = vector.multi_reduction <add>, %619, %cst_293 [1, 2] : vector<1x16x4xf32> to vector<1xf32>
    %621 = vector.shape_cast %620 : vector<1xf32> to vector<1x1x1xf32>
    %622 = vector.extract %621[0, 0, 0] : f32 from vector<1x1x1xf32>
    %cst_294 = arith.constant 1.562500e-02 : f32
    %623 = arith.mulf %622, %cst_294 : f32
    %624 = vector.broadcast %623 : f32 to vector<16x4xf32>
    %625 = arith.subf %618, %624 : vector<16x4xf32>
    %626 = arith.mulf %625, %625 : vector<16x4xf32>
    %627 = vector.shape_cast %626 : vector<16x4xf32> to vector<1x16x4xf32>
    %cst_295 = arith.constant dense<0.000000e+00> : vector<1xf32>
    %628 = vector.multi_reduction <add>, %627, %cst_295 [1, 2] : vector<1x16x4xf32> to vector<1xf32>
    %629 = vector.shape_cast %628 : vector<1xf32> to vector<1x1x1xf32>
    %630 = vector.extract %629[0, 0, 0] : f32 from vector<1x1x1xf32>
    %cst_296 = arith.constant 1.562500e-02 : f32
    %631 = arith.mulf %630, %cst_296 : f32
    %cst_297 = arith.constant 9.99999974E-6 : f32
    %632 = arith.addf %631, %cst_297 : f32
    %633 = math.rsqrt %632 : f32
    %634 = vector.broadcast %633 : f32 to vector<16x4xf32>
    %635 = arith.mulf %625, %634 : vector<16x4xf32>
    %636 = arith.mulf %635, %330 : vector<16x4xf32>
    %637 = arith.addf %636, %331 : vector<16x4xf32>
    %cst_298 = arith.constant dense<0.000000e+00> : vector<32x4xf32>
    %638 = tpu.matmul %332, %637, %cst_298 {dimension_numbers = #tpu.dot_dimension_numbers<[1], [0], [0], [1], [0, 0, 1, 1], [], []>} : vector<32x16xf32>, vector<16x4xf32>, vector<32x4xf32> -> vector<32x4xf32>
    %cst_299 = arith.constant 3.000000e+00 : f32
    %639 = vector.broadcast %cst_299 : f32 to vector<32x4xf32>
    %640 = arith.addf %638, %639 : vector<32x4xf32>
    %cst_300 = arith.constant 0.000000e+00 : f32
    %cst_301 = arith.constant 6.000000e+00 : f32
    %641 = vector.broadcast %cst_300 : f32 to vector<32x4xf32>
    %642 = arith.maximumf %641, %640 : vector<32x4xf32>
    %643 = vector.broadcast %cst_301 : f32 to vector<32x4xf32>
    %644 = arith.minimumf %643, %642 : vector<32x4xf32>
    %645 = arith.mulf %638, %644 : vector<32x4xf32>
    %cst_302 = arith.constant 0.166666672 : f32
    %646 = vector.broadcast %cst_302 : f32 to vector<32x4xf32>
    %647 = arith.mulf %645, %646 : vector<32x4xf32>
    %cst_303 = arith.constant dense<0.000000e+00> : vector<1x4xf32>
    %648 = tpu.matmul %1, %618, %cst_303 {dimension_numbers = #tpu.dot_dimension_numbers<[1], [0], [0], [1], [0, 0, 1, 1], [], []>} : vector<1x16xf32>, vector<16x4xf32>, vector<1x4xf32> -> vector<1x4xf32>
    %cst_304 = arith.constant dense<0.000000e+00> : vector<1x4xf32>
    %649 = tpu.matmul %333, %647, %cst_304 {dimension_numbers = #tpu.dot_dimension_numbers<[1], [0], [0], [1], [0, 0, 1, 1], [], []>} : vector<1x32xf32>, vector<32x4xf32>, vector<1x4xf32> -> vector<1x4xf32>
    %650 = arith.addf %648, %649 : vector<1x4xf32>
    %651 = vector.broadcast %0 : vector<1x1xf32> to vector<1x4xf32>
    %652 = arith.addf %650, %651 : vector<1x4xf32>
    %c7_305 = arith.constant 7 : index
    %c0_306 = arith.constant 0 : index
    %653 = vector.load %arg18[%c7_305, %c0_306] : memref<8x4xf32, #tpu.memory_space<vmem>>, vector<1x4xf32>
    tpu.vector_store %arg18[%c7_305, %c0_306], %652 {strides = array<i32>} : memref<8x4xf32, #tpu.memory_space<vmem>>, vector<1x4xf32>,
    return
  }
  func.func @transform_0(%arg0: i32) -> (i32, i32) {
    %c0_i32 = arith.constant 0 : i32
    %c0_i32_0 = arith.constant 0 : i32
    %c0_i32_1 = arith.constant 0 : i32
    return %c0_i32, %c0_i32_0 : i32, i32
  }
  func.func @transform_1(%arg0: i32) -> (i32, i32) {
    %c0_i32 = arith.constant 0 : i32
    %c0_i32_0 = arith.constant 0 : i32
    %c0_i32_1 = arith.constant 0 : i32
    return %c0_i32, %c0_i32_0 : i32, i32
  }
  func.func @transform_2(%arg0: i32) -> (i32, i32, i32) {
    %c0_i32 = arith.constant 0 : i32
    %c0_i32_0 = arith.constant 0 : i32
    %c0_i32_1 = arith.constant 0 : i32
    return %arg0, %c0_i32, %c0_i32_0 : i32, i32, i32
  }
  func.func @transform_3(%arg0: i32) -> (i32, i32) {
    %c0_i32 = arith.constant 0 : i32
    %c0_i32_0 = arith.constant 0 : i32
    %c0_i32_1 = arith.constant 0 : i32
    return %c0_i32, %c0_i32_0 : i32, i32
  }
  func.func @transform_4(%arg0: i32) -> (i32, i32) {
    %c0_i32 = arith.constant 0 : i32
    %c0_i32_0 = arith.constant 0 : i32
    %c0_i32_1 = arith.constant 0 : i32
    return %c0_i32, %c0_i32_0 : i32, i32
  }
  func.func @transform_5(%arg0: i32) -> (i32, i32) {
    %c0_i32 = arith.constant 0 : i32
    %c0_i32_0 = arith.constant 0 : i32
    %c0_i32_1 = arith.constant 0 : i32
    return %c0_i32, %c0_i32_0 : i32, i32
  }
  func.func @transform_6(%arg0: i32) -> (i32, i32) {
    %c0_i32 = arith.constant 0 : i32
    %c0_i32_0 = arith.constant 0 : i32
    %c0_i32_1 = arith.constant 0 : i32
    return %c0_i32, %c0_i32_0 : i32, i32
  }
  func.func @transform_7(%arg0: i32) -> (i32, i32) {
    %c0_i32 = arith.constant 0 : i32
    %c0_i32_0 = arith.constant 0 : i32
    %c0_i32_1 = arith.constant 0 : i32
    return %c0_i32, %c0_i32_0 : i32, i32
  }
  func.func @transform_8(%arg0: i32) -> (i32, i32) {
    %c0_i32 = arith.constant 0 : i32
    %c0_i32_0 = arith.constant 0 : i32
    %c0_i32_1 = arith.constant 0 : i32
    return %c0_i32, %c0_i32_0 : i32, i32
  }
  func.func @transform_9(%arg0: i32) -> (i32, i32, i32) {
    %c0_i32 = arith.constant 0 : i32
    %c0_i32_0 = arith.constant 0 : i32
    %c0_i32_1 = arith.constant 0 : i32
    return %arg0, %c0_i32, %c0_i32_0 : i32, i32, i32
  }
  func.func @transform_10(%arg0: i32) -> (i32, i32) {
    %c0_i32 = arith.constant 0 : i32
    %c0_i32_0 = arith.constant 0 : i32
    %c0_i32_1 = arith.constant 0 : i32
    return %c0_i32, %c0_i32_0 : i32, i32
  }
  func.func @transform_11(%arg0: i32) -> (i32, i32) {
    %c0_i32 = arith.constant 0 : i32
    %c0_i32_0 = arith.constant 0 : i32
    %c0_i32_1 = arith.constant 0 : i32
    return %c0_i32, %c0_i32_0 : i32, i32
  }
  func.func @transform_12(%arg0: i32) -> (i32, i32) {
    %c0_i32 = arith.constant 0 : i32
    %c0_i32_0 = arith.constant 0 : i32
    %c0_i32_1 = arith.constant 0 : i32
    return %c0_i32, %c0_i32_0 : i32, i32
  }
  func.func @transform_13(%arg0: i32) -> (i32, i32) {
    %c0_i32 = arith.constant 0 : i32
    %c0_i32_0 = arith.constant 0 : i32
    %c0_i32_1 = arith.constant 0 : i32
    return %c0_i32, %c0_i32_0 : i32, i32
  }
  func.func @transform_14(%arg0: i32) -> (i32, i32) {
    %c0_i32 = arith.constant 0 : i32
    %c0_i32_0 = arith.constant 0 : i32
    %c0_i32_1 = arith.constant 0 : i32
    return %c0_i32, %c0_i32_0 : i32, i32
  }
  func.func @transform_15(%arg0: i32) -> (i32, i32) {
    %c0_i32 = arith.constant 0 : i32
    %c0_i32_0 = arith.constant 0 : i32
    %c0_i32_1 = arith.constant 0 : i32
    return %c0_i32, %c0_i32_0 : i32, i32
  }
  func.func @transform_16(%arg0: i32) -> (i32, i32) {
    %c0_i32 = arith.constant 0 : i32
    %c0_i32_0 = arith.constant 0 : i32
    return %arg0, %c0_i32 : i32, i32
  }
  func.func @transform_17(%arg0: i32) -> (i32, i32) {
    %c0_i32 = arith.constant 0 : i32
    %c0_i32_0 = arith.constant 0 : i32
    return %arg0, %c0_i32 : i32, i32
  }
}

</mosaic_0001>

<bundles_post_ra>
// kernel: forward.3
= control target key start
LH: loop header
LB: loop body
LE: loop exit
PB: predicated region body
PF: predicated region fallthrough
CT: control target
= control target key end

     0   :  { %vm33_vm0 = vcmask 97280   ;;  %v516_v24 = vmov 0.0|0.0   ;;  %vm517_vm1 = vmmov 0   ;;  %v518_v28 = vmov 0.0   ;;  %s648_s0 = inlined_call_operand.vmem [shape: f32[16,12], index: 0, kind: input, shape index: {}]   ;;  %s649_s1 = inlined_call_operand.vmem [shape: f32[16,12], index: 1, kind: input, shape index: {}]   ;;  %s650_s2 = inlined_call_operand.vmem [shape: f32[16,12], index: 2, kind: input, shape index: {}]   ;;  %s651_s3 = inlined_call_operand.vmem [shape: f32[4,16], index: 3, kind: input, shape index: {}]   ;;  %s652_s4 = inlined_call_operand.vmem [shape: f32[16,4], index: 4, kind: input, shape index: {}]   ;;  %s653_s6 = inlined_call_operand.vmem [shape: f32[12,1], index: 6, kind: input, shape index: {}]   ;;  %s654_s5 = inlined_call_operand.vmem [shape: f32[12,1], index: 5, kind: input, shape index: {}]   ;;  %s655_s7 = inlined_call_operand.<no memory space> [shape: f32[1,1], index: 7, kind: input, shape index: {}]   ;;  %s656_s8 = inlined_call_operand.vmem [shape: f32[16,1], index: 8, kind: output, shape index: {}]  }
   0x1   :  { %v568_v0 = vld [vmem:[%s648_s0] sm:$0xff]  ;;  %v573_v1 = vld [vmem:[%s648_s0 + $0x8] sm:$0xff]  ;;  %487 = vmatprep.subr.bf16.mxu0 %v516_v24  ;;  %465 = vmatprep.mubr.msk.f32.mxu0 %vm517_vm1, %v518_v28  ;;  %vm81_vm2 = vcmask 130048   ;;  %vm162_vm3 = vcmask 31744   ;;  %vm169_vm4 = vcmask 1043456   ;;  %vm519_vm5 = vmmov 1  }
   0x2   :  { %v34_v2 = vsel %vm33_vm0, %v568_v0, 0.0  ;;  %v35_v3 = vsel %vm33_vm0, %v573_v1, 0.0  ;;  %v72_v32 = vld [vmem:[%s649_s1] sm:$0xff]  ;;  %v73_v33 = vld [vmem:[%s649_s1 + $0x8] sm:$0xff]  ;;  %vm609_vm6 = vmpackc.low %vm169_vm4, %vm519_vm5  ;;  %v13_v60 = vstv %s655_s7  ;;  %vm429_vm7 = vcmask 7168  }
   0x3   :  { %v36_v4 = vadd.f32 %v35_v3, %v34_v2  ;;  %v76_v36 = vld [vmem:[%s650_s2] sm:$0xff]  ;;  %v77_v37 = vld [vmem:[%s650_s2 + $0x8] sm:$0xff]  ;;  %14 = vst [vmem:[#allocation2] sm:$0x1] %v13_v60 }
   0x4   :  { %v80_v43 = vld [vmem:[%s651_s3] sm:$0xf]  ;;  %v251_v46 = vld [vmem:[%s653_s6 + $0x8] sm:$0xf] }
   0x5   :  { %37 = vadd.xlane.f32.xlu0 %v36_v4  ;;  %v160_v44 = vld [vmem:[%s652_s4] sm:$0xff]  ;;  %v161_v56 = vld [vmem:[%s652_s4 + $0x8] sm:$0xff] }
   0x6   :  { %v250_v45 = vld [vmem:[%s653_s6] sm:$0xff]  ;;  %v249_v58 = vld [vmem:[%s654_s5 + $0x8] sm:$0xf] }
   0x7   :  { %v490_v48 = vpack.c.bf16 %v251_v46, %v250_v45  ;;  %v248_v57 = vld [vmem:[%s654_s5] sm:$0xff] }
   0x8   :  { %v496_v59 = vpack.c.bf16 %v249_v58, %v248_v57 }
   0x9   :  { %492 = vmatprep.subr.msk.bf16.mxu1 %vm609_vm6, %v490_v48 }
   0xa   :  { %495 = vmatpush3.bf16.msk.msra.mxu1 %vm609_vm6, %v490_v48  ;;  %v446_v63 = vld [vmem:[#allocation2] ss:$0 sm:$0xff] }
   0xb   :  { %498 = vmatprep.subr.msk.bf16.mxu1 %vm609_vm6, %v496_v59 }
  0x92   :  { %v38_v5 = vpop.xlane.xlu0 %37 }
  0x93   :  { %v39_v6 = vrot.slane %v38_v5, 4 }
  0x95   :  { %v40_v7 = vadd.f32 %v39_v6, %v38_v5 }
  0x97   :  { %v41_v8 = vrot.slane %v40_v7, 2 }
  0x99   :  { %v42_v9 = vadd.f32 %v41_v8, %v40_v7 }
  0x9b   :  { %v43_v10 = vrot.slane %v42_v9, 1 }
  0x9d   :  { %v44_v11 = vadd.f32 %v43_v10, %v42_v9 }
  0x9f   :  { %504 = vpush %v44_v11 }
  0xd0   :  { %s505_s9 = spop %504 }
  0xd1   :  { %s46_s10 = smul.f32 0.0052083335, %s505_s9 }
  0xd3   :  { %v47_v12 = vstv %s46_s10 }
  0xd4   :  { %v48_v13 = vsub.f32 %v568_v0, %v47_v12  ;;  %v49_v14 = vsub.f32 %v573_v1, %v47_v12 }
  0xd6   :  { %v50_v15 = vmul.f32 %v48_v13, %v48_v13  ;;  %v51_v16 = vmul.f32 %v49_v14, %v49_v14 }
  0xd8   :  { %v52_v17 = vsel %vm33_vm0, %v50_v15, 0.0  ;;  %v53_v18 = vsel %vm33_vm0, %v51_v16, 0.0 }
  0xd9   :  { %v54_v19 = vadd.f32 %v53_v18, %v52_v17 }
  0xdb   :  { %55 = vadd.xlane.f32.xlu0 %v54_v19 }
 0x168   :  { %v56_v20 = vpop.xlane.xlu0 %55 }
 0x169   :  { %v57_v21 = vrot.slane %v56_v20, 4 }
 0x16b   :  { %v58_v22 = vadd.f32 %v57_v21, %v56_v20 }
 0x16d   :  { %v59_v23 = vrot.slane %v58_v22, 2 }
 0x16f   :  { %v60_v25 = vadd.f32 %v59_v23, %v58_v22 }
 0x171   :  { %v61_v26 = vrot.slane %v60_v25, 1 }
 0x173   :  { %v62_v27 = vadd.f32 %v61_v26, %v60_v25 }
 0x175   :  { %506 = vpush %v62_v27 }
 0x1a6   :  { %s507_s0 = spop %506 }
 0x1a7   :  { %s64_s11 = smul.f32 0.0052083335, %s507_s0 }
 0x1a9   :  { %s65_s12 = sadd.f32 1e-05, %s64_s11 }
 0x1ab   :  { %v66_v29 = vstv %s65_s12 }
 0x1ac   :  { %514 = vrsqrt.f32 %v66_v29 }
 0x1b6   :  { %v515_v30 = vpop.eup %514 }
 0x1b7   :  { %508 = vpush %v515_v30 }
 0x1e8   :  { %s509_s13 = spop %508 }
 0x1e9   :  { %v69_v31 = vstv %s509_s13 }
 0x1ea   :  { %v70_v34 = vmul.f32 %v69_v31, %v48_v13  ;;  %v71_v35 = vmul.f32 %v69_v31, %v49_v14 }
 0x1ec   :  { %v74_v38 = vmul.f32 %v72_v32, %v70_v34  ;;  %v75_v39 = vmul.f32 %v73_v33, %v71_v35 }
 0x1ee   :  { %v78_v40 = vadd.f32 %v76_v36, %v74_v38  ;;  %v79_v41 = vadd.f32 %v77_v37, %v75_v39 }
 0x1f0   :  { %v488_v42 = vpack.c.bf16 %v79_v41, %v78_v40 }
 0x1f2   :  { %489 = vmatpush3.bf16.msra.mxu0 %v488_v42 }
 0x1f5   :  { %466 = vmatmul.mubr.msk.f32.vlgmr.msra.gmra.mrb[0].mxu0 %vm81_vm2, %v80_v43 }
 0x1f6   :  { %470 = vmatprep.mubr.msk.f32.mxu0 %vm162_vm3, %v160_v44 }
 0x2c8   :  { %v151_v49 = vpop.f32.mrb[0].mxu0 }
 0x2c9   :  { %v155_v50 = vadd.f32 3.0, %v151_v49  ;;  %v467_v51 = vpop.f32.mrb[1].mxu0 }
 0x2cb   :  { %v156_v52 = vmax.f32 %v155_v50, 0.0 }
 0x2cd   :  { %v157_v53 = vmin.f32 %v156_v52, 6.0 }
 0x2cf   :  { %v158_v54 = vmul.f32 %v157_v53, %v151_v49 }
 0x2d1   :  { %v159_v55 = vmul.f32 0.16666667, %v158_v54 }
 0x2d3   :  { %468 = vmatprep.subr.msk.mxu0 %vm169_vm4, %v159_v55 }
 0x2d4   :  { %469 = vmatpush3.msk.msra.mxu0 %vm169_vm4, %v159_v55 }
 0x2d5   :  { %471 = vmatmul.mubr.msk.f32.vlgmr.msra.gmra.mrb[2].mxu0 %vm162_vm3, %v161_v56 }
 0x3a8   :  { %v472_v61 = vpop.f32.mrb[2].mxu0 }
 0x3a9   :  { %v239_v62 = vpop.f32.mrb[3].mxu0 }
 0x3aa   :  { %477 = vmatprep.mubr.msk.f32.mxu1 %vm33_vm0, %v239_v62 }
 0x3ab   :  { %478 = vmatmul.mubr.msk.f32.vlgmr.msra.gmra.mrb[0].mxu1 %vm33_vm0, %v472_v61 }
 0x3ac   :  { %501 = vmatpush3.bf16.msk.msra.mxu1 %vm609_vm6, %v496_v59  ;;  %484 = vmatprep.mubr.msk.f32.mxu1 %vm33_vm0, %v568_v0 }
 0x3b3   :  { %485 = vmatmul.mubr.msk.f32.vlgmr.msra.gmra.mrb[0].mxu1 %vm33_vm0, %v573_v1 }
 0x486   :  { %v486_v2 = vpop.f32.mrb[0].mxu1 }
 0x487   :  { %v428_v3 = vadd.f32 %v486_v2, %v446_v63  ;;  %v411_v4 = vpop.f32.mrb[1].mxu1 }
 0x488   :  { %v427_v5 = vadd.f32 %v446_v63, %v411_v4 }
 0x489   :  { %431 = vst.msk [vmem:[%s656_s8 + $0x8] sm:$0xff] %vm429_vm7, %v428_v3 }
 0x48a   :  { %430 = vst.msk [vmem:[%s656_s8] sm:$0xff] %vm429_vm7, %v427_v5 }

// kernel: forward.2
= control target key start
LH: loop header
LB: loop body
LE: loop exit
PB: predicated region body
PF: predicated region fallthrough
CT: control target
= control target key end

     0   :  { %s8338_s27 = smov 0   ;;  %s9461_s0 = inlined_call_operand.<no memory space> [shape: f32[1,1], index: 0, kind: input, shape index: {}]   ;;  %s9462_s1 = inlined_call_operand.vmem [shape: f32[1,16], index: 1, kind: input, shape index: {}]   ;;  %s9463_s2 = inlined_call_operand.vmem [shape: f32[16,16,8], index: 2, kind: input, shape index: {}]   ;;  %s9464_s3 = inlined_call_operand.vmem [shape: f32[16,16], index: 3, kind: input, shape index: {}]   ;;  %s9465_s4 = inlined_call_operand.vmem [shape: f32[16,1], index: 4, kind: input, shape index: {}]   ;;  %s9466_s5 = inlined_call_operand.vmem [shape: f32[16,8], index: 5, kind: input, shape index: {}]   ;;  %s9467_s6 = inlined_call_operand.vmem [shape: f32[16,8], index: 6, kind: input, shape index: {}]   ;;  %s9468_s7 = inlined_call_operand.vmem [shape: f32[32,16], index: 7, kind: input, shape index: {}]   ;;  %s9469_s8 = inlined_call_operand.vmem [shape: f32[1,32], index: 8, kind: input, shape index: {}]   ;;  %s9470_s9 = inlined_call_operand.vmem [shape: f32[16,32,4], index: 9, kind: input, shape index: {}]   ;;  %s9471_s10 = inlined_call_operand.vmem [shape: f32[16,32], index: 10, kind: input, shape index: {}]   ;;  %s9472_s11 = inlined_call_operand.vmem [shape: f32[16,1], index: 11, kind: input, shape index: {}]   ;;  %s9473_s12 = inlined_call_operand.vmem [shape: f32[16,4], index: 12, kind: input, shape index: {}]   ;;  %s9474_s13 = inlined_call_operand.vmem [shape: f32[16,4], index: 13, kind: input, shape index: {}]   ;;  %s9475_s14 = inlined_call_operand.vmem [shape: f32[32,16], index: 14, kind: input, shape index: {}]   ;;  %s9476_s15 = inlined_call_operand.vmem [shape: f32[1,32], index: 15, kind: input, shape index: {}]   ;;  %s9477_s16 = inlined_call_operand.vmem [shape: f32[16,8], index: 16, kind: output, shape index: {0}]   ;;  %s9478_s17 = inlined_call_operand.vmem [shape: f32[16,4], index: 17, kind: output, shape index: {1}]  }
   0x1   :  { %9480 = sst [smem:[#allocation3_spill]] %s9461_s0 }
   0x2   :  { %9481 = sst [smem:[#allocation4_spill]] %s9462_s1  ;;  %s9482_s26 = sld [smem:[#allocation3_spill]] }
   0x8   :  { %v23_v0 = vstv %s9482_s26 }
   0x9   :  { %24 = vst [vmem:[#allocation2] sm:$0x1] %v23_v0 }
   0xa LB: > { %s8344_s28 = sadd.s32 4294967295, %s8239_s27   ;;  %p6684_p0 = scmp.ge.s32.totalorder %s8239_s27, 1  ;;  %s8239_s27 = sphi %s8338_s27, %s30_s27  }
   0xb   : > { %p506_p1 = scmp.lt.s32.totalorder %s8239_s27, 3 }
   0xd   : > { %p507_p2 = pnand %p6684_p0, %p506_p1 }
   0xe   : > { %s6685_s29 = sshll.u32 (!%p507_p2), %s8344_s28, 3  ;;  %v8352_v1 = vld [vmem:[%s9464_s3] sm:$0xff] (!%p507_p2)  ;;  %vm617_vm0 = vcmask (!%p507_p2), 130048   ;;  %v8241_v3 = vmov (!%p507_p2), 0   ;;  %v595_v4 = vld [vmem:[%s9465_s4 + $0x8] sm:$0xff] (!%p507_p2)  ;;  %vm699_vm1 = vcmask (!%p507_p2), 64512  }
   0xf   : > { %510 = sbr.rel (%p507_p2) target bundleno = 10775 (0x2a17), region = 84  ;;  %v594_v2 = vld [vmem:[%s9465_s4] sm:$0xff] (!%p507_p2)  ;;  %p569_p3 = scmp.lt.s32.totalorder (!%p507_p2), %s6685_s29, 15  ;;  %7175 = vmatprep.mubr.msk.f32.mxu0 (!%p507_p2), %vm617_vm0, %v8352_v1  ;;  %8175 = vset.pattern.permute.xlu0 (!%p507_p2), %v8241_v3  ;;  %v8375_v8 = vld [vmem:[%s9464_s3 + $0x8] sm:$0xff] (!%p507_p2)  ;;  %v8242_v41 = vmov (!%p507_p2), 0.0|0.0   ;;  %v8438_v57 = vld [vmem:[%s9468_s7 + $0x10] sm:$0xff] (!%p507_p2) }
  0x10   : > { %609 = vperm.xlu0 (!%p507_p2), %8175, %v594_v2   ;;  %8176 = vset.pattern.permute.xlu1 (!%p507_p2), %v8241_v3  ;;  %v8400_v40 = vld [vmem:[%s9468_s7] sm:$0xff] (!%p507_p2)  ;;  %v8413_v45 = vld [vmem:[%s9466_s5 + $0x8] sm:$0xff] (!%p507_p2)  ;;  %v8449_v59 = vld [vmem:[%s9468_s7 + $0x18] sm:$0xff] (!%p507_p2)  ;;  %vm8243_vm2 = vmmov (!%p507_p2), 0   ;;  %v8244_v60 = vmov (!%p507_p2), 0.0   ;;  %s9483_s18 = sld [smem:[#allocation4_spill]] (!%p507_p2) }
  0x11   : > { %7182 = vmatprep.mubr.msk.f32.mxu1 (!%p507_p2), %vm617_vm0, %v8400_v40  ;;  %v8408_v44 = vld [vmem:[%s9466_s5] sm:$0xff] (!%p507_p2)  ;;  %v8423_v50 = vld [vmem:[%s9467_s6 + $0x8] sm:$0xff] (!%p507_p2)  ;;  %vm859_vm3 = vcmask (!%p507_p2), 261120   ;;  %vm3695_vm4 = vcmask (!%p507_p2), 31744   ;;  %p582_p4 = scmp.lt.s32.totalorder (!%p507_p2), %s8344_s28, 1  ;;  %vm1016_vm5 = vcmask (!%p507_p2), 57344  }
  0x12   : > { %v8418_v49 = vld [vmem:[%s9467_s6] sm:$0xff] (!%p507_p2)  ;;  %v8432_v56 = vld [vmem:[%s9468_s7 + $0x8] sm:$0xff] (!%p507_p2)  ;;  %vm3999_vm6 = vcmask (!%p507_p2), 24576  }
  0x14   : > { %614 = vperm.xlu0 (!%p507_p2), %8175, %v595_v4  }
  0x16   : > { %s9485_s29 = smov (!%p569_p3, %s6685_s29), 15  ;;  %v8460_v61 = vld [vmem:[%s9483_s18] sm:$0x1]  ;;  %s9487_s28 = smov (!%p582_p4, %s8344_s28), 1 }
  0x17   : > { %s6865_s21 = sshll.u32 %s9485_s29, 4 }
  0x18   : > { %s8368_s24 = scalar_lea.vmem %s9463_s2, %s6865_s21 }
  0x19   : > { %v605_v5 = vld [vmem:[%s8368_s24] sm:$0xff]  ;;  %v606_v6 = vld [vmem:[%s8368_s24 + $0x8] sm:$0xff] }
  0x1a   : > { %v7763_v7 = vpack.c.bf16 %v606_v6, %v605_v5 }
  0x1c   : > { %7764 = vmatprep.subr.bf16.mxu0 %v7763_v7 }
  0x1d   : > { %7766 = vmatpush3.bf16.msra.mxu0 %v7763_v7 }
  0x1e   : > { %7771 = vmatprep.subr.bf16.mxu0 %v8242_v41 }
  0x20   : > { %7176 = vmatmul.mubr.msk.f32.vlgmr.msra.gmra.mrb[0].mxu0 %vm617_vm0, %v8375_v8 }
  0x21   : > { %7196 = vmatprep.mubr.msk.f32.mxu0 %vm8243_vm2, %v8244_v60 }
  0x8f   : > { %v8379_v9 = vpop.permute.xlu0 %609 }
  0x93   : > { %v8381_v10 = vpop.permute.xlu0 %614 }
  0xf3   : > { %v7177_v11 = vpop.f32.mrb[0].mxu0 }
  0xf4   : > { %v8384_v12 = vadd.f32 %v7177_v11, %v8381_v10  ;;  %v690_v13 = vpop.f32.mrb[1].mxu0 }
  0xf5   : > { %v8387_v14 = vadd.f32 %v690_v13, %v8379_v9 }
  0xf6   : > { %v701_v15 = vsel %vm699_vm1, %v8384_v12, 0.0 }
  0xf7   : > { %v700_v16 = vsel %vm699_vm1, %v8387_v14, 0.0  ;;  %v7778_v58 = vpack.c.bf16 %v8384_v12, %v8387_v14 }
  0xf8   : > { %v702_v17 = vadd.f32 %v701_v15, %v700_v16 }
  0xfa   : > { %703 = vadd.xlane.f32.xlu1 %v702_v17 }
 0x187   : > { %v704_v18 = vpop.xlane.xlu1 %703 }
 0x188   : > { %v705_v19 = vrot.slane %v704_v18, 4 }
 0x18a   : > { %v706_v20 = vadd.f32 %v705_v19, %v704_v18 }
 0x18c   : > { %v707_v21 = vrot.slane %v706_v20, 2 }
 0x18e   : > { %v708_v22 = vadd.f32 %v707_v21, %v706_v20 }
 0x190   : > { %v709_v23 = vrot.slane %v708_v22, 1 }
 0x192   : > { %v710_v24 = vadd.f32 %v709_v23, %v708_v22 }
 0x194   : > { %8067 = vpush %v710_v24 }
 0x1c5   : > { %s8068_s0 = spop %8067 }
 0x1c6   : > { %s712_s30 = smul.f32 0.0078125, %s8068_s0 }
 0x1c8   : > { %v713_v25 = vstv %s712_s30 }
 0x1c9   : > { %v714_v26 = vsub.f32 %v8387_v14, %v713_v25  ;;  %v715_v27 = vsub.f32 %v8384_v12, %v713_v25  ;;  %v6701_v25 = vld [vmem:[%s8368_s24 + $0x10] sm:$0xff] }
 0x1cb   : > { %v716_v28 = vmul.f32 %v714_v26, %v714_v26  ;;  %v717_v29 = vmul.f32 %v715_v27, %v715_v27 }
 0x1cd   : > { %v718_v30 = vsel %vm699_vm1, %v716_v28, 0.0  ;;  %v719_v31 = vsel %vm699_vm1, %v717_v29, 0.0 }
 0x1ce   : > { %v720_v32 = vadd.f32 %v719_v31, %v718_v30  ;;  %v8472_v31 = vld [vmem:[%s9469_s8] sm:$0x1] }
 0x1d0   : > { %721 = vadd.xlane.f32.xlu1 %v720_v32 }
 0x25d   : > { %v722_v33 = vpop.xlane.xlu1 %721 }
 0x25e   : > { %v723_v34 = vrot.slane %v722_v33, 4 }
 0x260   : > { %v724_v35 = vadd.f32 %v723_v34, %v722_v33 }
 0x262   : > { %v725_v36 = vrot.slane %v724_v35, 2 }
 0x264   : > { %v726_v37 = vadd.f32 %v725_v36, %v724_v35 }
 0x266   : > { %v727_v38 = vrot.slane %v726_v37, 1 }
 0x268   : > { %v728_v39 = vadd.f32 %v727_v38, %v726_v37 }
 0x26a   : > { %8069 = vpush %v728_v39 }
 0x29b   : > { %s8070_s1 = spop %8069 }
 0x29c   : > { %s730_s20 = smul.f32 0.0078125, %s8070_s1 }
 0x29e   : > { %s731_s21 = sadd.f32 1e-05, %s730_s20 }
 0x2a0   : > { %v732_v42 = vstv %s731_s21 }
 0x2a1   : > { %8177 = vrsqrt.f32 %v732_v42 }
 0x2ab   : > { %v8178_v43 = vpop.eup %8177 }
 0x2ac   : > { %8071 = vpush %v8178_v43 }
 0x2dd   : > { %s8072_s22 = spop %8071 }
 0x2de   : > { %v735_v46 = vstv %s8072_s22 }
 0x2df   : > { %v736_v47 = vmul.f32 %v735_v46, %v714_v26  ;;  %v737_v48 = vmul.f32 %v735_v46, %v715_v27  ;;  %v6702_v26 = vld [vmem:[%s8368_s24 + $0x18] sm:$0xff] }
 0x2e0   : > { %v7780_v29 = vpack.c.bf16 %v6702_v26, %v6701_v25 }
 0x2e1   : > { %v738_v51 = vmul.f32 %v736_v47, %v8408_v44  ;;  %v739_v52 = vmul.f32 %v737_v48, %v8413_v45 }
 0x2e3   : > { %v740_v53 = vadd.f32 %v738_v51, %v8418_v49  ;;  %v741_v54 = vadd.f32 %v739_v52, %v8423_v50 }
 0x2e5   : > { %v7767_v55 = vpack.c.bf16 %v741_v54, %v740_v53 }
 0x2e7   : > { %7768 = vmatprep.subr.bf16.mxu1 %v7767_v55 }
 0x2e8   : > { %7770 = vmatpush3.bf16.msra.mxu1 %v7767_v55 }
 0x2e9   : > { %7777 = vmatprep.subr.bf16.mxu1 %v8242_v41 }
 0x2eb   : > { %7183 = vmatmul.mubr.msk.f32.vlgmr.msra.gmra.mrb[0].mxu1 %vm617_vm0, %v8432_v56 }
 0x2ec   : > { %7779 = vmatpush3.bf16.msra.mxu1 %v7778_v58  ;;  %7185 = vmatprep.mubr.msk.f32.mxu1 %vm617_vm0, %v8438_v57 }
 0x2ef   : > { %7186 = vmatmul.mubr.msk.f32.gmra.mrb[2].mxu1 %vm617_vm0, %v8449_v59 }
 0x2f0   : > { %7203 = vmatprep.mubr.msk.f32.mxu1 %vm8243_vm2, %v8244_v60 }
 0x2f3   : > { %7204 = vmatmul.mubr.msk.f32.vlgmr.msra.gmra.mrb[4].mxu1 %vm617_vm0, %v8460_v61 }
 0x2f4   : > { %7217 = vmatprep.mubr.msk.f32.mxu1 %vm617_vm0, %v8400_v40 }
 0x3be   : > { %v7184_v62 = vpop.f32.mrb[0].mxu1 }
 0x3bf   : > { %v840_v63 = vadd.f32 3.0, %v7184_v62  ;;  %v820_v0 = vpop.f32.mrb[1].mxu1 }
 0x3c0   : > { %v839_v2 = vadd.f32 3.0, %v820_v0 }
 0x3c1   : > { %v844_v3 = vmax.f32 %v840_v63, 0.0 }
 0x3c2   : > { %v843_v4 = vmax.f32 %v839_v2, 0.0  ;;  %v7187_v5 = vpop.f32.mrb[2].mxu1 }
 0x3c3   : > { %v848_v6 = vmin.f32 %v844_v3, 6.0  ;;  %v842_v7 = vadd.f32 3.0, %v7187_v5  ;;  %v830_v11 = vpop.f32.mrb[3].mxu1 }
 0x3c4   : > { %v847_v12 = vmin.f32 %v843_v4, 6.0  ;;  %v841_v13 = vadd.f32 3.0, %v830_v11 }
 0x3c5   : > { %v852_v14 = vmul.f32 %v7184_v62, %v848_v6  ;;  %v846_v15 = vmax.f32 %v842_v7, 0.0 }
 0x3c6   : > { %v851_v16 = vmul.f32 %v847_v12, %v820_v0  ;;  %v845_v17 = vmax.f32 %v841_v13, 0.0  ;;  %v1002_v32 = vpop.f32.mrb[4].mxu1 }
 0x3c7   : > { %v856_v18 = vmul.f32 0.16666667, %v852_v14  ;;  %v850_v19 = vmin.f32 %v846_v15, 6.0  ;;  %v7205_v33 = vpop.f32.mrb[5].mxu1 }
 0x3c8   : > { %v855_v20 = vmul.f32 0.16666667, %v851_v16  ;;  %v849_v21 = vmin.f32 %v845_v17, 6.0 }
 0x3c9   : > { %v854_v22 = vmul.f32 %v7187_v5, %v850_v19 }
 0x3ca   : > { %v7772_v23 = vpack.c.bf16 %v856_v18, %v855_v20  ;;  %v853_v24 = vmul.f32 %v849_v21, %v830_v11 }
 0x3cb   : > { %v858_v27 = vmul.f32 0.16666667, %v854_v22 }
 0x3cc   : > { %v857_v28 = vmul.f32 0.16666667, %v853_v24  ;;  %7773 = vmatpush3.bf16.msra.mxu0 %v7772_v23 }
 0x3cd   : > { %7774 = vmatprep.subr.bf16.mxu0 %v8242_v41 }
 0x3ce   : > { %v7775_v30 = vpack.c.bf16 %v858_v27, %v857_v28 }
 0x3d0   : > { %7776 = vmatpush3.bf16.msra.mxu0 %v7775_v30 }
 0x3d1   : > { %7781 = vmatprep.subr.bf16.mxu0 %v7780_v29 }
 0x3d3   : > { %7197 = vmatmul.mubr.msk.f32.vlgmr.msra.gmra.mrb[2].mxu0 %vm859_vm3, %v8472_v31 }
 0x3d4   : > { %7783 = vmatpush3.bf16.msra.mxu0 %v7780_v29  ;;  %7210 = vmatprep.mubr.msk.f32.mxu0 %vm617_vm0, %v8352_v1 }
 0x3d5   : > { %7788 = vmatprep.subr.bf16.mxu0 %v8242_v41 }
 0x3d7   : > { %7211 = vmatmul.mubr.msk.f32.vlgmr.msra.gmra.mrb[4].mxu0 %vm617_vm0, %v8375_v8 }
 0x3d8   : > { %7231 = vmatprep.mubr.msk.f32.mxu0 %vm8243_vm2, %v8244_v60 }
 0x4a6   : > { %v929_v34 = vpop.f32.mrb[2].mxu0 }
 0x4a7   : > { %v8483_v35 = vadd.f32 %v1002_v32, %v929_v34  ;;  %v7198_v36 = vpop.f32.mrb[3].mxu0 }
 0x4aa   : > { %v7212_v37 = vpop.f32.mrb[4].mxu0 }
 0x4ab   : > { %v1093_v38 = vadd.f32 %v7212_v37, %v8381_v10  ;;  %v1087_v39 = vpop.f32.mrb[5].mxu0 }
 0x4ac   : > { %v1088_v42 = vadd.f32 %v1087_v39, %v8379_v9 }
 0x4ad   : > { %v1097_v43 = vsel %vm699_vm1, %v1093_v38, 0.0 }
 0x4ae   : > { %v1096_v46 = vsel %vm699_vm1, %v1088_v42, 0.0  ;;  %v7795_v27 = vpack.c.bf16 %v1093_v38, %v1088_v42 }
 0x4af   : > { %v1098_v47 = vadd.f32 %v1097_v43, %v1096_v46 }
 0x4b1   : > { %1099 = vadd.xlane.f32.xlu0 %v1098_v47 }
 0x53e   : > { %v1100_v48 = vpop.xlane.xlu0 %1099 }
 0x53f   : > { %v1101_v51 = vrot.slane %v1100_v48, 4 }
 0x541   : > { %v1102_v52 = vadd.f32 %v1101_v51, %v1100_v48 }
 0x543   : > { %v1103_v53 = vrot.slane %v1102_v52, 2 }
 0x545   : > { %v1104_v54 = vadd.f32 %v1103_v53, %v1102_v52 }
 0x547   : > { %v1105_v55 = vrot.slane %v1104_v54, 1 }
 0x549   : > { %v1106_v58 = vadd.f32 %v1105_v55, %v1104_v54 }
 0x54b   : > { %8073 = vpush %v1106_v58 }
 0x57c   : > { %s8074_s20 = spop %8073 }
 0x57d   : > { %s1108_s21 = smul.f32 0.0078125, %s8074_s20 }
 0x57f   : > { %v1109_v62 = vstv %s1108_s21 }
 0x580   : > { %v1110_v63 = vsub.f32 %v1088_v42, %v1109_v62  ;;  %v1111_v0 = vsub.f32 %v1093_v38, %v1109_v62 }
 0x582   : > { %v1112_v2 = vmul.f32 %v1110_v63, %v1110_v63  ;;  %v1113_v3 = vmul.f32 %v1111_v0, %v1111_v0 }
 0x584   : > { %v1114_v4 = vsel %vm699_vm1, %v1112_v2, 0.0  ;;  %v1115_v5 = vsel %vm699_vm1, %v1113_v3, 0.0  ;;  %v6712_v2 = vld [vmem:[%s8368_s24 + $0x28] sm:$0xff] }
 0x585   : > { %v1116_v6 = vadd.f32 %v1115_v5, %v1114_v4 }
 0x587   : > { %1117 = vadd.xlane.f32.xlu1 %v1116_v6 }
 0x614   : > { %v1118_v7 = vpop.xlane.xlu1 %1117 }
 0x615   : > { %v1119_v11 = vrot.slane %v1118_v7, 4 }
 0x617   : > { %v1120_v12 = vadd.f32 %v1119_v11, %v1118_v7 }
 0x619   : > { %v1121_v13 = vrot.slane %v1120_v12, 2 }
 0x61b   : > { %v1122_v14 = vadd.f32 %v1121_v13, %v1120_v12 }
 0x61d   : > { %v1123_v15 = vrot.slane %v1122_v14, 1 }
 0x61f   : > { %v1124_v16 = vadd.f32 %v1123_v15, %v1122_v14 }
 0x621   : > { %8075 = vpush %v1124_v16 }
 0x652   : > { %s8076_s22 = spop %8075 }
 0x653   : > { %s1126_s23 = smul.f32 0.0078125, %s8076_s22 }
 0x655   : > { %s1127_s25 = sadd.f32 1e-05, %s1126_s23 }
 0x657   : > { %v1128_v17 = vstv %s1127_s25 }
 0x658   : > { %8179 = vrsqrt.f32 %v1128_v17 }
 0x662   : > { %v8180_v18 = vpop.eup %8179 }
 0x663   : > { %8077 = vpush %v8180_v18 }
 0x694   : > { %s8078_s26 = spop %8077 }
 0x695   : > { %v1131_v19 = vstv %s8078_s26 }
 0x696   : > { %v1132_v20 = vmul.f32 %v1131_v19, %v1110_v63  ;;  %v1133_v21 = vmul.f32 %v1131_v19, %v1111_v0  ;;  %v6711_v0 = vld [vmem:[%s8368_s24 + $0x20] sm:$0xff] }
 0x697   : > { %v7797_v5 = vpack.c.bf16 %v6712_v2, %v6711_v0 }
 0x698   : > { %v1134_v22 = vmul.f32 %v1132_v20, %v8408_v44  ;;  %v1135_v23 = vmul.f32 %v1133_v21, %v8413_v45 }
 0x69a   : > { %v1136_v24 = vadd.f32 %v1134_v22, %v8418_v49  ;;  %v1137_v25 = vadd.f32 %v1135_v23, %v8423_v50 }
 0x69c   : > { %v7784_v26 = vpack.c.bf16 %v1137_v25, %v1136_v24 }
 0x69e   : > { %7785 = vmatprep.subr.bf16.mxu1 %v7784_v26 }
 0x69f   : > { %7787 = vmatpush3.bf16.msra.mxu1 %v7784_v26 }
 0x6a0   : > { %7794 = vmatprep.subr.bf16.mxu1 %v8242_v41 }
 0x6a2   : > { %7218 = vmatmul.mubr.msk.f32.vlgmr.msra.gmra.mrb[6].mxu1 %vm617_vm0, %v8432_v56 }
 0x6a3   : > { %7796 = vmatpush3.bf16.msra.mxu1 %v7795_v27  ;;  %7220 = vmatprep.mubr.msk.f32.mxu1 %vm617_vm0, %v8438_v57 }
 0x6a6   : > { %7221 = vmatmul.mubr.msk.f32.gmra.mrb[8].mxu1 %vm617_vm0, %v8449_v59 }
 0x6a7   : > { %7238 = vmatprep.mubr.msk.f32.mxu1 %vm8243_vm2, %v8244_v60 }
 0x6aa   : > { %7239 = vmatmul.mubr.msk.f32.vlgmr.msra.gmra.mrb[10].mxu1 %vm617_vm0, %v8460_v61 }
 0x6ab   : > { %7252 = vmatprep.mubr.msk.f32.mxu1 %vm617_vm0, %v8400_v40 }
 0x775   : > { %v7219_v28 = vpop.f32.mrb[6].mxu1 }
 0x776   : > { %v1224_v29 = vadd.f32 3.0, %v7219_v28  ;;  %v1204_v30 = vpop.f32.mrb[7].mxu1 }
 0x777   : > { %v1223_v32 = vadd.f32 3.0, %v1204_v30 }
 0x778   : > { %v1228_v33 = vmax.f32 %v1224_v29, 0.0 }
 0x779   : > { %v1227_v34 = vmax.f32 %v1223_v32, 0.0  ;;  %v7222_v36 = vpop.f32.mrb[8].mxu1 }
 0x77a   : > { %v1232_v37 = vmin.f32 %v1228_v33, 6.0  ;;  %v1226_v38 = vadd.f32 3.0, %v7222_v36  ;;  %v1214_v39 = vpop.f32.mrb[9].mxu1 }
 0x77b   : > { %v1231_v42 = vmin.f32 %v1227_v34, 6.0  ;;  %v1225_v43 = vadd.f32 3.0, %v1214_v39 }
 0x77c   : > { %v1236_v46 = vmul.f32 %v7219_v28, %v1232_v37  ;;  %v1230_v47 = vmax.f32 %v1226_v38, 0.0 }
 0x77d   : > { %v1235_v48 = vmul.f32 %v1231_v42, %v1204_v30  ;;  %v1229_v51 = vmax.f32 %v1225_v43, 0.0  ;;  %v1379_v7 = vpop.f32.mrb[10].mxu1 }
 0x77e   : > { %v1240_v52 = vmul.f32 0.16666667, %v1236_v46  ;;  %v1234_v53 = vmin.f32 %v1230_v47, 6.0  ;;  %v7240_v11 = vpop.f32.mrb[11].mxu1 }
 0x77f   : > { %v1239_v54 = vmul.f32 0.16666667, %v1235_v48  ;;  %v1233_v55 = vmin.f32 %v1229_v51, 6.0 }
 0x780   : > { %v1238_v58 = vmul.f32 %v7222_v36, %v1234_v53 }
 0x781   : > { %v7789_v62 = vpack.c.bf16 %v1240_v52, %v1239_v54  ;;  %v1237_v63 = vmul.f32 %v1233_v55, %v1214_v39 }
 0x782   : > { %v1242_v3 = vmul.f32 0.16666667, %v1238_v58 }
 0x783   : > { %v1241_v4 = vmul.f32 0.16666667, %v1237_v63  ;;  %7790 = vmatpush3.bf16.msra.mxu0 %v7789_v62 }
 0x784   : > { %7791 = vmatprep.subr.bf16.mxu0 %v8242_v41 }
 0x785   : > { %v7792_v6 = vpack.c.bf16 %v1242_v3, %v1241_v4 }
 0x787   : > { %7793 = vmatpush3.bf16.msra.mxu0 %v7792_v6 }
 0x788   : > { %7798 = vmatprep.subr.bf16.mxu0 %v7797_v5 }
 0x78a   : > { %7232 = vmatmul.mubr.msk.f32.vlgmr.msra.gmra.mrb[6].mxu0 %vm859_vm3, %v8472_v31 }
 0x78b   : > { %7800 = vmatpush3.bf16.msra.mxu0 %v7797_v5  ;;  %7245 = vmatprep.mubr.msk.f32.mxu0 %vm617_vm0, %v8352_v1 }
 0x78c   : > { %7805 = vmatprep.subr.bf16.mxu0 %v8242_v41 }
 0x78e   : > { %7246 = vmatmul.mubr.msk.f32.vlgmr.msra.gmra.mrb[8].mxu0 %vm617_vm0, %v8375_v8 }
 0x78f   : > { %7266 = vmatprep.mubr.msk.f32.mxu0 %vm8243_vm2, %v8244_v60 }
 0x85d   : > { %v1309_v12 = vpop.f32.mrb[6].mxu0 }
 0x85e   : > { %v8520_v13 = vadd.f32 %v1379_v7, %v1309_v12  ;;  %v7233_v14 = vpop.f32.mrb[7].mxu0 }
 0x861   : > { %v7247_v15 = vpop.f32.mrb[8].mxu0 }
 0x862   : > { %v1460_v16 = vadd.f32 %v7247_v15, %v8381_v10  ;;  %v1454_v17 = vpop.f32.mrb[9].mxu0 }
 0x863   : > { %v1455_v18 = vadd.f32 %v1454_v17, %v8379_v9 }
 0x864   : > { %v1464_v19 = vsel %vm699_vm1, %v1460_v16, 0.0 }
 0x865   : > { %v1463_v20 = vsel %vm699_vm1, %v1455_v18, 0.0  ;;  %v7812_v4 = vpack.c.bf16 %v1460_v16, %v1455_v18 }
 0x866   : > { %v1465_v21 = vadd.f32 %v1464_v19, %v1463_v20 }
 0x868   : > { %1466 = vadd.xlane.f32.xlu1 %v1465_v21 }
 0x8f5   : > { %v1467_v22 = vpop.xlane.xlu1 %1466 }
 0x8f6   : > { %v1468_v23 = vrot.slane %v1467_v22, 4 }
 0x8f8   : > { %v1469_v24 = vadd.f32 %v1468_v23, %v1467_v22 }
 0x8fa   : > { %v1470_v25 = vrot.slane %v1469_v24, 2 }
 0x8fc   : > { %v1471_v26 = vadd.f32 %v1470_v25, %v1469_v24 }
 0x8fe   : > { %v1472_v27 = vrot.slane %v1471_v26, 1 }
 0x900   : > { %v1473_v28 = vadd.f32 %v1472_v27, %v1471_v26 }
 0x902   : > { %8079 = vpush %v1473_v28 }
 0x933   : > { %s8080_s0 = spop %8079 }
 0x934   : > { %s1475_s30 = smul.f32 0.0078125, %s8080_s0 }
 0x936   : > { %v1476_v29 = vstv %s1475_s30 }
 0x937   : > { %v1477_v30 = vsub.f32 %v1455_v18, %v1476_v29  ;;  %v1478_v32 = vsub.f32 %v1460_v16, %v1476_v29 }
 0x939   : > { %v1479_v33 = vmul.f32 %v1477_v30, %v1477_v30  ;;  %v1480_v34 = vmul.f32 %v1478_v32, %v1478_v32 }
 0x93b   : > { %v1481_v36 = vsel %vm699_vm1, %v1479_v33, 0.0  ;;  %v1482_v37 = vsel %vm699_vm1, %v1480_v34, 0.0  ;;  %v6721_v33 = vld [vmem:[%s8368_s24 + $0x30] sm:$0xff]  ;;  %v6722_v34 = vld [vmem:[%s8368_s24 + $0x38] sm:$0xff] }
 0x93c   : > { %v1483_v38 = vadd.f32 %v1482_v37, %v1481_v36 }
 0x93e   : > { %1484 = vadd.xlane.f32.xlu1 %v1483_v38  ;;  %v7814_v38 = vpack.c.bf16 %v6722_v34, %v6721_v33 }
 0x9cb   : > { %v1485_v39 = vpop.xlane.xlu1 %1484 }
 0x9cc   : > { %v1486_v42 = vrot.slane %v1485_v39, 4 }
 0x9ce   : > { %v1487_v43 = vadd.f32 %v1486_v42, %v1485_v39 }
 0x9d0   : > { %v1488_v46 = vrot.slane %v1487_v43, 2 }
 0x9d2   : > { %v1489_v47 = vadd.f32 %v1488_v46, %v1487_v43 }
 0x9d4   : > { %v1490_v48 = vrot.slane %v1489_v47, 1 }
 0x9d6   : > { %v1491_v51 = vadd.f32 %v1490_v48, %v1489_v47 }
 0x9d8   : > { %8081 = vpush %v1491_v51 }
 0xa09   : > { %s8082_s19 = spop %8081 }
 0xa0a   : > { %s1493_s1 = smul.f32 0.0078125, %s8082_s19 }
 0xa0c   : > { %s1494_s20 = sadd.f32 1e-05, %s1493_s1 }
 0xa0e   : > { %v1495_v52 = vstv %s1494_s20 }
 0xa0f   : > { %8181 = vrsqrt.f32 %v1495_v52 }
 0xa19   : > { %v8182_v53 = vpop.eup %8181 }
 0xa1a   : > { %8083 = vpush %v8182_v53 }
 0xa4b   : > { %s8084_s21 = spop %8083 }
 0xa4c   : > { %v1498_v54 = vstv %s8084_s21 }
 0xa4d   : > { %v1499_v55 = vmul.f32 %v1498_v54, %v1477_v30  ;;  %v1500_v58 = vmul.f32 %v1498_v54, %v1478_v32 }
 0xa4f   : > { %v1501_v62 = vmul.f32 %v1499_v55, %v8408_v44  ;;  %v1502_v63 = vmul.f32 %v1500_v58, %v8413_v45 }
 0xa51   : > { %v1503_v0 = vadd.f32 %v1501_v62, %v8418_v49  ;;  %v1504_v2 = vadd.f32 %v1502_v63, %v8423_v50 }
 0xa53   : > { %v7801_v3 = vpack.c.bf16 %v1504_v2, %v1503_v0 }
 0xa55   : > { %7802 = vmatprep.subr.bf16.mxu1 %v7801_v3 }
 0xa56   : > { %7804 = vmatpush3.bf16.msra.mxu1 %v7801_v3 }
 0xa57   : > { %7811 = vmatprep.subr.bf16.mxu1 %v8242_v41 }
 0xa59   : > { %7253 = vmatmul.mubr.msk.f32.vlgmr.msra.gmra.mrb[12].mxu1 %vm617_vm0, %v8432_v56 }
 0xa5a   : > { %7813 = vmatpush3.bf16.msra.mxu1 %v7812_v4  ;;  %7255 = vmatprep.mubr.msk.f32.mxu1 %vm617_vm0, %v8438_v57 }
 0xa5d   : > { %7256 = vmatmul.mubr.msk.f32.gmra.mrb[14].mxu1 %vm617_vm0, %v8449_v59 }
 0xa5e   : > { %7273 = vmatprep.mubr.msk.f32.mxu1 %vm8243_vm2, %v8244_v60 }
 0xa61   : > { %7274 = vmatmul.mubr.msk.f32.vlgmr.msra.gmra.mrb[16].mxu1 %vm617_vm0, %v8460_v61 }
 0xa62   : > { %7287 = vmatprep.mubr.msk.f32.mxu1 %vm617_vm0, %v8400_v40 }
 0xb2c   : > { %v7254_v5 = vpop.f32.mrb[12].mxu1 }
 0xb2d   : > { %v1591_v6 = vadd.f32 3.0, %v7254_v5  ;;  %v1571_v7 = vpop.f32.mrb[13].mxu1 }
 0xb2e   : > { %v1590_v11 = vadd.f32 3.0, %v1571_v7 }
 0xb2f   : > { %v1595_v12 = vmax.f32 %v1591_v6, 0.0 }
 0xb30   : > { %v1594_v14 = vmax.f32 %v1590_v11, 0.0  ;;  %v7257_v15 = vpop.f32.mrb[14].mxu1 }
 0xb31   : > { %v1599_v16 = vmin.f32 %v1595_v12, 6.0  ;;  %v1593_v17 = vadd.f32 3.0, %v7257_v15  ;;  %v1581_v18 = vpop.f32.mrb[15].mxu1 }
 0xb32   : > { %v1598_v19 = vmin.f32 %v1594_v14, 6.0  ;;  %v1592_v20 = vadd.f32 3.0, %v1581_v18 }
 0xb33   : > { %v1603_v21 = vmul.f32 %v7254_v5, %v1599_v16  ;;  %v1597_v22 = vmax.f32 %v1593_v17, 0.0 }
 0xb34   : > { %v1602_v23 = vmul.f32 %v1598_v19, %v1571_v7  ;;  %v1596_v24 = vmax.f32 %v1592_v20, 0.0  ;;  %v1746_v42 = vpop.f32.mrb[16].mxu1 }
 0xb35   : > { %v1607_v25 = vmul.f32 0.16666667, %v1603_v21  ;;  %v1601_v26 = vmin.f32 %v1597_v22, 6.0  ;;  %v7275_v43 = vpop.f32.mrb[17].mxu1 }
 0xb36   : > { %v1606_v27 = vmul.f32 0.16666667, %v1602_v23  ;;  %v1600_v28 = vmin.f32 %v1596_v24, 6.0 }
 0xb37   : > { %v1605_v29 = vmul.f32 %v7257_v15, %v1601_v26 }
 0xb38   : > { %v7806_v30 = vpack.c.bf16 %v1607_v25, %v1606_v27  ;;  %v1604_v32 = vmul.f32 %v1600_v28, %v1581_v18 }
 0xb39   : > { %v1609_v36 = vmul.f32 0.16666667, %v1605_v29 }
 0xb3a   : > { %v1608_v37 = vmul.f32 0.16666667, %v1604_v32  ;;  %7807 = vmatpush3.bf16.msra.mxu0 %v7806_v30 }
 0xb3b   : > { %7808 = vmatprep.subr.bf16.mxu0 %v8242_v41 }
 0xb3c   : > { %v7809_v39 = vpack.c.bf16 %v1609_v36, %v1608_v37 }
 0xb3e   : > { %7810 = vmatpush3.bf16.msra.mxu0 %v7809_v39 }
 0xb3f   : > { %7815 = vmatprep.subr.bf16.mxu0 %v7814_v38 }
 0xb41   : > { %7267 = vmatmul.mubr.msk.f32.vlgmr.msra.gmra.mrb[10].mxu0 %vm859_vm3, %v8472_v31 }
 0xb42   : > { %7817 = vmatpush3.bf16.msra.mxu0 %v7814_v38  ;;  %7280 = vmatprep.mubr.msk.f32.mxu0 %vm617_vm0, %v8352_v1 }
 0xb43   : > { %7822 = vmatprep.subr.bf16.mxu0 %v8242_v41 }
 0xb45   : > { %7281 = vmatmul.mubr.msk.f32.vlgmr.msra.gmra.mrb[12].mxu0 %vm617_vm0, %v8375_v8 }
 0xb46   : > { %7301 = vmatprep.mubr.msk.f32.mxu0 %vm8243_vm2, %v8244_v60 }
 0xc14   : > { %v1676_v46 = vpop.f32.mrb[10].mxu0 }
 0xc15   : > { %v8557_v47 = vadd.f32 %v1746_v42, %v1676_v46  ;;  %v7268_v48 = vpop.f32.mrb[11].mxu0 }
 0xc18   : > { %v7282_v51 = vpop.f32.mrb[12].mxu0 }
 0xc19   : > { %v1827_v52 = vadd.f32 %v7282_v51, %v8381_v10  ;;  %v1821_v53 = vpop.f32.mrb[13].mxu0 }
 0xc1a   : > { %v1822_v54 = vadd.f32 %v1821_v53, %v8379_v9 }
 0xc1b   : > { %v1831_v55 = vsel %vm699_vm1, %v1827_v52, 0.0 }
 0xc1c   : > { %v1830_v58 = vsel %vm699_vm1, %v1822_v54, 0.0  ;;  %v7829_v38 = vpack.c.bf16 %v1827_v52, %v1822_v54 }
 0xc1d   : > { %v1832_v62 = vadd.f32 %v1831_v55, %v1830_v58 }
 0xc1f   : > { %1833 = vadd.xlane.f32.xlu1 %v1832_v62 }
 0xcac   : > { %v1834_v63 = vpop.xlane.xlu1 %1833 }
 0xcad   : > { %v1835_v0 = vrot.slane %v1834_v63, 4 }
 0xcaf   : > { %v1836_v2 = vadd.f32 %v1835_v0, %v1834_v63 }
 0xcb1   : > { %v1837_v3 = vrot.slane %v1836_v2, 2 }
 0xcb3   : > { %v1838_v4 = vadd.f32 %v1837_v3, %v1836_v2 }
 0xcb5   : > { %v1839_v5 = vrot.slane %v1838_v4, 1 }
 0xcb7   : > { %v1840_v6 = vadd.f32 %v1839_v5, %v1838_v4 }
 0xcb9   : > { %8085 = vpush %v1840_v6 }
 0xcea   : > { %s8086_s22 = spop %8085 }
 0xceb   : > { %s1842_s23 = smul.f32 0.0078125, %s8086_s22 }
 0xced   : > { %v1843_v7 = vstv %s1842_s23 }
 0xcee   : > { %v1844_v11 = vsub.f32 %v1822_v54, %v1843_v7  ;;  %v1845_v12 = vsub.f32 %v1827_v52, %v1843_v7 }
 0xcf0   : > { %v1846_v14 = vmul.f32 %v1844_v11, %v1844_v11  ;;  %v1847_v15 = vmul.f32 %v1845_v12, %v1845_v12 }
 0xcf2   : > { %v1848_v16 = vsel %vm699_vm1, %v1846_v14, 0.0  ;;  %v1849_v17 = vsel %vm699_vm1, %v1847_v15, 0.0  ;;  %v6731_v15 = vld [vmem:[%s8368_s24 + $0x40] sm:$0xff] }
 0xcf3   : > { %v1850_v18 = vadd.f32 %v1849_v17, %v1848_v16  ;;  %v6732_v16 = vld [vmem:[%s8368_s24 + $0x48] sm:$0xff] }
 0xcf5   : > { %1851 = vadd.xlane.f32.xlu1 %v1850_v18 }
 0xd82   : > { %v1852_v19 = vpop.xlane.xlu1 %1851 }
 0xd83   : > { %v1853_v20 = vrot.slane %v1852_v19, 4 }
 0xd85   : > { %v1854_v21 = vadd.f32 %v1853_v20, %v1852_v19  ;;  %v7831_v19 = vpack.c.bf16 %v6732_v16, %v6731_v15 }
 0xd87   : > { %v1855_v22 = vrot.slane %v1854_v21, 2 }
 0xd89   : > { %v1856_v23 = vadd.f32 %v1855_v22, %v1854_v21 }
 0xd8b   : > { %v1857_v24 = vrot.slane %v1856_v23, 1 }
 0xd8d   : > { %v1858_v25 = vadd.f32 %v1857_v24, %v1856_v23 }
 0xd8f   : > { %8087 = vpush %v1858_v25 }
 0xdc0   : > { %s8088_s25 = spop %8087 }
 0xdc1   : > { %s1860_s26 = smul.f32 0.0078125, %s8088_s25 }
 0xdc3   : > { %s1861_s0 = sadd.f32 1e-05, %s1860_s26 }
 0xdc5   : > { %v1862_v26 = vstv %s1861_s0 }
 0xdc6   : > { %8183 = vrsqrt.f32 %v1862_v26 }
 0xdd0   : > { %v8184_v27 = vpop.eup %8183 }
 0xdd1   : > { %8089 = vpush %v8184_v27 }
 0xe02   : > { %s8090_s30 = spop %8089 }
 0xe03   : > { %v1865_v28 = vstv %s8090_s30 }
 0xe04   : > { %v1866_v29 = vmul.f32 %v1865_v28, %v1844_v11  ;;  %v1867_v30 = vmul.f32 %v1865_v28, %v1845_v12 }
 0xe06   : > { %v1868_v32 = vmul.f32 %v1866_v29, %v8408_v44  ;;  %v1869_v33 = vmul.f32 %v1867_v30, %v8413_v45 }
 0xe08   : > { %v1870_v34 = vadd.f32 %v1868_v32, %v8418_v49  ;;  %v1871_v36 = vadd.f32 %v1869_v33, %v8423_v50 }
 0xe0a   : > { %v7818_v37 = vpack.c.bf16 %v1871_v36, %v1870_v34 }
 0xe0c   : > { %7819 = vmatprep.subr.bf16.mxu1 %v7818_v37 }
 0xe0d   : > { %7821 = vmatpush3.bf16.msra.mxu1 %v7818_v37 }
 0xe0e   : > { %7828 = vmatprep.subr.bf16.mxu1 %v8242_v41 }
 0xe10   : > { %7288 = vmatmul.mubr.msk.f32.vlgmr.msra.gmra.mrb[18].mxu1 %vm617_vm0, %v8432_v56 }
 0xe11   : > { %7830 = vmatpush3.bf16.msra.mxu1 %v7829_v38  ;;  %7290 = vmatprep.mubr.msk.f32.mxu1 %vm617_vm0, %v8438_v57 }
 0xe14   : > { %7291 = vmatmul.mubr.msk.f32.gmra.mrb[20].mxu1 %vm617_vm0, %v8449_v59 }
 0xe15   : > { %7308 = vmatprep.mubr.msk.f32.mxu1 %vm8243_vm2, %v8244_v60 }
 0xe18   : > { %7309 = vmatmul.mubr.msk.f32.vlgmr.msra.gmra.mrb[22].mxu1 %vm617_vm0, %v8460_v61 }
 0xe19   : > { %7322 = vmatprep.mubr.msk.f32.mxu1 %vm617_vm0, %v8400_v40 }
 0xee3   : > { %v7289_v39 = vpop.f32.mrb[18].mxu1 }
 0xee4   : > { %v1958_v42 = vadd.f32 3.0, %v7289_v39  ;;  %v1938_v43 = vpop.f32.mrb[19].mxu1 }
 0xee5   : > { %v1957_v46 = vadd.f32 3.0, %v1938_v43 }
 0xee6   : > { %v1962_v48 = vmax.f32 %v1958_v42, 0.0 }
 0xee7   : > { %v1961_v51 = vmax.f32 %v1957_v46, 0.0  ;;  %v7292_v52 = vpop.f32.mrb[20].mxu1 }
 0xee8   : > { %v1966_v53 = vmin.f32 %v1962_v48, 6.0  ;;  %v1960_v54 = vadd.f32 3.0, %v7292_v52  ;;  %v1948_v55 = vpop.f32.mrb[21].mxu1 }
 0xee9   : > { %v1965_v58 = vmin.f32 %v1961_v51, 6.0  ;;  %v1959_v62 = vadd.f32 3.0, %v1948_v55 }
 0xeea   : > { %v1970_v63 = vmul.f32 %v7289_v39, %v1966_v53  ;;  %v1964_v0 = vmax.f32 %v1960_v54, 0.0 }
 0xeeb   : > { %v1969_v2 = vmul.f32 %v1965_v58, %v1938_v43  ;;  %v1963_v3 = vmax.f32 %v1959_v62, 0.0  ;;  %v2113_v21 = vpop.f32.mrb[22].mxu1 }
 0xeec   : > { %v1974_v4 = vmul.f32 0.16666667, %v1970_v63  ;;  %v1968_v5 = vmin.f32 %v1964_v0, 6.0  ;;  %v7310_v22 = vpop.f32.mrb[23].mxu1 }
 0xeed   : > { %v1973_v6 = vmul.f32 0.16666667, %v1969_v2  ;;  %v1967_v7 = vmin.f32 %v1963_v3, 6.0 }
 0xeee   : > { %v1972_v11 = vmul.f32 %v7292_v52, %v1968_v5 }
 0xeef   : > { %v7823_v12 = vpack.c.bf16 %v1974_v4, %v1973_v6  ;;  %v1971_v14 = vmul.f32 %v1967_v7, %v1948_v55 }
 0xef0   : > { %v1976_v17 = vmul.f32 0.16666667, %v1972_v11 }
 0xef1   : > { %v1975_v18 = vmul.f32 0.16666667, %v1971_v14  ;;  %7824 = vmatpush3.bf16.msra.mxu0 %v7823_v12 }
 0xef2   : > { %7825 = vmatprep.subr.bf16.mxu0 %v8242_v41 }
 0xef3   : > { %v7826_v20 = vpack.c.bf16 %v1976_v17, %v1975_v18 }
 0xef5   : > { %7827 = vmatpush3.bf16.msra.mxu0 %v7826_v20 }
 0xef6   : > { %7832 = vmatprep.subr.bf16.mxu0 %v7831_v19 }
 0xef8   : > { %7302 = vmatmul.mubr.msk.f32.vlgmr.msra.gmra.mrb[14].mxu0 %vm859_vm3, %v8472_v31 }
 0xef9   : > { %7834 = vmatpush3.bf16.msra.mxu0 %v7831_v19  ;;  %7315 = vmatprep.mubr.msk.f32.mxu0 %vm617_vm0, %v8352_v1 }
 0xefa   : > { %7839 = vmatprep.subr.bf16.mxu0 %v8242_v41 }
 0xefc   : > { %7316 = vmatmul.mubr.msk.f32.vlgmr.msra.gmra.mrb[16].mxu0 %vm617_vm0, %v8375_v8 }
 0xefd   : > { %7336 = vmatprep.mubr.msk.f32.mxu0 %vm8243_vm2, %v8244_v60 }
 0xfcb   : > { %v2043_v23 = vpop.f32.mrb[14].mxu0 }
 0xfcc   : > { %v8594_v24 = vadd.f32 %v2113_v21, %v2043_v23  ;;  %v7303_v25 = vpop.f32.mrb[15].mxu0 }
 0xfcf   : > { %v7317_v26 = vpop.f32.mrb[16].mxu0 }
 0xfd0   : > { %v2194_v27 = vadd.f32 %v7317_v26, %v8381_v10  ;;  %v2188_v28 = vpop.f32.mrb[17].mxu0 }
 0xfd1   : > { %v2189_v1 = vadd.f32 %v2188_v28, %v8379_v9 }
 0xfd2   : > { %v2198_v29 = vsel %vm699_vm1, %v2194_v27, 0.0 }
 0xfd3   : > { %v2197_v30 = vsel %vm699_vm1, %v2189_v1, 0.0  ;;  %v7846_v18 = vpack.c.bf16 %v2194_v27, %v2189_v1 }
 0xfd4   : > { %v2199_v8 = vadd.f32 %v2198_v29, %v2197_v30 }
 0xfd6   : > { %2200 = vadd.xlane.f32.xlu1 %v2199_v8 }
0x1063   : > { %v2201_v32 = vpop.xlane.xlu1 %2200 }
0x1064   : > { %v2202_v33 = vrot.slane %v2201_v32, 4 }
0x1066   : > { %v2203_v34 = vadd.f32 %v2202_v33, %v2201_v32  ;;  %v6741_v33 = vld [vmem:[%s8368_s24 + $0x50] sm:$0xff] }
0x1068   : > { %v2204_v36 = vrot.slane %v2203_v34, 2 }
0x106a   : > { %v2205_v37 = vadd.f32 %v2204_v36, %v2203_v34  ;;  %v6742_v34 = vld [vmem:[%s8368_s24 + $0x58] sm:$0xff] }
0x106c   : > { %v2206_v38 = vrot.slane %v2205_v37, 1 }
0x106e   : > { %v2207_v39 = vadd.f32 %v2206_v38, %v2205_v37  ;;  %v7848_v38 = vpack.c.bf16 %v6742_v34, %v6741_v33  ;;  %v8677_v34 = vld [vmem:[%s9468_s7 + $0x8] sm:$0xff] }
0x1070   : > { %8091 = vpush %v2207_v39 }
0x10a1   : > { %s8092_s19 = spop %8091 }
0x10a2   : > { %s2209_s1 = smul.f32 0.0078125, %s8092_s19 }
0x10a4   : > { %v2210_v42 = vstv %s2209_s1 }
0x10a5   : > { %v2211_v43 = vsub.f32 %v2189_v1, %v2210_v42  ;;  %v2212_v46 = vsub.f32 %v2194_v27, %v2210_v42  ;;  %v8627_v42 = vld [vmem:[%s9464_s3] sm:$0xff] }
0x10a7   : > { %v2213_v48 = vmul.f32 %v2211_v43, %v2211_v43  ;;  %v2214_v51 = vmul.f32 %v2212_v46, %v2212_v46 }
0x10a9   : > { %v2215_v52 = vsel %vm699_vm1, %v2213_v48, 0.0  ;;  %v2216_v53 = vsel %vm699_vm1, %v2214_v51, 0.0 }
0x10aa   : > { %v2217_v54 = vadd.f32 %v2216_v53, %v2215_v52 }
0x10ac   : > { %2218 = vadd.xlane.f32.xlu1 %v2217_v54 }
0x1139   : > { %v2219_v55 = vpop.xlane.xlu1 %2218 }
0x113a   : > { %v2220_v58 = vrot.slane %v2219_v55, 4 }
0x113c   : > { %v2221_v62 = vadd.f32 %v2220_v58, %v2219_v55 }
0x113e   : > { %v2222_v63 = vrot.slane %v2221_v62, 2 }
0x1140   : > { %v2223_v0 = vadd.f32 %v2222_v63, %v2221_v62 }
0x1142   : > { %v2224_v2 = vrot.slane %v2223_v0, 1 }
0x1144   : > { %v2225_v3 = vadd.f32 %v2224_v2, %v2223_v0 }
0x1146   : > { %8093 = vpush %v2225_v3 }
0x1177   : > { %s8094_s20 = spop %8093 }
0x1178   : > { %s2227_s21 = smul.f32 0.0078125, %s8094_s20 }
0x117a   : > { %s2228_s22 = sadd.f32 1e-05, %s2227_s21 }
0x117c   : > { %v2229_v4 = vstv %s2228_s22 }
0x117d   : > { %8185 = vrsqrt.f32 %v2229_v4 }
0x1187   : > { %v8186_v5 = vpop.eup %8185 }
0x1188   : > { %8095 = vpush %v8186_v5 }
0x11b9   : > { %s8096_s23 = spop %8095 }
0x11ba   : > { %v2232_v6 = vstv %s8096_s23 }
0x11bb   : > { %v2233_v7 = vmul.f32 %v2232_v6, %v2211_v43  ;;  %v2234_v11 = vmul.f32 %v2232_v6, %v2212_v46  ;;  %v8635_v43 = vld [vmem:[%s9464_s3 + $0x8] sm:$0xff] }
0x11bd   : > { %v2235_v12 = vmul.f32 %v2233_v7, %v8408_v44  ;;  %v2236_v14 = vmul.f32 %v2234_v11, %v8413_v45 }
0x11bf   : > { %v2237_v15 = vadd.f32 %v2235_v12, %v8418_v49  ;;  %v2238_v16 = vadd.f32 %v2236_v14, %v8423_v50 }
0x11c1   : > { %v7835_v17 = vpack.c.bf16 %v2238_v16, %v2237_v15 }
0x11c3   : > { %7836 = vmatprep.subr.bf16.mxu1 %v7835_v17 }
0x11c4   : > { %7838 = vmatpush3.bf16.msra.mxu1 %v7835_v17 }
0x11c5   : > { %7845 = vmatprep.subr.bf16.mxu1 %v8242_v41 }
0x11c7   : > { %7323 = vmatmul.mubr.msk.f32.vlgmr.msra.gmra.mrb[24].mxu1 %vm617_vm0, %v8432_v56 }
0x11c8   : > { %7847 = vmatpush3.bf16.msra.mxu1 %v7846_v18  ;;  %7325 = vmatprep.mubr.msk.f32.mxu1 %vm617_vm0, %v8438_v57 }
0x11cb   : > { %7326 = vmatmul.mubr.msk.f32.gmra.mrb[26].mxu1 %vm617_vm0, %v8449_v59 }
0x11cc   : > { %7343 = vmatprep.mubr.msk.f32.mxu1 %vm8243_vm2, %v8244_v60 }
0x11cf   : > { %7344 = vmatmul.mubr.msk.f32.vlgmr.msra.gmra.mrb[28].mxu1 %vm617_vm0, %v8460_v61 }
0x11d0   : > { %7357 = vmatprep.mubr.msk.f32.mxu1 %vm617_vm0, %v8400_v40 }
0x129a   : > { %v7324_v44 = vpop.f32.mrb[24].mxu1 }
0x129b   : > { %v2325_v45 = vadd.f32 3.0, %v7324_v44  ;;  %v2305_v49 = vpop.f32.mrb[25].mxu1 }
0x129c   : > { %v2324_v50 = vadd.f32 3.0, %v2305_v49 }
0x129d   : > { %v2329_v56 = vmax.f32 %v2325_v45, 0.0 }
0x129e   : > { %v2328_v19 = vmax.f32 %v2324_v50, 0.0  ;;  %v7327_v20 = vpop.f32.mrb[26].mxu1 }
0x129f   : > { %v2333_v57 = vmin.f32 %v2329_v56, 6.0  ;;  %v2327_v21 = vadd.f32 3.0, %v7327_v20  ;;  %v2315_v59 = vpop.f32.mrb[27].mxu1 }
0x12a0   : > { %v2332_v22 = vmin.f32 %v2328_v19, 6.0  ;;  %v2326_v23 = vadd.f32 3.0, %v2315_v59 }
0x12a1   : > { %v2337_v25 = vmul.f32 %v7324_v44, %v2333_v57  ;;  %v2331_v26 = vmax.f32 %v2327_v21, 0.0 }
0x12a2   : > { %v2336_v61 = vmul.f32 %v2332_v22, %v2305_v49  ;;  %v2330_v27 = vmax.f32 %v2326_v23, 0.0 }
0x12a3   : > { %v2341_v28 = vmul.f32 0.16666667, %v2337_v25  ;;  %v2335_v40 = vmin.f32 %v2331_v26, 6.0 }
0x12a4   : > { %v2340_v1 = vmul.f32 0.16666667, %v2336_v61  ;;  %v2334_v29 = vmin.f32 %v2330_v27, 6.0  ;;  %v8652_v61 = vld [vmem:[%s9466_s5] sm:$0xff] }
0x12a5   : > { %v2339_v30 = vmul.f32 %v7327_v20, %v2335_v40 }
0x12a6   : > { %v7840_v8 = vpack.c.bf16 %v2341_v28, %v2340_v1  ;;  %v2338_v32 = vmul.f32 %v2334_v29, %v2315_v59  ;;  %v8658_v28 = vld [vmem:[%s9466_s5 + $0x8] sm:$0xff]  ;;  %v8664_v1 = vld [vmem:[%s9467_s6] sm:$0xff] }
0x12a7   : > { %v2343_v36 = vmul.f32 0.16666667, %v2339_v30  ;;  %v8670_v30 = vld [vmem:[%s9467_s6 + $0x8] sm:$0xff] }
0x12a8   : > { %v2342_v37 = vmul.f32 0.16666667, %v2338_v32  ;;  %7841 = vmatpush3.bf16.msra.mxu0 %v7840_v8 }
0x12a9   : > { %7842 = vmatprep.subr.bf16.mxu0 %v8242_v41 }
0x12aa   : > { %v7843_v39 = vpack.c.bf16 %v2343_v36, %v2342_v37  ;;  %v8684_v36 = vld [vmem:[%s9468_s7 + $0x10] sm:$0xff]  ;;  %v8691_v37 = vld [vmem:[%s9468_s7 + $0x18] sm:$0xff] }
0x12ac   : > { %7844 = vmatpush3.bf16.msra.mxu0 %v7843_v39  ;;  %v8707_v39 = vld [vmem:[%s9468_s7] sm:$0xff] }
0x12ad   : > { %7849 = vmatprep.subr.bf16.mxu0 %v7848_v38 }
0x12af   : > { %7337 = vmatmul.mubr.msk.f32.vlgmr.msra.gmra.mrb[18].mxu0 %vm859_vm3, %v8472_v31  ;;  %v2480_v31 = vpop.f32.mrb[28].mxu1 }
0x12b0   : > { %7851 = vmatpush3.bf16.msra.mxu0 %v7848_v38  ;;  %7350 = vmatprep.mubr.msk.f32.mxu0 %vm617_vm0, %v8627_v42  ;;  %v7345_v46 = vpop.f32.mrb[29].mxu1  ;;  %v8700_v38 = vld [vmem:[%s9483_s18] sm:$0x1] }
0x12b1   : > { %7856 = vmatprep.subr.bf16.mxu0 %v8242_v41 }
0x12b3   : > { %7351 = vmatmul.mubr.msk.f32.vlgmr.msra.gmra.mrb[20].mxu0 %vm617_vm0, %v8635_v43 }
0x12b4   : > { %7371 = vmatprep.mubr.msk.f32.mxu0 %vm8243_vm2, %v8244_v60 }
0x1382   : > { %v2410_v48 = vpop.f32.mrb[18].mxu0 }
0x1383   : > { %v8641_v51 = vadd.f32 %v2480_v31, %v2410_v48  ;;  %v7338_v52 = vpop.f32.mrb[19].mxu0 }
0x1386   : > { %v7352_v53 = vpop.f32.mrb[20].mxu0 }
0x1387   : > { %v2561_v54 = vadd.f32 %v7352_v53, %v8381_v10  ;;  %v2555_v55 = vpop.f32.mrb[21].mxu0 }
0x1388   : > { %v2556_v58 = vadd.f32 %v2555_v55, %v8379_v9 }
0x1389   : > { %v2565_v62 = vsel %vm699_vm1, %v2561_v54, 0.0 }
0x138a   : > { %v2564_v63 = vsel %vm699_vm1, %v2556_v58, 0.0  ;;  %v7863_v33 = vpack.c.bf16 %v2561_v54, %v2556_v58 }
0x138b   : > { %v2566_v0 = vadd.f32 %v2565_v62, %v2564_v63 }
0x138d   : > { %2567 = vadd.xlane.f32.xlu1 %v2566_v0 }
0x141a   : > { %v2568_v2 = vpop.xlane.xlu1 %2567 }
0x141b   : > { %v2569_v3 = vrot.slane %v2568_v2, 4 }
0x141d   : > { %v2570_v4 = vadd.f32 %v2569_v3, %v2568_v2 }
0x141f   : > { %v2571_v5 = vrot.slane %v2570_v4, 2 }
0x1421   : > { %v2572_v6 = vadd.f32 %v2571_v5, %v2570_v4 }
0x1423   : > { %v2573_v7 = vrot.slane %v2572_v6, 1 }
0x1425   : > { %v2574_v11 = vadd.f32 %v2573_v7, %v2572_v6 }
0x1427   : > { %8097 = vpush %v2574_v11 }
0x1458   : > { %s8098_s19 = spop %8097 }
0x1459   : > { %s2576_s1 = smul.f32 0.0078125, %s8098_s19 }
0x145b   : > { %v2577_v12 = vstv %s2576_s1 }
0x145c   : > { %v2578_v14 = vsub.f32 %v2556_v58, %v2577_v12  ;;  %v2579_v15 = vsub.f32 %v2561_v54, %v2577_v12 }
0x145e   : > { %v2580_v16 = vmul.f32 %v2578_v14, %v2578_v14  ;;  %v2581_v17 = vmul.f32 %v2579_v15, %v2579_v15 }
0x1460   : > { %v2582_v18 = vsel %vm699_vm1, %v2580_v16, 0.0  ;;  %v2583_v44 = vsel %vm699_vm1, %v2581_v17, 0.0 }
0x1461   : > { %v2584_v45 = vadd.f32 %v2583_v44, %v2582_v18  ;;  %v6751_v18 = vld [vmem:[%s8368_s24 + $0x60] sm:$0xff]  ;;  %v6752_v44 = vld [vmem:[%s8368_s24 + $0x68] sm:$0xff] }
0x1463   : > { %2585 = vadd.xlane.f32.xlu0 %v2584_v45 }
0x14f0   : > { %v2586_v49 = vpop.xlane.xlu0 %2585 }
0x14f1   : > { %v2587_v50 = vrot.slane %v2586_v49, 4 }
0x14f3   : > { %v2588_v56 = vadd.f32 %v2587_v50, %v2586_v49  ;;  %v7865_v50 = vpack.c.bf16 %v6752_v44, %v6751_v18 }
0x14f5   : > { %v2589_v19 = vrot.slane %v2588_v56, 2 }
0x14f7   : > { %v2590_v20 = vadd.f32 %v2589_v19, %v2588_v56  ;;  %v8717_v19 = vld [vmem:[%s9469_s8] sm:$0x1] }
0x14f9   : > { %v2591_v57 = vrot.slane %v2590_v20, 1 }
0x14fb   : > { %v2592_v21 = vadd.f32 %v2591_v57, %v2590_v20 }
0x14fd   : > { %8099 = vpush %v2592_v21 }
0x152e   : > { %s8100_s20 = spop %8099 }
0x152f   : > { %s2594_s21 = smul.f32 0.0078125, %s8100_s20 }
0x1531   : > { %s2595_s22 = sadd.f32 1e-05, %s2594_s21 }
0x1533   : > { %v2596_v59 = vstv %s2595_s22 }
0x1534   : > { %8187 = vrsqrt.f32 %v2596_v59 }
0x153e   : > { %v8188_v22 = vpop.eup %8187 }
0x153f   : > { %8101 = vpush %v8188_v22 }
0x1570   : > { %s8102_s23 = spop %8101 }
0x1571   : > { %v2599_v23 = vstv %s8102_s23 }
0x1572   : > { %v2600_v25 = vmul.f32 %v2599_v23, %v2578_v14  ;;  %v2601_v26 = vmul.f32 %v2599_v23, %v2579_v15 }
0x1574   : > { %v2602_v27 = vmul.f32 %v8652_v61, %v2600_v25  ;;  %v2603_v40 = vmul.f32 %v8658_v28, %v2601_v26 }
0x1576   : > { %v2604_v29 = vadd.f32 %v8664_v1, %v2602_v27  ;;  %v2605_v8 = vadd.f32 %v8670_v30, %v2603_v40 }
0x1578   : > { %v7852_v32 = vpack.c.bf16 %v2605_v8, %v2604_v29 }
0x157a   : > { %7853 = vmatprep.subr.bf16.mxu1 %v7852_v32 }
0x157b   : > { %7855 = vmatpush3.bf16.msra.mxu1 %v7852_v32 }
0x157c   : > { %7862 = vmatprep.subr.bf16.mxu1 %v8242_v41 }
0x157e   : > { %7358 = vmatmul.mubr.msk.f32.vlgmr.msra.gmra.mrb[30].mxu1 %vm617_vm0, %v8677_v34 }
0x157f   : > { %7864 = vmatpush3.bf16.msra.mxu1 %v7863_v33  ;;  %7360 = vmatprep.mubr.msk.f32.mxu1 %vm617_vm0, %v8684_v36 }
0x1582   : > { %7361 = vmatmul.mubr.msk.f32.gmra.mrb[32].mxu1 %vm617_vm0, %v8691_v37 }
0x1583   : > { %7378 = vmatprep.mubr.msk.f32.mxu1 %vm8243_vm2, %v8244_v60 }
0x1586   : > { %7379 = vmatmul.mubr.msk.f32.vlgmr.msra.gmra.mrb[34].mxu1 %vm617_vm0, %v8700_v38 }
0x1587   : > { %7392 = vmatprep.mubr.msk.f32.mxu1 %vm617_vm0, %v8707_v39 }
0x1651   : > { %v7359_v31 = vpop.f32.mrb[30].mxu1 }
0x1652   : > { %v2692_v46 = vadd.f32 3.0, %v7359_v31  ;;  %v2672_v48 = vpop.f32.mrb[31].mxu1 }
0x1653   : > { %v2691_v52 = vadd.f32 3.0, %v2672_v48 }
0x1654   : > { %v2696_v53 = vmax.f32 %v2692_v46, 0.0 }
0x1655   : > { %v2695_v54 = vmax.f32 %v2691_v52, 0.0  ;;  %v7362_v55 = vpop.f32.mrb[32].mxu1 }
0x1656   : > { %v2700_v58 = vmin.f32 %v2696_v53, 6.0  ;;  %v2694_v62 = vadd.f32 3.0, %v7362_v55  ;;  %v2682_v63 = vpop.f32.mrb[33].mxu1 }
0x1657   : > { %v2699_v0 = vmin.f32 %v2695_v54, 6.0  ;;  %v2693_v2 = vadd.f32 3.0, %v2682_v63 }
0x1658   : > { %v2704_v3 = vmul.f32 %v7359_v31, %v2700_v58  ;;  %v2698_v4 = vmax.f32 %v2694_v62, 0.0 }
0x1659   : > { %v2703_v5 = vmul.f32 %v2699_v0, %v2672_v48  ;;  %v2697_v6 = vmax.f32 %v2693_v2, 0.0  ;;  %v2847_v20 = vpop.f32.mrb[34].mxu1 }
0x165a   : > { %v2708_v7 = vmul.f32 0.16666667, %v2704_v3  ;;  %v2702_v11 = vmin.f32 %v2698_v4, 6.0  ;;  %v7380_v57 = vpop.f32.mrb[35].mxu1 }
0x165b   : > { %v2707_v12 = vmul.f32 0.16666667, %v2703_v5  ;;  %v2701_v14 = vmin.f32 %v2697_v6, 6.0 }
0x165c   : > { %v2706_v15 = vmul.f32 %v7362_v55, %v2702_v11 }
0x165d   : > { %v7857_v16 = vpack.c.bf16 %v2708_v7, %v2707_v12  ;;  %v2705_v17 = vmul.f32 %v2701_v14, %v2682_v63 }
0x165e   : > { %v2710_v45 = vmul.f32 0.16666667, %v2706_v15 }
0x165f   : > { %v2709_v49 = vmul.f32 0.16666667, %v2705_v17  ;;  %7858 = vmatpush3.bf16.msra.mxu0 %v7857_v16 }
0x1660   : > { %7859 = vmatprep.subr.bf16.mxu0 %v8242_v41 }
0x1661   : > { %v7860_v56 = vpack.c.bf16 %v2710_v45, %v2709_v49 }
0x1663   : > { %7861 = vmatpush3.bf16.msra.mxu0 %v7860_v56 }
0x1664   : > { %7866 = vmatprep.subr.bf16.mxu0 %v7865_v50 }
0x1666   : > { %7372 = vmatmul.mubr.msk.f32.vlgmr.msra.gmra.mrb[22].mxu0 %vm859_vm3, %v8717_v19 }
0x1667   : > { %7868 = vmatpush3.bf16.msra.mxu0 %v7865_v50  ;;  %7385 = vmatprep.mubr.msk.f32.mxu0 %vm617_vm0, %v8627_v42 }
0x1668   : > { %7873 = vmatprep.subr.bf16.mxu0 %v8242_v41 }
0x166a   : > { %7386 = vmatmul.mubr.msk.f32.vlgmr.msra.gmra.mrb[24].mxu0 %vm617_vm0, %v8635_v43 }
0x166b   : > { %7406 = vmatprep.mubr.msk.f32.mxu0 %vm8243_vm2, %v8244_v60 }
0x1739   : > { %v2777_v21 = vpop.f32.mrb[22].mxu0 }
0x173a   : > { %v8728_v59 = vadd.f32 %v2847_v20, %v2777_v21  ;;  %v7373_v22 = vpop.f32.mrb[23].mxu0 }
0x173d   : > { %v7387_v23 = vpop.f32.mrb[24].mxu0 }
0x173e   : > { %v2928_v25 = vadd.f32 %v7387_v23, %v8381_v10  ;;  %v2922_v26 = vpop.f32.mrb[25].mxu0 }
0x173f   : > { %v2923_v27 = vadd.f32 %v2922_v26, %v8379_v9 }
0x1740   : > { %v2932_v40 = vsel %vm699_vm1, %v2928_v25, 0.0 }
0x1741   : > { %v2931_v29 = vsel %vm699_vm1, %v2923_v27, 0.0  ;;  %v7880_v57 = vpack.c.bf16 %v2928_v25, %v2923_v27 }
0x1742   : > { %v2933_v8 = vadd.f32 %v2932_v40, %v2931_v29 }
0x1744   : > { %2934 = vadd.xlane.f32.xlu1 %v2933_v8 }
0x17d1   : > { %v2935_v32 = vpop.xlane.xlu1 %2934 }
0x17d2   : > { %v2936_v33 = vrot.slane %v2935_v32, 4 }
0x17d4   : > { %v2937_v31 = vadd.f32 %v2936_v33, %v2935_v32 }
0x17d6   : > { %v2938_v46 = vrot.slane %v2937_v31, 2 }
0x17d8   : > { %v2939_v48 = vadd.f32 %v2938_v46, %v2937_v31 }
0x17da   : > { %v2940_v52 = vrot.slane %v2939_v48, 1 }
0x17dc   : > { %v2941_v53 = vadd.f32 %v2940_v52, %v2939_v48 }
0x17de   : > { %8103 = vpush %v2941_v53 }
0x180f   : > { %s8104_s25 = spop %8103 }
0x1810   : > { %s2943_s26 = smul.f32 0.0078125, %s8104_s25 }
0x1812   : > { %v2944_v54 = vstv %s2943_s26 }
0x1813   : > { %v2945_v55 = vsub.f32 %v2923_v27, %v2944_v54  ;;  %v2946_v58 = vsub.f32 %v2928_v25, %v2944_v54 }
0x1815   : > { %v2947_v62 = vmul.f32 %v2945_v55, %v2945_v55  ;;  %v2948_v63 = vmul.f32 %v2946_v58, %v2946_v58 }
0x1817   : > { %v2949_v0 = vsel %vm699_vm1, %v2947_v62, 0.0  ;;  %v2950_v2 = vsel %vm699_vm1, %v2948_v63, 0.0 }
0x1818   : > { %v2951_v3 = vadd.f32 %v2950_v2, %v2949_v0  ;;  %v6761_v2 = vld [vmem:[%s8368_s24 + $0x70] sm:$0xff] }
0x181a   : > { %2952 = vadd.xlane.f32.xlu0 %v2951_v3  ;;  %v6762_v3 = vld [vmem:[%s8368_s24 + $0x78] sm:$0xff] }
0x18a7   : > { %v2953_v4 = vpop.xlane.xlu0 %2952 }
0x18a8   : > { %v2954_v5 = vrot.slane %v2953_v4, 4 }
0x18aa   : > { %v2955_v6 = vadd.f32 %v2954_v5, %v2953_v4 }
0x18ac   : > { %v2956_v7 = vrot.slane %v2955_v6, 2 }
0x18ae   : > { %v2957_v11 = vadd.f32 %v2956_v7, %v2955_v6  ;;  %v7882_v6 = vpack.c.bf16 %v6762_v3, %v6761_v2 }
0x18b0   : > { %v2958_v12 = vrot.slane %v2957_v11, 1 }
0x18b2   : > { %v2959_v14 = vadd.f32 %v2958_v12, %v2957_v11 }
0x18b4   : > { %8105 = vpush %v2959_v14 }
0x18e5   : > { %s8106_s0 = spop %8105 }
0x18e6   : > { %s2961_s30 = smul.f32 0.0078125, %s8106_s0 }
0x18e8   : > { %s2962_s19 = sadd.f32 1e-05, %s2961_s30 }
0x18ea   : > { %v2963_v15 = vstv %s2962_s19 }
0x18eb   : > { %8189 = vrsqrt.f32 %v2963_v15 }
0x18f5   : > { %v8190_v16 = vpop.eup %8189 }
0x18f6   : > { %8107 = vpush %v8190_v16 }
0x1927   : > { %s8108_s1 = spop %8107 }
0x1928   : > { %v2966_v17 = vstv %s8108_s1  ;;  %s6866_s1 = sshll.u32 %s9485_s29, 5 }
0x1929   : > { %v2967_v18 = vmul.f32 %v2966_v17, %v2945_v55  ;;  %v2968_v44 = vmul.f32 %v2966_v17, %v2946_v58  ;;  %s8798_s21 = scalar_lea.vmem %s9470_s9, %s6866_s1 }
0x192b   : > { %v2969_v45 = vmul.f32 %v8652_v61, %v2967_v18  ;;  %v2970_v49 = vmul.f32 %v8658_v28, %v2968_v44 }
0x192d   : > { %v2971_v50 = vadd.f32 %v8664_v1, %v2969_v45  ;;  %v2972_v56 = vadd.f32 %v8670_v30, %v2970_v49 }
0x192f   : > { %v7869_v20 = vpack.c.bf16 %v2972_v56, %v2971_v50 }
0x1931   : > { %7870 = vmatprep.subr.bf16.mxu1 %v7869_v20 }
0x1932   : > { %7872 = vmatpush3.bf16.msra.mxu1 %v7869_v20 }
0x1933   : > { %7879 = vmatprep.subr.bf16.mxu1 %v8242_v41 }
0x1935   : > { %7393 = vmatmul.mubr.msk.f32.vlgmr.msra.gmra.mrb[36].mxu1 %vm617_vm0, %v8677_v34 }
0x1936   : > { %7881 = vmatpush3.bf16.msra.mxu1 %v7880_v57  ;;  %7395 = vmatprep.mubr.msk.f32.mxu1 %vm617_vm0, %v8684_v36 }
0x1939   : > { %7396 = vmatmul.mubr.msk.f32.gmra.mrb[38].mxu1 %vm617_vm0, %v8691_v37 }
0x193a   : > { %7413 = vmatprep.mubr.msk.f32.mxu1 %vm8243_vm2, %v8244_v60 }
0x193d   : > { %7414 = vmatmul.mubr.msk.f32.vlgmr.msra.gmra.mrb[40].mxu1 %vm617_vm0, %v8700_v38 }
0x193e   : > { %7427 = vmatprep.mubr.msk.f32.mxu1 %vm617_vm0, %v8707_v39 }
0x1a08   : > { %v7394_v21 = vpop.f32.mrb[36].mxu1 }
0x1a09   : > { %v3059_v22 = vadd.f32 3.0, %v7394_v21  ;;  %v3039_v23 = vpop.f32.mrb[37].mxu1 }
0x1a0a   : > { %v3058_v25 = vadd.f32 3.0, %v3039_v23 }
0x1a0b   : > { %v3063_v26 = vmax.f32 %v3059_v22, 0.0 }
0x1a0c   : > { %v3062_v27 = vmax.f32 %v3058_v25, 0.0  ;;  %v7397_v40 = vpop.f32.mrb[38].mxu1 }
0x1a0d   : > { %v3067_v29 = vmin.f32 %v3063_v26, 6.0  ;;  %v3061_v8 = vadd.f32 3.0, %v7397_v40  ;;  %v3049_v32 = vpop.f32.mrb[39].mxu1 }
0x1a0e   : > { %v3066_v33 = vmin.f32 %v3062_v27, 6.0  ;;  %v3060_v31 = vadd.f32 3.0, %v3049_v32 }
0x1a0f   : > { %v3071_v46 = vmul.f32 %v7394_v21, %v3067_v29  ;;  %v3065_v48 = vmax.f32 %v3061_v8, 0.0 }
0x1a10   : > { %v3070_v52 = vmul.f32 %v3066_v33, %v3039_v23  ;;  %v3064_v53 = vmax.f32 %v3060_v31, 0.0  ;;  %v3214_v11 = vpop.f32.mrb[40].mxu1 }
0x1a11   : > { %v3075_v54 = vmul.f32 0.16666667, %v3071_v46  ;;  %v3069_v39 = vmin.f32 %v3065_v48, 6.0  ;;  %v7415_v12 = vpop.f32.mrb[41].mxu1 }
0x1a12   : > { %v3074_v55 = vmul.f32 0.16666667, %v3070_v52  ;;  %v3068_v58 = vmin.f32 %v3064_v53, 6.0 }
0x1a13   : > { %v3073_v62 = vmul.f32 %v7397_v40, %v3069_v39 }
0x1a14   : > { %v7874_v63 = vpack.c.bf16 %v3075_v54, %v3074_v55  ;;  %v3072_v0 = vmul.f32 %v3068_v58, %v3049_v32  ;;  %v3590_v32 = vld [vmem:[%s9472_s11 + $0x8] sm:$0xff] }
0x1a15   : > { %v3077_v4 = vmul.f32 0.16666667, %v3073_v62 }
0x1a16   : > { %v3076_v5 = vmul.f32 0.16666667, %v3072_v0  ;;  %7875 = vmatpush3.bf16.msra.mxu0 %v7874_v63 }
0x1a17   : > { %7876 = vmatprep.subr.bf16.mxu0 %v8242_v41 }
0x1a18   : > { %v7877_v7 = vpack.c.bf16 %v3077_v4, %v3076_v5 }
0x1a1a   : > { %7878 = vmatpush3.bf16.msra.mxu0 %v7877_v7 }
0x1a1b   : > { %7883 = vmatprep.subr.bf16.mxu0 %v7882_v6 }
0x1a1d   : > { %7407 = vmatmul.mubr.msk.f32.vlgmr.msra.gmra.mrb[26].mxu0 %vm859_vm3, %v8717_v19 }
0x1a1e   : > { %7885 = vmatpush3.bf16.msra.mxu0 %v7882_v6  ;;  %7420 = vmatprep.mubr.msk.f32.mxu0 %vm617_vm0, %v8627_v42 }
0x1a1f   : > { %7890 = vmatprep.subr.bf16.mxu0 %v8242_v41 }
0x1a21   : > { %7421 = vmatmul.mubr.msk.f32.vlgmr.msra.gmra.mrb[28].mxu0 %vm617_vm0, %v8635_v43 }
0x1a22   : > { %7441 = vmatprep.mubr.msk.f32.mxu0 %vm8243_vm2, %v8244_v60 }
0x1af0   : > { %v3144_v14 = vpop.f32.mrb[26].mxu0 }
0x1af1   : > { %v8765_v15 = vadd.f32 %v3214_v11, %v3144_v14  ;;  %v7408_v16 = vpop.f32.mrb[27].mxu0 }
0x1af4   : > { %v7422_v17 = vpop.f32.mrb[28].mxu0 }
0x1af5   : > { %v3295_v18 = vadd.f32 %v7422_v17, %v8381_v10  ;;  %v3289_v44 = vpop.f32.mrb[29].mxu0 }
0x1af6   : > { %v3290_v42 = vadd.f32 %v3289_v44, %v8379_v9 }
0x1af7   : > { %v3299_v45 = vsel %vm699_vm1, %v3295_v18, 0.0 }
0x1af8   : > { %v3298_v49 = vsel %vm699_vm1, %v3290_v42, 0.0  ;;  %v7897_v6 = vpack.c.bf16 %v3295_v18, %v3290_v42 }
0x1af9   : > { %v3300_v43 = vadd.f32 %v3299_v45, %v3298_v49 }
0x1afb   : > { %3301 = vadd.xlane.f32.xlu1 %v3300_v43 }
0x1b88   : > { %v3302_v50 = vpop.xlane.xlu1 %3301 }
0x1b89   : > { %v3303_v56 = vrot.slane %v3302_v50, 4 }
0x1b8b   : > { %v3304_v20 = vadd.f32 %v3303_v56, %v3302_v50 }
0x1b8d   : > { %v3305_v57 = vrot.slane %v3304_v20, 2 }
0x1b8f   : > { %v3306_v21 = vadd.f32 %v3305_v57, %v3304_v20 }
0x1b91   : > { %v3307_v22 = vrot.slane %v3306_v21, 1 }
0x1b93   : > { %v3308_v23 = vadd.f32 %v3307_v22, %v3306_v21  ;;  %v3600_v22 = vld [vmem:[%s8798_s21] sm:$0xff] }
0x1b95   : > { %8109 = vpush %v3308_v23  ;;  %v3601_v23 = vld [vmem:[%s8798_s21 + $0x8] sm:$0xff] }
0x1bc6   : > { %s8110_s24 = spop %8109 }
0x1bc7   : > { %s3310_s20 = smul.f32 0.0078125, %s8110_s24 }
0x1bc9   : > { %v3311_v10 = vstv %s3310_s20 }
0x1bca   : > { %v3312_v25 = vsub.f32 %v3290_v42, %v3311_v10  ;;  %v3313_v26 = vsub.f32 %v3295_v18, %v3311_v10 }
0x1bcc   : > { %v3314_v9 = vmul.f32 %v3312_v25, %v3312_v25  ;;  %v3315_v27 = vmul.f32 %v3313_v26, %v3313_v26 }
0x1bce   : > { %v3316_v40 = vsel %vm699_vm1, %v3314_v9, 0.0  ;;  %v3317_v29 = vsel %vm699_vm1, %v3315_v27, 0.0  ;;  %v3602_v27 = vld [vmem:[%s8798_s21 + $0x10] sm:$0xff] }
0x1bcf   : > { %v3318_v8 = vadd.f32 %v3317_v29, %v3316_v40  ;;  %v3603_v40 = vld [vmem:[%s8798_s21 + $0x18] sm:$0xff] }
0x1bd0   : > { %v7903_v29 = vpack.c.bf16 %v3603_v40, %v3602_v27  ;;  %v6794_v27 = vld [vmem:[%s8798_s21 + $0x58] sm:$0xff] }
0x1bd1   : > { %3319 = vadd.xlane.f32.xlu0 %v3318_v8  ;;  %v8808_v8 = vld [vmem:[%s9471_s10] sm:$0xff] }
0x1be7   : > { %3611 = vperm.xlu0 %8175, %v3590_v32   ;;  %v8817_v32 = vld [vmem:[%s9471_s10 + $0x8] sm:$0xff] }
0x1c5e   : > { %v3320_v33 = vpop.xlane.xlu0 %3319 }
0x1c5f   : > { %v3321_v31 = vrot.slane %v3320_v33, 4 }
0x1c61   : > { %v3322_v46 = vadd.f32 %v3321_v31, %v3320_v33 }
0x1c63   : > { %v3323_v48 = vrot.slane %v3322_v46, 2 }
0x1c65   : > { %v3324_v52 = vadd.f32 %v3323_v48, %v3322_v46 }
0x1c67   : > { %v3325_v53 = vrot.slane %v3324_v52, 1 }
0x1c69   : > { %v3326_v54 = vadd.f32 %v3325_v53, %v3324_v52  ;;  %v8828_v53 = vpop.permute.xlu0 %3611 }
0x1c6b   : > { %8111 = vpush %v3326_v54 }
0x1c9c   : > { %s8112_s23 = spop %8111 }
0x1c9d   : > { %s3328_s25 = smul.f32 0.0078125, %s8112_s23 }
0x1c9f   : > { %s3329_s26 = sadd.f32 1e-05, %s3328_s25 }
0x1ca1   : > { %v3330_v39 = vstv %s3329_s26 }
0x1ca2   : > { %8191 = vrsqrt.f32 %v3330_v39  ;;  %v6779_v39 = vld [vmem:[%s8798_s21 + $0x20] sm:$0xff] }
0x1cac   : > { %v8192_v55 = vpop.eup %8191 }
0x1cad   : > { %8113 = vpush %v8192_v55  ;;  %v6780_v55 = vld [vmem:[%s8798_s21 + $0x28] sm:$0xff] }
0x1cde   : > { %s8114_s0 = spop %8113 }
0x1cdf   : > { %v3333_v58 = vstv %s8114_s0 }
0x1ce0   : > { %v3334_v62 = vmul.f32 %v3333_v58, %v3312_v25  ;;  %v3335_v63 = vmul.f32 %v3333_v58, %v3313_v26  ;;  %v7899_v26 = vpack.c.bf16 %v3601_v23, %v3600_v22 }
0x1ce2   : > { %v3336_v0 = vmul.f32 %v8652_v61, %v3334_v62  ;;  %v3337_v2 = vmul.f32 %v8658_v28, %v3335_v63  ;;  %v3589_v61 = vld [vmem:[%s9472_s11] sm:$0xff] }
0x1ce3   : > { %3606 = vperm.xlu1 %8176, %v3589_v61  }
0x1ce4   : > { %v3338_v3 = vadd.f32 %v8664_v1, %v3336_v0  ;;  %v3339_v4 = vadd.f32 %v8670_v30, %v3337_v2  ;;  %v7920_v2 = vpack.c.bf16 %v6780_v55, %v6779_v39 }
0x1ce6   : > { %v7886_v5 = vpack.c.bf16 %v3339_v4, %v3338_v3 }
0x1ce8   : > { %7887 = vmatprep.subr.bf16.mxu1 %v7886_v5 }
0x1ce9   : > { %7889 = vmatpush3.bf16.msra.mxu1 %v7886_v5  ;;  %v6781_v5 = vld [vmem:[%s8798_s21 + $0x30] sm:$0xff] }
0x1cea   : > { %7896 = vmatprep.subr.bf16.mxu1 %v8242_v41 }
0x1cec   : > { %7428 = vmatmul.mubr.msk.f32.vlgmr.msra.gmra.mrb[42].mxu1 %vm617_vm0, %v8677_v34 }
0x1ced   : > { %7898 = vmatpush3.bf16.msra.mxu1 %v7897_v6  ;;  %7430 = vmatprep.mubr.msk.f32.mxu1 %vm617_vm0, %v8684_v36  ;;  %v6782_v6 = vld [vmem:[%s8798_s21 + $0x38] sm:$0xff] }
0x1cf0   : > { %7431 = vmatmul.mubr.msk.f32.gmra.mrb[44].mxu1 %vm617_vm0, %v8691_v37 }
0x1cf1   : > { %7448 = vmatprep.mubr.msk.f32.mxu1 %vm8243_vm2, %v8244_v60 }
0x1cf4   : > { %7449 = vmatmul.mubr.msk.f32.vlgmr.msra.gmra.mrb[46].mxu1 %vm617_vm0, %v8700_v38 }
0x1d62   : > { %v8826_v52 = vpop.permute.xlu1 %3606 }
0x1dbf   : > { %v7429_v28 = vpop.f32.mrb[42].mxu1 }
0x1dc0   : > { %v3426_v1 = vadd.f32 3.0, %v7429_v28  ;;  %v3406_v30 = vpop.f32.mrb[43].mxu1 }
0x1dc1   : > { %v3425_v34 = vadd.f32 3.0, %v3406_v30 }
0x1dc2   : > { %v3430_v36 = vmax.f32 %v3426_v1, 0.0 }
0x1dc3   : > { %v3429_v7 = vmax.f32 %v3425_v34, 0.0  ;;  %v7432_v11 = vpop.f32.mrb[44].mxu1 }
0x1dc4   : > { %v3434_v12 = vmin.f32 %v3430_v36, 6.0  ;;  %v3428_v37 = vadd.f32 3.0, %v7432_v11  ;;  %v3416_v14 = vpop.f32.mrb[45].mxu1 }
0x1dc5   : > { %v3433_v16 = vmin.f32 %v3429_v7, 6.0  ;;  %v3427_v17 = vadd.f32 3.0, %v3416_v14 }
0x1dc6   : > { %v3438_v18 = vmul.f32 %v7429_v28, %v3434_v12  ;;  %v3432_v44 = vmax.f32 %v3428_v37, 0.0  ;;  %v7924_v28 = vpack.c.bf16 %v6782_v6, %v6781_v5 }
0x1dc7   : > { %v3437_v42 = vmul.f32 %v3433_v16, %v3406_v30  ;;  %v3431_v45 = vmax.f32 %v3427_v17, 0.0 }
0x1dc8   : > { %v3442_v49 = vmul.f32 0.16666667, %v3438_v18  ;;  %v3436_v43 = vmin.f32 %v3432_v44, 6.0 }
0x1dc9   : > { %v3441_v50 = vmul.f32 0.16666667, %v3437_v42  ;;  %v3435_v56 = vmin.f32 %v3431_v45, 6.0 }
0x1dca   : > { %v3440_v20 = vmul.f32 %v7432_v11, %v3436_v43 }
0x1dcb   : > { %v7891_v57 = vpack.c.bf16 %v3442_v49, %v3441_v50  ;;  %v3439_v21 = vmul.f32 %v3435_v56, %v3416_v14  ;;  %v6791_v56 = vld [vmem:[%s8798_s21 + $0x40] sm:$0xff] }
0x1dcc   : > { %v3444_v10 = vmul.f32 0.16666667, %v3440_v20  ;;  %v6792_v20 = vld [vmem:[%s8798_s21 + $0x48] sm:$0xff] }
0x1dcd   : > { %v3443_v25 = vmul.f32 0.16666667, %v3439_v21  ;;  %7892 = vmatpush3.bf16.msra.mxu0 %v7891_v57 }
0x1dce   : > { %7893 = vmatprep.subr.bf16.mxu0 %v8242_v41 }
0x1dcf   : > { %v7894_v9 = vpack.c.bf16 %v3444_v10, %v3443_v25  ;;  %v7941_v10 = vpack.c.bf16 %v6792_v20, %v6791_v56  ;;  %v8921_v56 = vld [vmem:[%s9473_s12] sm:$0xff]  ;;  %v8926_v20 = vld [vmem:[%s9473_s12 + $0x8] sm:$0xff] }
0x1dd1   : > { %7895 = vmatpush3.bf16.msra.mxu0 %v7894_v9  ;;  %v6793_v9 = vld [vmem:[%s8798_s21 + $0x50] sm:$0xff] }
0x1dd2   : > { %7900 = vmatprep.subr.bf16.mxu0 %v7899_v26 }
0x1dd4   : > { %7442 = vmatmul.mubr.msk.f32.vlgmr.msra.gmra.mrb[30].mxu0 %vm859_vm3, %v8717_v19  ;;  %v3581_v19 = vpop.f32.mrb[46].mxu1 }
0x1dd5   : > { %7902 = vmatpush3.bf16.msra.mxu0 %v7899_v26  ;;  %7459 = vmatprep.mubr.msk.f32.mxu0 %vm859_vm3, %v8808_v8  ;;  %v7450_v33 = vpop.f32.mrb[47].mxu1 }
0x1dd6   : > { %7904 = vmatprep.subr.bf16.mxu0 %v7903_v29 }
0x1dd9   : > { %7906 = vmatpush3.bf16.msra.mxu0 %v7903_v29  ;;  %v7945_v29 = vpack.c.bf16 %v6794_v27, %v6793_v9 }
0x1dda   : > { %7917 = vmatprep.subr.bf16.mxu0 %v8242_v41 }
0x1ddc   : > { %7460 = vmatmul.mubr.msk.f32.vlgmr.msra.gmra.mrb[32].mxu0 %vm859_vm3, %v8817_v32 }
0x1ddd   : > { %7487 = vmatprep.mubr.msk.f32.mxu0 %vm8243_vm2, %v8244_v60 }
0x1ea7   : > { %v3511_v31 = vpop.f32.mrb[30].mxu0 }
0x1ea8   : > { %v7443_v46 = vpop.f32.mrb[31].mxu0  ;;  %v8824_v48 = vadd.f32 %v3581_v19, %v3511_v31 }
0x1eaf   : > { %v7461_v54 = vpop.f32.mrb[32].mxu0 }
0x1eb0   : > { %v3692_v58 = vadd.f32 %v7461_v54, %v8828_v53  ;;  %v3686_v62 = vpop.f32.mrb[33].mxu0 }
0x1eb1   : > { %v3687_v63 = vadd.f32 %v3686_v62, %v8826_v52 }
0x1eb2   : > { %v3697_v0 = vsel %vm3695_vm4, %v3692_v58, 0.0 }
0x1eb3   : > { %v7918_v3 = vpack.c.bf16 %v3692_v58, %v3687_v63  ;;  %v3696_v4 = vsel %vm3695_vm4, %v3687_v63, 0.0 }
0x1eb4   : > { %v3698_v61 = vadd.f32 %v3697_v0, %v3696_v4 }
0x1eb5   : > { %7919 = vmatpush3.bf16.msra.mxu0 %v7918_v3 }
0x1eb6   : > { %3699 = vadd.xlane.f32.xlu1 %v3698_v61  ;;  %7921 = vmatprep.subr.bf16.mxu0 %v7920_v2 }
0x1eb8   : > { %7488 = vmatmul.mubr.msk.f32.vlgmr.msra.gmra.mrb[34].mxu0 %vm617_vm0, %v8700_v38 }
0x1eb9   : > { %7923 = vmatpush3.bf16.msra.mxu0 %v7920_v2  ;;  %7498 = vmatprep.mubr.msk.f32.mxu0 %vm859_vm3, %v8808_v8 }
0x1eba   : > { %7925 = vmatprep.subr.bf16.mxu0 %v7924_v28 }
0x1ebd   : > { %7927 = vmatpush3.bf16.msra.mxu0 %v7924_v28 }
0x1ebe   : > { %7938 = vmatprep.subr.bf16.mxu0 %v8242_v41 }
0x1ec0   : > { %7499 = vmatmul.mubr.msk.f32.vlgmr.msra.gmra.mrb[36].mxu0 %vm859_vm3, %v8817_v32 }
0x1ec1   : > { %7526 = vmatprep.mubr.msk.f32.mxu0 %vm8243_vm2, %v8244_v60 }
0x1f43   : > { %v3700_v1 = vpop.xlane.xlu1 %3699 }
0x1f44   : > { %v3701_v30 = vrot.slane %v3700_v1, 4 }
0x1f46   : > { %v3702_v34 = vadd.f32 %v3701_v30, %v3700_v1 }
0x1f48   : > { %v3703_v36 = vrot.slane %v3702_v34, 2 }
0x1f4a   : > { %v3704_v7 = vadd.f32 %v3703_v36, %v3702_v34  ;;  %v6803_v34 = vld [vmem:[%s8798_s21 + $0x60] sm:$0xff]  ;;  %v6804_v36 = vld [vmem:[%s8798_s21 + $0x68] sm:$0xff] }
0x1f4c   : > { %v3705_v11 = vrot.slane %v3704_v7, 1 }
0x1f4e   : > { %v3706_v12 = vadd.f32 %v3705_v11, %v3704_v7 }
0x1f50   : > { %8115 = vpush %v3706_v12 }
0x1f81   : > { %s8116_s26 = spop %8115 }
0x1f82   : > { %s3708_s0 = smul.f32 0.015625, %s8116_s26 }
0x1f84   : > { %v3709_v37 = vstv %s3708_s0 }
0x1f85   : > { %v8847_v14 = vsub.f32 %v3687_v63, %v3709_v37  ;;  %v8849_v16 = vsub.f32 %v3692_v58, %v3709_v37  ;;  %v8887_v58 = vld [vmem:[%s9475_s14] sm:$0xff] }
0x1f86   : > { %7466 = vmatprep.mubr.msk.f32.mxu1 %vm617_vm0, %v8887_v58 }
0x1f87   : > { %v3712_v17 = vmul.f32 %v8847_v14, %v8847_v14  ;;  %v3713_v18 = vmul.f32 %v8849_v16, %v8849_v16 }
0x1f89   : > { %v3714_v44 = vsel %vm3695_vm4, %v3712_v17, 0.0  ;;  %v3715_v42 = vsel %vm3695_vm4, %v3713_v18, 0.0  ;;  %v7962_v17 = vpack.c.bf16 %v6804_v36, %v6803_v34  ;;  %v6815_v34 = vld [vmem:[%s8798_s21 + $0x80] sm:$0xff]  ;;  %v6816_v36 = vld [vmem:[%s8798_s21 + $0x88] sm:$0xff] }
0x1f8a   : > { %v3716_v45 = vadd.f32 %v3715_v42, %v3714_v44  ;;  %v6805_v42 = vld [vmem:[%s8798_s21 + $0x70] sm:$0xff] }
0x1f8b   : > { %v8857_v49 = vpop.f32.mrb[34].mxu0 }
0x1f8c   : > { %3717 = vadd.xlane.f32.xlu0 %v3716_v45  ;;  %v7489_v43 = vpop.f32.mrb[35].mxu0  ;;  %v6806_v45 = vld [vmem:[%s8798_s21 + $0x78] sm:$0xff] }
0x1f93   : > { %v7500_v50 = vpop.f32.mrb[36].mxu0 }
0x1f94   : > { %v8862_v57 = vadd.f32 %v7500_v50, %v8828_v53  ;;  %v4072_v21 = vpop.f32.mrb[37].mxu0  ;;  %v7966_v50 = vpack.c.bf16 %v6806_v45, %v6805_v42 }
0x1f95   : > { %v8865_v22 = vadd.f32 %v4072_v21, %v8826_v52 }
0x1f96   : > { %v4082_v23 = vsel %vm3695_vm4, %v8862_v57, 0.0 }
0x1f97   : > { %v7939_v25 = vpack.c.bf16 %v8862_v57, %v8865_v22  ;;  %v4081_v26 = vsel %vm3695_vm4, %v8865_v22, 0.0 }
0x1f98   : > { %v4083_v40 = vadd.f32 %v4082_v23, %v4081_v26  ;;  %v8938_v26 = vld [vmem:[%s9474_s13 + $0x8] sm:$0xff] }
0x1f99   : > { %7940 = vmatpush3.bf16.msra.mxu0 %v7939_v25  ;;  %v8933_v25 = vld [vmem:[%s9474_s13] sm:$0xff] }
0x1f9a   : > { %4084 = vadd.xlane.f32.xlu1 %v4083_v40  ;;  %7942 = vmatprep.subr.bf16.mxu0 %v7941_v10 }
0x1f9c   : > { %7527 = vmatmul.mubr.msk.f32.vlgmr.msra.gmra.mrb[38].mxu0 %vm617_vm0, %v8700_v38 }
0x1f9d   : > { %7944 = vmatpush3.bf16.msra.mxu0 %v7941_v10  ;;  %7537 = vmatprep.mubr.msk.f32.mxu0 %vm859_vm3, %v8808_v8 }
0x1f9e   : > { %7946 = vmatprep.subr.bf16.mxu0 %v7945_v29 }
0x1fa1   : > { %7948 = vmatpush3.bf16.msra.mxu0 %v7945_v29 }
0x1fa2   : > { %7959 = vmatprep.subr.bf16.mxu0 %v8242_v41 }
0x1fa4   : > { %7538 = vmatmul.mubr.msk.f32.vlgmr.msra.gmra.mrb[40].mxu0 %vm859_vm3, %v8817_v32 }
0x1fa5   : > { %7565 = vmatprep.mubr.msk.f32.mxu0 %vm8243_vm2, %v8244_v60 }
0x2019   : > { %v3718_v19 = vpop.xlane.xlu0 %3717 }
0x201a   : > { %v3719_v33 = vrot.slane %v3718_v19, 4 }
0x201c   : > { %v3720_v31 = vadd.f32 %v3719_v33, %v3718_v19 }
0x201e   : > { %v3721_v46 = vrot.slane %v3720_v31, 2 }
0x2020   : > { %v3722_v54 = vadd.f32 %v3721_v46, %v3720_v31 }
0x2022   : > { %v3723_v39 = vrot.slane %v3722_v54, 1 }
0x2024   : > { %v3724_v55 = vadd.f32 %v3723_v39, %v3722_v54 }
0x2026   : > { %8117 = vpush %v3724_v55  ;;  %v8964_v55 = vld [vmem:[%s9475_s14 + $0x10] sm:$0xff] }
0x2027   : > { %v4085_v62 = vpop.xlane.xlu1 %4084 }
0x2028   : > { %v4086_v63 = vrot.slane %v4085_v62, 4 }
0x202a   : > { %v4087_v0 = vadd.f32 %v4086_v63, %v4085_v62  ;;  %v8974_v62 = vld [vmem:[%s9475_s14 + $0x18] sm:$0xff] }
0x202c   : > { %v4088_v2 = vrot.slane %v4087_v0, 2 }
0x202e   : > { %v4089_v4 = vadd.f32 %v4088_v2, %v4087_v0 }
0x2030   : > { %v4090_v5 = vrot.slane %v4089_v4, 1 }
0x2032   : > { %v4091_v61 = vadd.f32 %v4090_v5, %v4089_v4 }
0x2057   : > { %s8118_s1 = spop %8117 }
0x2058   : > { %s3726_s24 = smul.f32 0.015625, %s8118_s1 }
0x205a   : > { %s3727_s20 = sadd.f32 1e-05, %s3726_s24 }
0x205c   : > { %v3728_v3 = vstv %s3727_s20 }
0x205d   : > { %8193 = vrsqrt.f32 %v3728_v3 }
0x2067   : > { %v8194_v6 = vpop.eup %8193 }
0x2068   : > { %8119 = vpush %v8194_v6 }
0x2069   : > { %8121 = vpush %v4091_v61 }
0x206f   : > { %v8891_v28 = vpop.f32.mrb[38].mxu0 }
0x2070   : > { %v7528_v1 = vpop.f32.mrb[39].mxu0 }
0x2077   : > { %v7539_v30 = vpop.f32.mrb[40].mxu0 }
0x2078   : > { %v8896_v7 = vadd.f32 %v7539_v30, %v8828_v53  ;;  %v4441_v11 = vpop.f32.mrb[41].mxu0 }
0x2079   : > { %v8899_v12 = vadd.f32 %v4441_v11, %v8826_v52 }
0x207a   : > { %v4451_v37 = vsel %vm3695_vm4, %v8896_v7, 0.0 }
0x207b   : > { %v7960_v18 = vpack.c.bf16 %v8896_v7, %v8899_v12  ;;  %v4450_v44 = vsel %vm3695_vm4, %v8899_v12, 0.0 }
0x207c   : > { %v4452_v43 = vadd.f32 %v4451_v37, %v4450_v44  ;;  %v7983_v44 = vpack.c.bf16 %v6816_v36, %v6815_v34 }
0x207d   : > { %7961 = vmatpush3.bf16.msra.mxu0 %v7960_v18 }
0x207e   : > { %4453 = vadd.xlane.f32.xlu1 %v4452_v43  ;;  %7963 = vmatprep.subr.bf16.mxu0 %v7962_v17  ;;  %v6817_v43 = vld [vmem:[%s8798_s21 + $0x90] sm:$0xff] }
0x2080   : > { %7566 = vmatmul.mubr.msk.f32.vlgmr.msra.gmra.mrb[42].mxu0 %vm617_vm0, %v8700_v38 }
0x2081   : > { %7965 = vmatpush3.bf16.msra.mxu0 %v7962_v17  ;;  %7576 = vmatprep.mubr.msk.f32.mxu0 %vm859_vm3, %v8808_v8 }
0x2082   : > { %7967 = vmatprep.subr.bf16.mxu0 %v7966_v50 }
0x2085   : > { %7969 = vmatpush3.bf16.msra.mxu0 %v7966_v50  ;;  %v6818_v50 = vld [vmem:[%s8798_s21 + $0x98] sm:$0xff] }
0x2086   : > { %7980 = vmatprep.subr.bf16.mxu0 %v8242_v41 }
0x2088   : > { %7577 = vmatmul.mubr.msk.f32.vlgmr.msra.gmra.mrb[44].mxu0 %vm859_vm3, %v8817_v32 }
0x2089   : > { %7604 = vmatprep.mubr.msk.f32.mxu0 %vm8243_vm2, %v8244_v60 }
0x2099   : > { %s8120_s29 = spop %8119 }
0x209a   : > { %v3731_v21 = vstv %s8120_s29  ;;  %s8122_s0 = spop %8121 }
0x209b   : > { %v3732_v23 = vmul.f32 %v3731_v21, %v8847_v14  ;;  %v3733_v10 = vmul.f32 %v3731_v21, %v8849_v16  ;;  %s4093_s30 = smul.f32 0.015625, %s8122_s0 }
0x209d   : > { %v3734_v9 = vmul.f32 %v3732_v23, %v8921_v56  ;;  %v3735_v27 = vmul.f32 %v3733_v10, %v8926_v20  ;;  %v4094_v40 = vstv %s4093_s30  ;;  %v7987_v23 = vpack.c.bf16 %v6818_v50, %v6817_v43 }
0x209e   : > { %v8943_v14 = vsub.f32 %v8865_v22, %v4094_v40  ;;  %v8946_v16 = vsub.f32 %v8862_v57, %v4094_v40  ;;  %v8959_v57 = vld [vmem:[%s9475_s14 + $0x8] sm:$0xff] }
0x209f   : > { %v3736_v29 = vadd.f32 %v3734_v9, %v8933_v25  ;;  %v3737_v19 = vadd.f32 %v3735_v27, %v8938_v26 }
0x20a0   : > { %v4097_v33 = vmul.f32 %v8943_v14, %v8943_v14  ;;  %v4098_v31 = vmul.f32 %v8946_v16, %v8946_v16 }
0x20a1   : > { %v7907_v46 = vpack.c.bf16 %v3737_v19, %v3736_v29 }
0x20a2   : > { %v4099_v54 = vsel %vm3695_vm4, %v4097_v33, 0.0  ;;  %v4100_v39 = vsel %vm3695_vm4, %v4098_v31, 0.0 }
0x20a3   : > { %7908 = vmatprep.subr.bf16.mxu1 %v7907_v46  ;;  %v4101_v22 = vadd.f32 %v4100_v39, %v4099_v54 }
0x20a4   : > { %7910 = vmatpush3.bf16.msra.mxu1 %v7907_v46 }
0x20a5   : > { %4102 = vadd.xlane.f32.xlu0 %v4101_v22  ;;  %7911 = vmatprep.subr.bf16.mxu1 %v8242_v41 }
0x20a7   : > { %7467 = vmatmul.mubr.msk.f32.vlgmr.msra.gmra.mrb[48].mxu1 %vm617_vm0, %v8959_v57 }
0x20a8   : > { %7469 = vmatprep.mubr.msk.f32.mxu1 %vm617_vm0, %v8964_v55 }
0x20ab   : > { %7470 = vmatmul.mubr.msk.f32.gmra.mrb[50].mxu1 %vm617_vm0, %v8974_v62 }
0x20ac   : > { %7480 = vmatprep.mubr.msk.f32.mxu1 %vm8243_vm2, %v8244_v60 }
0x210b   : > { %v4454_v10 = vpop.xlane.xlu1 %4453 }
0x210c   : > { %v4455_v9 = vrot.slane %v4454_v10, 4 }
0x210e   : > { %v4456_v27 = vadd.f32 %v4455_v9, %v4454_v10 }
0x2132   : > { %v4103_v63 = vpop.xlane.xlu0 %4102 }
0x2133   : > { %v4104_v0 = vrot.slane %v4103_v63, 4 }
0x2135   : > { %v4105_v2 = vadd.f32 %v4104_v0, %v4103_v63 }
0x2137   : > { %v4106_v3 = vrot.slane %v4105_v2, 2 }
0x2139   : > { %v4107_v4 = vadd.f32 %v4106_v3, %v4105_v2 }
0x213b   : > { %v4108_v5 = vrot.slane %v4107_v4, 1 }
0x213d   : > { %v4109_v6 = vadd.f32 %v4108_v5, %v4107_v4 }
0x213f   : > { %8123 = vpush %v4109_v6 }
0x2153   : > { %v8980_v61 = vpop.f32.mrb[42].mxu0 }
0x2154   : > { %v7567_v1 = vpop.f32.mrb[43].mxu0 }
0x215b   : > { %v7578_v30 = vpop.f32.mrb[44].mxu0 }
0x215c   : > { %v8985_v11 = vadd.f32 %v7578_v30, %v8828_v53  ;;  %v4810_v37 = vpop.f32.mrb[45].mxu0 }
0x215d   : > { %v8988_v17 = vadd.f32 %v4810_v37, %v8826_v52 }
0x215e   : > { %v4820_v18 = vsel %vm3695_vm4, %v8985_v11, 0.0 }
0x215f   : > { %v7981_v42 = vpack.c.bf16 %v8985_v11, %v8988_v17  ;;  %v4819_v45 = vsel %vm3695_vm4, %v8988_v17, 0.0 }
0x2160   : > { %v4821_v21 = vadd.f32 %v4820_v18, %v4819_v45 }
0x2161   : > { %7982 = vmatpush3.bf16.msra.mxu0 %v7981_v42 }
0x2162   : > { %4822 = vadd.xlane.f32.xlu1 %v4821_v21  ;;  %7984 = vmatprep.subr.bf16.mxu0 %v7983_v44 }
0x2164   : > { %7605 = vmatmul.mubr.msk.f32.vlgmr.msra.gmra.mrb[46].mxu0 %vm617_vm0, %v8700_v38  ;;  %v4457_v38 = vrot.slane %v4456_v27, 2 }
0x2165   : > { %7986 = vmatpush3.bf16.msra.mxu0 %v7983_v44  ;;  %7615 = vmatprep.mubr.msk.f32.mxu0 %vm859_vm3, %v8808_v8 }
0x2166   : > { %7988 = vmatprep.subr.bf16.mxu0 %v7987_v23  ;;  %v4458_v29 = vadd.f32 %v4457_v38, %v4456_v27  ;;  %v9011_v27 = vld [vmem:[%s9476_s15] sm:$0x1] }
0x2168   : > { %v4459_v54 = vrot.slane %v4458_v29, 1 }
0x2169   : > { %7990 = vmatpush3.bf16.msra.mxu0 %v7987_v23 }
0x216a   : > { %8001 = vmatprep.subr.bf16.mxu0 %v8242_v41  ;;  %v4460_v1 = vadd.f32 %v4459_v54, %v4458_v29 }
0x216c   : > { %7616 = vmatmul.mubr.msk.f32.vlgmr.msra.gmra.mrb[48].mxu0 %vm859_vm3, %v8817_v32 }
0x216d   : > { %7643 = vmatprep.mubr.msk.f32.mxu0 %vm8243_vm2, %v8244_v60 }
0x2170   : > { %s8124_s30 = spop %8123 }
0x2171   : > { %s4111_s19 = smul.f32 0.015625, %s8124_s30 }
0x2173   : > { %s4112_s1 = sadd.f32 1e-05, %s4111_s19 }
0x2175   : > { %v4113_v40 = vstv %s4112_s1 }
0x2176   : > { %8195 = vrsqrt.f32 %v4113_v40 }
0x217a   : > { %v7468_v19 = vpop.f32.mrb[48].mxu1 }
0x217b   : > { %v3836_v33 = vadd.f32 3.0, %v7468_v19  ;;  %v3816_v31 = vpop.f32.mrb[49].mxu1 }
0x217c   : > { %v3835_v46 = vadd.f32 3.0, %v3816_v31 }
0x217d   : > { %v3840_v39 = vmax.f32 %v3836_v33, 0.0 }
0x217e   : > { %v3839_v22 = vmax.f32 %v3835_v46, 0.0  ;;  %v7471_v63 = vpop.f32.mrb[50].mxu1 }
0x217f   : > { %v3844_v0 = vmin.f32 %v3840_v39, 6.0  ;;  %v3838_v2 = vadd.f32 3.0, %v7471_v63  ;;  %v3826_v3 = vpop.f32.mrb[51].mxu1 }
0x2180   : > { %v8196_v4 = vpop.eup %8195  ;;  %v3843_v5 = vmin.f32 %v3839_v22, 6.0  ;;  %v3837_v6 = vadd.f32 3.0, %v3826_v3 }
0x2181   : > { %v3848_v30 = vmul.f32 %v7468_v19, %v3844_v0  ;;  %v3842_v34 = vmax.f32 %v3838_v2, 0.0  ;;  %8125 = vpush %v8196_v4 }
0x2182   : > { %v3847_v36 = vmul.f32 %v3843_v5, %v3816_v31  ;;  %v3841_v37 = vmax.f32 %v3837_v6, 0.0  ;;  %8127 = vpush %v4460_v1  ;;  %v6827_v5 = vld [vmem:[%s8798_s21 + $0xa0] sm:$0xff]  ;;  %v6828_v6 = vld [vmem:[%s8798_s21 + $0xa8] sm:$0xff] }
0x2183   : > { %v3852_v18 = vmul.f32 0.16666667, %v3848_v30  ;;  %v3846_v44 = vmin.f32 %v3842_v34, 6.0 }
0x2184   : > { %v3851_v42 = vmul.f32 0.16666667, %v3847_v36  ;;  %v3845_v45 = vmin.f32 %v3841_v37, 6.0  ;;  %v8004_v37 = vpack.c.bf16 %v6828_v6, %v6827_v5 }
0x2185   : > { %v3850_v43 = vmul.f32 %v7471_v63, %v3846_v44 }
0x2186   : > { %v7912_v50 = vpack.c.bf16 %v3852_v18, %v3851_v42  ;;  %v3849_v21 = vmul.f32 %v3845_v45, %v3826_v3  ;;  %v6829_v42 = vld [vmem:[%s8798_s21 + $0xb0] sm:$0xff]  ;;  %v6830_v45 = vld [vmem:[%s8798_s21 + $0xb8] sm:$0xff] }
0x2187   : > { %v3854_v23 = vmul.f32 0.16666667, %v3850_v43 }
0x2188   : > { %v3853_v10 = vmul.f32 0.16666667, %v3849_v21  ;;  %7913 = vmatpush3.bf16.msra.mxu1 %v7912_v50  ;;  %v8008_v50 = vpack.c.bf16 %v6830_v45, %v6829_v42  ;;  %v9065_v21 = vld [vmem:[%s9483_s18] sm:$0x1] }
0x2189   : > { %7914 = vmatprep.subr.bf16.mxu1 %v8242_v41 }
0x218a   : > { %v7915_v9 = vpack.c.bf16 %v3854_v23, %v3853_v10 }
0x218c   : > { %7916 = vmatpush3.bf16.msra.mxu1 %v7915_v9 }
0x218f   : > { %7481 = vmatmul.mubr.msk.f32.vlgmr.msra.gmra.mrb[52].mxu1 %vm859_vm3, %v9011_v27 }
0x2190   : > { %7505 = vmatprep.mubr.msk.f32.mxu1 %vm617_vm0, %v8887_v58 }
0x21b2   : > { %s8126_s29 = spop %8125 }
0x21b3   : > { %v4116_v38 = vstv %s8126_s29  ;;  %s8128_s22 = spop %8127 }
0x21b4   : > { %v4117_v40 = vmul.f32 %v4116_v38, %v8943_v14  ;;  %v4118_v29 = vmul.f32 %v4116_v38, %v8946_v16  ;;  %s4462_s23 = smul.f32 0.015625, %s8128_s22 }
0x21b6   : > { %v4119_v19 = vmul.f32 %v4117_v40, %v8921_v56  ;;  %v4120_v33 = vmul.f32 %v4118_v29, %v8926_v20  ;;  %v4463_v31 = vstv %s4462_s23 }
0x21b7   : > { %v9022_v46 = vsub.f32 %v8899_v12, %v4463_v31  ;;  %v9025_v54 = vsub.f32 %v8896_v7, %v4463_v31 }
0x21b8   : > { %v4121_v39 = vadd.f32 %v4119_v19, %v8933_v25  ;;  %v4122_v22 = vadd.f32 %v4120_v33, %v8938_v26 }
0x21b9   : > { %v4466_v14 = vmul.f32 %v9022_v46, %v9022_v46  ;;  %v4467_v16 = vmul.f32 %v9025_v54, %v9025_v54 }
0x21ba   : > { %v7928_v63 = vpack.c.bf16 %v4122_v22, %v4121_v39 }
0x21bb   : > { %v4468_v0 = vsel %vm3695_vm4, %v4466_v14, 0.0  ;;  %v4469_v12 = vsel %vm3695_vm4, %v4467_v16, 0.0 }
0x21bc   : > { %7929 = vmatprep.subr.bf16.mxu1 %v7928_v63  ;;  %v4470_v7 = vadd.f32 %v4469_v12, %v4468_v0 }
0x21bd   : > { %7931 = vmatpush3.bf16.msra.mxu1 %v7928_v63 }
0x21be   : > { %4471 = vadd.xlane.f32.xlu0 %v4470_v7  ;;  %7932 = vmatprep.subr.bf16.mxu1 %v8242_v41 }
0x21c0   : > { %7506 = vmatmul.mubr.msk.f32.vlgmr.msra.gmra.mrb[54].mxu1 %vm617_vm0, %v8959_v57 }
0x21c1   : > { %7508 = vmatprep.mubr.msk.f32.mxu1 %vm617_vm0, %v8964_v55 }
0x21c4   : > { %7509 = vmatmul.mubr.msk.f32.gmra.mrb[56].mxu1 %vm617_vm0, %v8974_v62 }
0x21c5   : > { %7519 = vmatprep.mubr.msk.f32.mxu1 %vm8243_vm2, %v8244_v60 }
0x21ef   : > { %v4823_v22 = vpop.xlane.xlu1 %4822 }
0x21f0   : > { %v4824_v14 = vrot.slane %v4823_v22, 4 }
0x21f2   : > { %v4825_v16 = vadd.f32 %v4824_v14, %v4823_v22 }
0x21f4   : > { %v4826_v63 = vrot.slane %v4825_v16, 2 }
0x21f6   : > { %v4827_v12 = vadd.f32 %v4826_v63, %v4825_v16 }
0x21f8   : > { %v4828_v6 = vrot.slane %v4827_v12, 1 }
0x2237   : > { %v9044_v2 = vpop.f32.mrb[46].mxu0 }
0x2238   : > { %v7606_v3 = vpop.f32.mrb[47].mxu0 }
0x223f   : > { %v7617_v4 = vpop.f32.mrb[48].mxu0 }
0x2240   : > { %v9049_v1 = vadd.f32 %v7617_v4, %v8828_v53  ;;  %v5179_v30 = vpop.f32.mrb[49].mxu0 }
0x2241   : > { %v9052_v34 = vadd.f32 %v5179_v30, %v8826_v52 }
0x2242   : > { %v5189_v36 = vsel %vm3695_vm4, %v9049_v1, 0.0 }
0x2243   : > { %v8002_v18 = vpack.c.bf16 %v9049_v1, %v9052_v34  ;;  %v5188_v44 = vsel %vm3695_vm4, %v9052_v34, 0.0 }
0x2244   : > { %v5190_v43 = vadd.f32 %v5189_v36, %v5188_v44 }
0x2245   : > { %8003 = vmatpush3.bf16.msra.mxu0 %v8002_v18 }
0x2246   : > { %5191 = vadd.xlane.f32.xlu1 %v5190_v43  ;;  %8005 = vmatprep.subr.bf16.mxu0 %v8004_v37 }
0x2248   : > { %7644 = vmatmul.mubr.msk.f32.vlgmr.msra.gmra.mrb[50].mxu0 %vm617_vm0, %v9065_v21 }
0x2249   : > { %8007 = vmatpush3.bf16.msra.mxu0 %v8004_v37  ;;  %7654 = vmatprep.mubr.msk.f32.mxu0 %vm859_vm3, %v8808_v8 }
0x224a   : > { %8009 = vmatprep.subr.bf16.mxu0 %v8008_v50 }
0x224b   : > { %v4472_v23 = vpop.xlane.xlu0 %4471 }
0x224c   : > { %v4473_v10 = vrot.slane %v4472_v23, 4 }
0x224d   : > { %8011 = vmatpush3.bf16.msra.mxu0 %v8008_v50  ;;  %v4829_v50 = vadd.f32 %v4828_v6, %v4827_v12 }
0x224e   : > { %v4474_v9 = vadd.f32 %v4473_v10, %v4472_v23  ;;  %8022 = vmatprep.subr.bf16.mxu0 %v8242_v41 }
0x2250   : > { %v4475_v38 = vrot.slane %v4474_v9, 2  ;;  %7655 = vmatmul.mubr.msk.f32.vlgmr.msra.gmra.mrb[52].mxu0 %vm859_vm3, %v8817_v32 }
0x2251   : > { %7682 = vmatprep.mubr.msk.f32.mxu0 %vm8243_vm2, %v8244_v60 }
0x2252   : > { %v4476_v40 = vadd.f32 %v4475_v38, %v4474_v9 }
0x2254   : > { %v4477_v29 = vrot.slane %v4476_v40, 1 }
0x2256   : > { %v4478_v19 = vadd.f32 %v4477_v29, %v4476_v40 }
0x2258   : > { %8129 = vpush %v4478_v19 }
0x2262   : > { %v3924_v33 = vpop.f32.mrb[52].mxu1 }
0x2263   : > { %v9077_v31 = vadd.f32 %v8857_v49, %v3924_v33  ;;  %v7482_v39 = vpop.f32.mrb[53].mxu1 }
0x2289   : > { %s8130_s0 = spop %8129 }
0x228a   : > { %s4480_s30 = smul.f32 0.015625, %s8130_s0 }
0x228c   : > { %s4481_s19 = sadd.f32 1e-05, %s4480_s30 }
0x228e   : > { %v4482_v0 = vstv %s4481_s19 }
0x228f   : > { %8197 = vrsqrt.f32 %v4482_v0 }
0x2293   : > { %v7507_v7 = vpop.f32.mrb[54].mxu1 }
0x2294   : > { %v4209_v3 = vadd.f32 3.0, %v7507_v7  ;;  %v4189_v4 = vpop.f32.mrb[55].mxu1 }
0x2295   : > { %v4208_v5 = vadd.f32 3.0, %v4189_v4 }
0x2296   : > { %v4213_v30 = vmax.f32 %v4209_v3, 0.0 }
0x2297   : > { %v4212_v36 = vmax.f32 %v4208_v5, 0.0  ;;  %v7510_v49 = vpop.f32.mrb[56].mxu1 }
0x2298   : > { %v4217_v37 = vmin.f32 %v4213_v30, 6.0  ;;  %v4211_v18 = vadd.f32 3.0, %v7510_v49  ;;  %v4199_v44 = vpop.f32.mrb[57].mxu1 }
0x2299   : > { %v8198_v42 = vpop.eup %8197  ;;  %v4216_v45 = vmin.f32 %v4212_v36, 6.0  ;;  %v4210_v43 = vadd.f32 3.0, %v4199_v44 }
0x229a   : > { %v4221_v23 = vmul.f32 %v7507_v7, %v4217_v37  ;;  %v4215_v10 = vmax.f32 %v4211_v18, 0.0  ;;  %8131 = vpush %v8198_v42 }
0x229b   : > { %v4220_v9 = vmul.f32 %v4216_v45, %v4189_v4  ;;  %v4214_v38 = vmax.f32 %v4210_v43, 0.0  ;;  %8133 = vpush %v4829_v50  ;;  %v6839_v50 = vld [vmem:[%s8798_s21 + $0xc0] sm:$0xff] }
0x229c   : > { %v4225_v40 = vmul.f32 0.16666667, %v4221_v23  ;;  %v4219_v29 = vmin.f32 %v4215_v10, 6.0  ;;  %v6840_v23 = vld [vmem:[%s8798_s21 + $0xc8] sm:$0xff] }
0x229d   : > { %v4224_v19 = vmul.f32 0.16666667, %v4220_v9  ;;  %v4218_v33 = vmin.f32 %v4214_v38, 6.0 }
0x229e   : > { %v4223_v39 = vmul.f32 %v7510_v49, %v4219_v29  ;;  %v8025_v29 = vpack.c.bf16 %v6840_v23, %v6839_v50 }
0x229f   : > { %v7933_v22 = vpack.c.bf16 %v4225_v40, %v4224_v19  ;;  %v4222_v14 = vmul.f32 %v4218_v33, %v4199_v44 }
0x22a0   : > { %v4227_v16 = vmul.f32 0.16666667, %v4223_v39  ;;  %v6841_v39 = vld [vmem:[%s8798_s21 + $0xd0] sm:$0xff] }
0x22a1   : > { %v4226_v63 = vmul.f32 0.16666667, %v4222_v14  ;;  %7934 = vmatpush3.bf16.msra.mxu1 %v7933_v22  ;;  %v6842_v22 = vld [vmem:[%s8798_s21 + $0xd8] sm:$0xff] }
0x22a2   : > { %7935 = vmatprep.subr.bf16.mxu1 %v8242_v41 }
0x22a3   : > { %v7936_v0 = vpack.c.bf16 %v4227_v16, %v4226_v63  ;;  %v8029_v16 = vpack.c.bf16 %v6842_v22, %v6841_v39 }
0x22a5   : > { %7937 = vmatpush3.bf16.msra.mxu1 %v7936_v0 }
0x22a8   : > { %7520 = vmatmul.mubr.msk.f32.vlgmr.msra.gmra.mrb[58].mxu1 %vm859_vm3, %v9011_v27 }
0x22a9   : > { %7544 = vmatprep.mubr.msk.f32.mxu1 %vm617_vm0, %v8887_v58 }
0x22cb   : > { %s8132_s1 = spop %8131 }
0x22cc   : > { %v4485_v12 = vstv %s8132_s1  ;;  %s8134_s24 = spop %8133 }
0x22cd   : > { %v4486_v7 = vmul.f32 %v4485_v12, %v9022_v46  ;;  %v4487_v3 = vmul.f32 %v4485_v12, %v9025_v54  ;;  %s4831_s20 = smul.f32 0.015625, %s8134_s24 }
0x22cf   : > { %v4488_v4 = vmul.f32 %v4486_v7, %v8921_v56  ;;  %v4489_v5 = vmul.f32 %v4487_v3, %v8926_v20  ;;  %v4832_v6 = vstv %s4831_s20 }
0x22d0   : > { %v9089_v30 = vsub.f32 %v8988_v17, %v4832_v6  ;;  %v9092_v36 = vsub.f32 %v8985_v11, %v4832_v6 }
0x22d1   : > { %v4490_v49 = vadd.f32 %v4488_v4, %v8933_v25  ;;  %v4491_v37 = vadd.f32 %v4489_v5, %v8938_v26 }
0x22d2   : > { %v4835_v46 = vmul.f32 %v9089_v30, %v9089_v30  ;;  %v4836_v54 = vmul.f32 %v9092_v36, %v9092_v36 }
0x22d3   : > { %v7949_v18 = vpack.c.bf16 %v4491_v37, %v4490_v49  ;;  %v5192_v37 = vpop.xlane.xlu1 %5191 }
0x22d4   : > { %v4837_v44 = vsel %vm3695_vm4, %v4835_v46, 0.0  ;;  %v4838_v17 = vsel %vm3695_vm4, %v4836_v54, 0.0  ;;  %v5193_v46 = vrot.slane %v5192_v37, 4 }
0x22d5   : > { %7950 = vmatprep.subr.bf16.mxu1 %v7949_v18  ;;  %v4839_v11 = vadd.f32 %v4838_v17, %v4837_v44 }
0x22d6   : > { %7952 = vmatpush3.bf16.msra.mxu1 %v7949_v18  ;;  %v5194_v54 = vadd.f32 %v5193_v46, %v5192_v37 }
0x22d7   : > { %4840 = vadd.xlane.f32.xlu0 %v4839_v11  ;;  %7953 = vmatprep.subr.bf16.mxu1 %v8242_v41 }
0x22d9   : > { %7545 = vmatmul.mubr.msk.f32.vlgmr.msra.gmra.mrb[60].mxu1 %vm617_vm0, %v8959_v57 }
0x22da   : > { %7547 = vmatprep.mubr.msk.f32.mxu1 %vm617_vm0, %v8964_v55 }
0x22dd   : > { %7548 = vmatmul.mubr.msk.f32.gmra.mrb[62].mxu1 %vm617_vm0, %v8974_v62 }
0x22de   : > { %7558 = vmatprep.mubr.msk.f32.mxu1 %vm8243_vm2, %v8244_v60 }
0x231b   : > { %v9111_v42 = vpop.f32.mrb[50].mxu0 }
0x231c   : > { %v7645_v45 = vpop.f32.mrb[51].mxu0 }
0x2323   : > { %v7656_v43 = vpop.f32.mrb[52].mxu0 }
0x2324   : > { %v9116_v10 = vadd.f32 %v7656_v43, %v8828_v53  ;;  %v5548_v9 = vpop.f32.mrb[53].mxu0 }
0x2325   : > { %v9119_v38 = vadd.f32 %v5548_v9, %v8826_v52 }
0x2326   : > { %v5558_v40 = vsel %vm3695_vm4, %v9116_v10, 0.0 }
0x2327   : > { %v8023_v19 = vpack.c.bf16 %v9116_v10, %v9119_v38  ;;  %v5557_v33 = vsel %vm3695_vm4, %v9119_v38, 0.0 }
0x2328   : > { %v5559_v14 = vadd.f32 %v5558_v40, %v5557_v33 }
0x2329   : > { %8024 = vmatpush3.bf16.msra.mxu0 %v8023_v19 }
0x232a   : > { %5560 = vadd.xlane.f32.xlu1 %v5559_v14  ;;  %8026 = vmatprep.subr.bf16.mxu0 %v8025_v29 }
0x232c   : > { %7683 = vmatmul.mubr.msk.f32.vlgmr.msra.gmra.mrb[54].mxu0 %vm617_vm0, %v9065_v21 }
0x232d   : > { %8028 = vmatpush3.bf16.msra.mxu0 %v8025_v29  ;;  %7693 = vmatprep.mubr.msk.f32.mxu0 %vm859_vm3, %v8808_v8 }
0x232e   : > { %8030 = vmatprep.subr.bf16.mxu0 %v8029_v16 }
0x2331   : > { %8032 = vmatpush3.bf16.msra.mxu0 %v8029_v16 }
0x2332   : > { %8043 = vmatprep.subr.bf16.mxu0 %v8242_v41 }
0x2334   : > { %7694 = vmatmul.mubr.msk.f32.vlgmr.msra.gmra.mrb[56].mxu0 %vm859_vm3, %v8817_v32  ;;  %v5195_v32 = vrot.slane %v5194_v54, 2 }
0x2335   : > { %7721 = vmatprep.mubr.msk.f32.mxu0 %vm8243_vm2, %v8244_v60 }
0x2336   : > { %v5196_v44 = vadd.f32 %v5195_v32, %v5194_v54 }
0x2338   : > { %v5197_v50 = vrot.slane %v5196_v44, 1 }
0x233a   : > { %v5198_v14 = vadd.f32 %v5197_v50, %v5196_v44 }
0x2364   : > { %v4841_v63 = vpop.xlane.xlu0 %4840 }
0x2365   : > { %v4842_v0 = vrot.slane %v4841_v63, 4 }
0x2367   : > { %v4843_v12 = vadd.f32 %v4842_v0, %v4841_v63 }
0x2369   : > { %v4844_v7 = vrot.slane %v4843_v12, 2 }
0x236b   : > { %v4845_v3 = vadd.f32 %v4844_v7, %v4843_v12 }
0x236d   : > { %v4846_v4 = vrot.slane %v4845_v3, 1 }
0x236f   : > { %v4847_v5 = vadd.f32 %v4846_v4, %v4845_v3 }
0x2371   : > { %8135 = vpush %v4847_v5 }
0x237b   : > { %v4294_v6 = vpop.f32.mrb[58].mxu1 }
0x237c   : > { %v9139_v8 = vadd.f32 %v8891_v28, %v4294_v6  ;;  %v7521_v49 = vpop.f32.mrb[59].mxu1 }
0x23a2   : > { %s8136_s29 = spop %8135 }
0x23a3   : > { %s4849_s22 = smul.f32 0.015625, %s8136_s29 }
0x23a5   : > { %s4850_s23 = sadd.f32 1e-05, %s4849_s22 }
0x23a7   : > { %v4851_v18 = vstv %s4850_s23 }
0x23a8   : > { %8199 = vrsqrt.f32 %v4851_v18 }
0x23ac   : > { %v7546_v17 = vpop.f32.mrb[60].mxu1 }
0x23ad   : > { %v4578_v11 = vadd.f32 3.0, %v7546_v17  ;;  %v4558_v45 = vpop.f32.mrb[61].mxu1 }
0x23ae   : > { %v4577_v43 = vadd.f32 3.0, %v4558_v45 }
0x23af   : > { %v4582_v23 = vmax.f32 %v4578_v11, 0.0 }
0x23b0   : > { %v4581_v9 = vmax.f32 %v4577_v43, 0.0  ;;  %v7549_v28 = vpop.f32.mrb[62].mxu1 }
0x23b1   : > { %v4586_v40 = vmin.f32 %v4582_v23, 6.0  ;;  %v4580_v29 = vadd.f32 3.0, %v7549_v28  ;;  %v4568_v19 = vpop.f32.mrb[63].mxu1 }
0x23b2   : > { %v8200_v33 = vpop.eup %8199  ;;  %v4585_v39 = vmin.f32 %v4581_v9, 6.0  ;;  %v4579_v22 = vadd.f32 3.0, %v4568_v19 }
0x23b3   : > { %v4590_v16 = vmul.f32 %v7546_v17, %v4586_v40  ;;  %v4584_v63 = vmax.f32 %v4580_v29, 0.0  ;;  %8137 = vpush %v8200_v33 }
0x23b4   : > { %v4589_v0 = vmul.f32 %v4585_v39, %v4558_v45  ;;  %v4583_v12 = vmax.f32 %v4579_v22, 0.0  ;;  %8139 = vpush %v5198_v14  ;;  %v6851_v22 = vld [vmem:[%s8798_s21 + $0xe0] sm:$0xff]  ;;  %v6852_v14 = vld [vmem:[%s8798_s21 + $0xe8] sm:$0xff] }
0x23b5   : > { %v4594_v7 = vmul.f32 0.16666667, %v4590_v16  ;;  %v4588_v3 = vmin.f32 %v4584_v63, 6.0 }
0x23b6   : > { %v4593_v4 = vmul.f32 0.16666667, %v4589_v0  ;;  %v4587_v5 = vmin.f32 %v4583_v12, 6.0 }
0x23b7   : > { %v4592_v6 = vmul.f32 %v7549_v28, %v4588_v3 }
0x23b8   : > { %v7954_v49 = vpack.c.bf16 %v4594_v7, %v4593_v4  ;;  %v4591_v37 = vmul.f32 %v4587_v5, %v4568_v19  ;;  %v8046_v7 = vpack.c.bf16 %v6852_v14, %v6851_v22  ;;  %v6853_v5 = vld [vmem:[%s8798_s21 + $0xf0] sm:$0xff] }
0x23b9   : > { %v4596_v46 = vmul.f32 0.16666667, %v4592_v6  ;;  %v6854_v6 = vld [vmem:[%s8798_s21 + $0xf8] sm:$0xff] }
0x23ba   : > { %v4595_v54 = vmul.f32 0.16666667, %v4591_v37  ;;  %7955 = vmatpush3.bf16.msra.mxu1 %v7954_v49  ;;  %v8050_v37 = vpack.c.bf16 %v6854_v6, %v6853_v5 }
0x23bb   : > { %7956 = vmatprep.subr.bf16.mxu1 %v8242_v41 }
0x23bc   : > { %v7957_v32 = vpack.c.bf16 %v4596_v46, %v4595_v54  ;;  %v8222_v46 = vld [vmem:[%s9471_s10] sm:$0xff]  ;;  %v8223_v54 = vld [vmem:[%s9471_s10 + $0x8] sm:$0xff] }
0x23be   : > { %7958 = vmatpush3.bf16.msra.mxu1 %v7957_v32 }
0x23c1   : > { %7559 = vmatmul.mubr.msk.f32.vlgmr.msra.gmra.mrb[64].mxu1 %vm859_vm3, %v9011_v27 }
0x23c2   : > { %7583 = vmatprep.mubr.msk.f32.mxu1 %vm617_vm0, %v8887_v58 }
0x23e4   : > { %s8138_s25 = spop %8137 }
0x23e5   : > { %v4854_v18 = vstv %s8138_s25  ;;  %s8140_s26 = spop %8139 }
0x23e6   : > { %v4855_v44 = vmul.f32 %v4854_v18, %v9089_v30  ;;  %v4856_v17 = vmul.f32 %v4854_v18, %v9092_v36  ;;  %s5200_s0 = smul.f32 0.015625, %s8140_s26  ;;  %s6691_s26 = sshll.u32 %s9487_s28, 3 }
0x23e7   : > { %s585_s19 = scalar_lea.vmem %s9477_s16, %s6691_s26  ;;  %s9275_s1 = scalar_lea.vmem %s9478_s17, %s6691_s26 }
0x23e8   : > { %v4857_v11 = vmul.f32 %v4855_v44, %v8921_v56  ;;  %v4858_v45 = vmul.f32 %v4856_v17, %v8926_v20  ;;  %v5201_v43 = vstv %s5200_s0 }
0x23e9   : > { %v9151_v50 = vsub.f32 %v9052_v34, %v5201_v43  ;;  %v9154_v23 = vsub.f32 %v9049_v1, %v5201_v43 }
0x23ea   : > { %v4859_v9 = vadd.f32 %v4857_v11, %v8933_v25  ;;  %v4860_v28 = vadd.f32 %v4858_v45, %v8938_v26 }
0x23eb   : > { %v5204_v30 = vmul.f32 %v9151_v50, %v9151_v50  ;;  %v5205_v36 = vmul.f32 %v9154_v23, %v9154_v23 }
0x23ec   : > { %v7970_v40 = vpack.c.bf16 %v4860_v28, %v4859_v9 }
0x23ed   : > { %v5206_v29 = vsel %vm3695_vm4, %v5204_v30, 0.0  ;;  %v5207_v34 = vsel %vm3695_vm4, %v5205_v36, 0.0  ;;  %v5561_v36 = vpop.xlane.xlu1 %5560 }
0x23ee   : > { %7971 = vmatprep.subr.bf16.mxu1 %v7970_v40  ;;  %v5208_v1 = vadd.f32 %v5207_v34, %v5206_v29 }
0x23ef   : > { %7973 = vmatpush3.bf16.msra.mxu1 %v7970_v40  ;;  %v5562_v40 = vrot.slane %v5561_v36, 4 }
0x23f0   : > { %5209 = vadd.xlane.f32.xlu0 %v5208_v1  ;;  %7974 = vmatprep.subr.bf16.mxu1 %v8242_v41 }
0x23f1   : > { %v5563_v29 = vadd.f32 %v5562_v40, %v5561_v36 }
0x23f2   : > { %7584 = vmatmul.mubr.msk.f32.vlgmr.msra.gmra.mrb[66].mxu1 %vm617_vm0, %v8959_v57 }
0x23f3   : > { %7586 = vmatprep.mubr.msk.f32.mxu1 %vm617_vm0, %v8964_v55  ;;  %v5564_v34 = vrot.slane %v5563_v29, 2 }
0x23f6   : > { %7587 = vmatmul.mubr.msk.f32.gmra.mrb[68].mxu1 %vm617_vm0, %v8974_v62 }
0x23f7   : > { %7597 = vmatprep.mubr.msk.f32.mxu1 %vm8243_vm2, %v8244_v60 }
0x23ff   : > { %v9173_v19 = vpop.f32.mrb[54].mxu0 }
0x2400   : > { %v7684_v33 = vpop.f32.mrb[55].mxu0 }
0x2401   : > { %v5565_v33 = vadd.f32 %v5564_v34, %v5563_v29 }
0x2407   : > { %v7695_v39 = vpop.f32.mrb[56].mxu0 }
0x2408   : > { %v9178_v16 = vadd.f32 %v7695_v39, %v8828_v53  ;;  %v5917_v63 = vpop.f32.mrb[57].mxu0 }
0x2409   : > { %v9181_v0 = vadd.f32 %v5917_v63, %v8826_v52 }
0x240a   : > { %v5927_v12 = vsel %vm3695_vm4, %v9178_v16, 0.0 }
0x240b   : > { %v8044_v3 = vpack.c.bf16 %v9178_v16, %v9181_v0  ;;  %v5926_v4 = vsel %vm3695_vm4, %v9181_v0, 0.0 }
0x240c   : > { %v5928_v49 = vadd.f32 %v5927_v12, %v5926_v4  ;;  %v5566_v12 = vrot.slane %v5565_v33, 1 }
0x240d   : > { %8045 = vmatpush3.bf16.msra.mxu0 %v8044_v3 }
0x240e   : > { %5929 = vadd.xlane.f32.xlu1 %v5928_v49  ;;  %8047 = vmatprep.subr.bf16.mxu0 %v8046_v7 }
0x2410   : > { %7722 = vmatmul.mubr.msk.f32.vlgmr.msra.gmra.mrb[58].mxu0 %vm617_vm0, %v9065_v21 }
0x2411   : > { %8049 = vmatpush3.bf16.msra.mxu0 %v8046_v7  ;;  %7732 = vmatprep.mubr.msk.f32.mxu0 %vm859_vm3, %v8222_v46 }
0x2412   : > { %8051 = vmatprep.subr.bf16.mxu0 %v8050_v37 }
0x2415   : > { %8053 = vmatpush3.bf16.msra.mxu0 %v8050_v37 }
0x2416   : > { %8064 = vmatprep.subr.bf16.mxu0 %v8242_v41 }
0x2418   : > { %7733 = vmatmul.mubr.msk.f32.vlgmr.msra.gmra.mrb[60].mxu0 %vm859_vm3, %v8223_v54  ;;  %v5567_v54 = vadd.f32 %v5566_v12, %v5565_v33 }
0x2419   : > { %7760 = vmatprep.mubr.msk.f32.mxu0 %vm8243_vm2, %v8244_v60 }
0x247d   : > { %v5210_v32 = vpop.xlane.xlu0 %5209 }
0x247e   : > { %v5211_v18 = vrot.slane %v5210_v32, 4 }
0x2480   : > { %v5212_v44 = vadd.f32 %v5211_v18, %v5210_v32 }
0x2482   : > { %v5213_v17 = vrot.slane %v5212_v44, 2 }
0x2484   : > { %v5214_v11 = vadd.f32 %v5213_v17, %v5212_v44 }
0x2486   : > { %v5215_v45 = vrot.slane %v5214_v11, 1 }
0x2488   : > { %v5216_v43 = vadd.f32 %v5215_v45, %v5214_v11 }
0x248a   : > { %8141 = vpush %v5216_v43 }
0x2494   : > { %v4663_v9 = vpop.f32.mrb[64].mxu1 }
0x2495   : > { %v9205_v28 = vadd.f32 %v8980_v61, %v4663_v9  ;;  %v7560_v30 = vpop.f32.mrb[65].mxu1 }
0x24bb   : > { %s8142_s24 = spop %8141 }
0x24bc   : > { %s5218_s20 = smul.f32 0.015625, %s8142_s24 }
0x24be   : > { %s5219_s29 = sadd.f32 1e-05, %s5218_s20 }
0x24c0   : > { %v5220_v1 = vstv %s5219_s29 }
0x24c1   : > { %8201 = vrsqrt.f32 %v5220_v1 }
0x24c5   : > { %v7585_v39 = vpop.f32.mrb[66].mxu1 }
0x24c6   : > { %v4947_v22 = vadd.f32 3.0, %v7585_v39  ;;  %v4927_v14 = vpop.f32.mrb[67].mxu1 }
0x24c7   : > { %v4946_v63 = vadd.f32 3.0, %v4927_v14 }
0x24c8   : > { %v4951_v7 = vmax.f32 %v4947_v22, 0.0 }
0x24c9   : > { %v4950_v3 = vmax.f32 %v4946_v63, 0.0  ;;  %v7588_v61 = vpop.f32.mrb[68].mxu1 }
0x24ca   : > { %v4955_v4 = vmin.f32 %v4951_v7, 6.0  ;;  %v4949_v5 = vadd.f32 3.0, %v7588_v61  ;;  %v4937_v6 = vpop.f32.mrb[69].mxu1 }
0x24cb   : > { %v8202_v49 = vpop.eup %8201  ;;  %v4954_v37 = vmin.f32 %v4950_v3, 6.0  ;;  %v4948_v46 = vadd.f32 3.0, %v4937_v6 }
0x24cc   : > { %v4959_v32 = vmul.f32 %v7585_v39, %v4955_v4  ;;  %v4953_v18 = vmax.f32 %v4949_v5, 0.0  ;;  %8143 = vpush %v8202_v49  ;;  %v590_v5 = vld [vmem:[#allocation2] sm:$0x1] }
0x24cd   : > { %v4958_v44 = vmul.f32 %v4954_v37, %v4927_v14  ;;  %v4952_v17 = vmax.f32 %v4948_v46, 0.0  ;;  %8145 = vpush %v5567_v54 }
0x24ce   : > { %v4963_v11 = vmul.f32 0.16666667, %v4959_v32  ;;  %v4957_v45 = vmin.f32 %v4953_v18, 6.0 }
0x24cf   : > { %v4962_v43 = vmul.f32 0.16666667, %v4958_v44  ;;  %v4956_v9 = vmin.f32 %v4952_v17, 6.0 }
0x24d0   : > { %v4961_v30 = vmul.f32 %v7588_v61, %v4957_v45 }
0x24d1   : > { %v7975_v36 = vpack.c.bf16 %v4963_v11, %v4962_v43  ;;  %v4960_v40 = vmul.f32 %v4956_v9, %v4937_v6 }
0x24d2   : > { %v4965_v29 = vmul.f32 0.16666667, %v4961_v30 }
0x24d3   : > { %v4964_v34 = vmul.f32 0.16666667, %v4960_v40  ;;  %7976 = vmatpush3.bf16.msra.mxu1 %v7975_v36 }
0x24d4   : > { %7977 = vmatprep.subr.bf16.mxu1 %v8242_v41 }
0x24d5   : > { %v7978_v1 = vpack.c.bf16 %v4965_v29, %v4964_v34 }
0x24d7   : > { %7979 = vmatpush3.bf16.msra.mxu1 %v7978_v1 }
0x24da   : > { %7598 = vmatmul.mubr.msk.f32.vlgmr.msra.gmra.mrb[70].mxu1 %vm859_vm3, %v9011_v27 }
0x24db   : > { %7622 = vmatprep.mubr.msk.f32.mxu1 %vm617_vm0, %v8887_v58 }
0x24e3   : > { %v9212_v33 = vpop.f32.mrb[58].mxu0 }
0x24e4   : > { %v7723_v39 = vpop.f32.mrb[59].mxu0 }
0x24eb   : > { %v7734_v22 = vpop.f32.mrb[60].mxu0 }
0x24ec   : > { %v9215_v14 = vadd.f32 %v7734_v22, %v8828_v53  ;;  %v6286_v63 = vpop.f32.mrb[61].mxu0 }
0x24ed   : > { %v9218_v12 = vadd.f32 %v6286_v63, %v8826_v52 }
0x24ee   : > { %v6296_v7 = vsel %vm3695_vm4, %v9215_v14, 0.0 }
0x24ef   : > { %v8065_v3 = vpack.c.bf16 %v9215_v14, %v9218_v12  ;;  %v6295_v58 = vsel %vm3695_vm4, %v9218_v12, 0.0 }
0x24f0   : > { %v6297_v61 = vadd.f32 %v6296_v7, %v6295_v58 }
0x24f1   : > { %8066 = vmatpush3.bf16.msra.mxu0 %v8065_v3 }
0x24f2   : > { %6298 = vadd.xlane.f32.xlu1 %v6297_v61 }
0x24f4   : > { %7761 = vmatmul.mubr.msk.f32.vlgmr.msra.gmra.mrb[62].mxu0 %vm617_vm0, %v9065_v21 }
0x24fd   : > { %s8144_s22 = spop %8143 }
0x24fe   : > { %v5223_v53 = vstv %s8144_s22  ;;  %s8146_s23 = spop %8145 }
0x24ff   : > { %v5224_v52 = vmul.f32 %v5223_v53, %v9151_v50  ;;  %v5225_v4 = vmul.f32 %v5223_v53, %v9154_v23  ;;  %s5569_s25 = smul.f32 0.015625, %s8146_s23 }
0x2501   : > { %v5226_v6 = vmul.f32 %v5224_v52, %v8921_v56  ;;  %v5227_v49 = vmul.f32 %v5225_v4, %v8926_v20  ;;  %v5570_v37 = vstv %s5569_s25 }
0x2502   : > { %v9233_v46 = vsub.f32 %v9119_v38, %v5570_v37  ;;  %v9236_v54 = vsub.f32 %v9116_v10, %v5570_v37 }
0x2503   : > { %v5228_v21 = vadd.f32 %v5226_v6, %v8933_v25  ;;  %v5229_v32 = vadd.f32 %v5227_v49, %v8938_v26  ;;  %1008 = vperm.xlu1 %8176, %v590_v5   ;;  %v1011_v25 = vlaneseq  ;;  %v5930_v26 = vpop.xlane.xlu1 %5929 }
0x2504   : > { %v5573_v50 = vmul.f32 %v9233_v46, %v9233_v46  ;;  %v5574_v56 = vmul.f32 %v9236_v54, %v9236_v54  ;;  %v5931_v39 = vrot.slane %v5930_v26, 4 }
0x2505   : > { %v7991_v20 = vpack.c.bf16 %v5229_v32, %v5228_v21  ;;  %v1012_v18 = vshrl.u32 %v1011_v25, 7 }
0x2506   : > { %v5575_v38 = vsel %vm3695_vm4, %v5573_v50, 0.0  ;;  %v5576_v23 = vsel %vm3695_vm4, %v5574_v56, 0.0  ;;  %v5932_v22 = vadd.f32 %v5931_v39, %v5930_v26  ;;  %v9361_v39 = vld [vmem:[%s9475_s14 + $0x8] sm:$0xff] }
0x2507   : > { %7992 = vmatprep.subr.bf16.mxu1 %v7991_v20  ;;  %v5577_v10 = vadd.f32 %v5576_v23, %v5575_v38  ;;  %v1013_v17 = vsub.s32 0, %v1012_v18 }
0x2508   : > { %7994 = vmatpush3.bf16.msra.mxu1 %v7991_v20  ;;  %v5933_v63 = vrot.slane %v5932_v22, 2 }
0x2509   : > { %5578 = vadd.xlane.f32.xlu0 %v5577_v10  ;;  %7995 = vmatprep.subr.bf16.mxu1 %v8242_v41 }
0x250a   : > { %v5934_v3 = vadd.f32 %v5933_v63, %v5932_v22  ;;  %v9368_v22 = vld [vmem:[%s9475_s14 + $0x10] sm:$0xff]  ;;  %v9375_v63 = vld [vmem:[%s9475_s14 + $0x18] sm:$0xff] }
0x250b   : > { %7623 = vmatmul.mubr.msk.f32.vlgmr.msra.gmra.mrb[72].mxu1 %vm617_vm0, %v8959_v57 }
0x250c   : > { %7625 = vmatprep.mubr.msk.f32.mxu1 %vm617_vm0, %v8964_v55  ;;  %v5935_v4 = vrot.slane %v5934_v3, 1 }
0x250e   : > { %v5936_v20 = vadd.f32 %v5935_v4, %v5934_v3 }
0x250f   : > { %7626 = vmatmul.mubr.msk.f32.gmra.mrb[74].mxu1 %vm617_vm0, %v8974_v62 }
0x2510   : > { %7636 = vmatprep.mubr.msk.f32.mxu1 %vm8243_vm2, %v8244_v60 }
0x257f   : > { %v9257_v44 = vpop.xlane.xlu1 %6298 }
0x2583   : > { %v1009_v11 = vpop.permute.xlu1 %1008 }
0x2584   : > { %v9259_v57 = vrot.slane %v1009_v11, %v1013_v17 }
0x2586   : > { %v1015_v55 = vadd.f32 %v9259_v57, %v8483_v35  ;;  %v1383_v62 = vadd.f32 %v8520_v13, %v9259_v57  ;;  %v1750_v45 = vadd.f32 %v8557_v47, %v9259_v57  ;;  %v2117_v43 = vadd.f32 %v8594_v24, %v9259_v57 }
0x2587   : > { %v2484_v9 = vadd.f32 %v8641_v51, %v9259_v57  ;;  %v2851_v35 = vadd.f32 %v8728_v59, %v9259_v57  ;;  %v3218_v13 = vadd.f32 %v8765_v15, %v9259_v57  ;;  %v3585_v47 = vadd.f32 %v8824_v48, %v9259_v57 }
0x2588   : > { %1017 = vst.msk [vmem:[%s585_s19] sm:$0x1] %vm1016_vm5, %v1015_v55  ;;  %1384 = vst.msk [vmem:[%s585_s19 + $0x1] sm:$0x1] %vm1016_vm5, %v1383_v62  ;;  %v3998_v24 = vadd.f32 %v9077_v31, %v9259_v57  ;;  %v4368_v51 = vadd.f32 %v9139_v8, %v9259_v57  ;;  %v4737_v59 = vadd.f32 %v9205_v28, %v9259_v57 }
0x2589   : > { %1751 = vst.msk [vmem:[%s585_s19 + $0x2] sm:$0x1] %vm1016_vm5, %v1750_v45  ;;  %2118 = vst.msk [vmem:[%s585_s19 + $0x3] sm:$0x1] %vm1016_vm5, %v2117_v43 }
0x258a   : > { %2485 = vst.msk [vmem:[%s585_s19 + $0x4] sm:$0x1] %vm1016_vm5, %v2484_v9  ;;  %2852 = vst.msk [vmem:[%s585_s19 + $0x5] sm:$0x1] %vm1016_vm5, %v2851_v35 }
0x258b   : > { %3219 = vst.msk [vmem:[%s585_s19 + $0x6] sm:$0x1] %vm1016_vm5, %v3218_v13  ;;  %3586 = vst.msk [vmem:[%s585_s19 + $0x7] sm:$0x1] %vm1016_vm5, %v3585_v47  ;;  %v9315_v13 = vld [vmem:[%s9475_s14] sm:$0xff] }
0x258c   : > { %4000 = vst.msk [vmem:[%s9275_s1] sm:$0x1] %vm3999_vm6, %v3998_v24  ;;  %4369 = vst.msk [vmem:[%s9275_s1 + $0x1] sm:$0x1] %vm3999_vm6, %v4368_v51 }
0x258d   : > { %4738 = vst.msk [vmem:[%s9275_s1 + $0x2] sm:$0x1] %vm3999_vm6, %v4737_v59 }
0x2596   : > { %v5579_v15 = vpop.xlane.xlu0 %5578 }
0x2597   : > { %v5580_v48 = vrot.slane %v5579_v15, 4 }
0x2599   : > { %v5581_v31 = vadd.f32 %v5580_v48, %v5579_v15  ;;  %v9330_v15 = vld [vmem:[%s9473_s12 + $0x8] sm:$0xff] }
0x259b   : > { %v5582_v8 = vrot.slane %v5581_v31, 2 }
0x259d   : > { %v5583_v28 = vadd.f32 %v5582_v8, %v5581_v31  ;;  %v9342_v8 = vld [vmem:[%s9474_s13] sm:$0xff] }
0x259f   : > { %v5584_v30 = vrot.slane %v5583_v28, 1 }
0x25a1   : > { %v5585_v36 = vadd.f32 %v5584_v30, %v5583_v28  ;;  %v9348_v30 = vld [vmem:[%s9474_s13 + $0x8] sm:$0xff] }
0x25a3   : > { %8147 = vpush %v5585_v36 }
0x25ad   : > { %v5032_v40 = vpop.f32.mrb[70].mxu1 }
0x25ae   : > { %v5103_v29 = vadd.f32 %v9044_v2, %v5032_v40  ;;  %v7599_v34 = vpop.f32.mrb[71].mxu1 }
0x25b0   : > { %v5106_v1 = vadd.f32 %v5103_v29, %v9259_v57 }
0x25b2   : > { %5107 = vst.msk [vmem:[%s9275_s1 + $0x3] sm:$0x1] %vm3999_vm6, %v5106_v1 }
0x25d4   : > { %s8148_s24 = spop %8147 }
0x25d5   : > { %s5587_s20 = smul.f32 0.015625, %s8148_s24 }
0x25d7   : > { %s5588_s29 = sadd.f32 1e-05, %s5587_s20 }
0x25d9   : > { %v5589_v7 = vstv %s5588_s29 }
0x25da   : > { %8203 = vrsqrt.f32 %v5589_v7 }
0x25de   : > { %v7624_v58 = vpop.f32.mrb[72].mxu1 }
0x25df   : > { %v5316_v61 = vadd.f32 3.0, %v7624_v58  ;;  %v5296_v53 = vpop.f32.mrb[73].mxu1 }
0x25e0   : > { %v5315_v52 = vadd.f32 3.0, %v5296_v53 }
0x25e1   : > { %v5320_v2 = vmax.f32 %v5316_v61, 0.0 }
0x25e2   : > { %v5319_v5 = vmax.f32 %v5315_v52, 0.0  ;;  %v7627_v6 = vpop.f32.mrb[74].mxu1 }
0x25e3   : > { %v5324_v49 = vmin.f32 %v5320_v2, 6.0  ;;  %v5318_v37 = vadd.f32 3.0, %v7627_v6  ;;  %v5306_v21 = vpop.f32.mrb[75].mxu1 }
0x25e4   : > { %v8204_v32 = vpop.eup %8203  ;;  %v5323_v50 = vmin.f32 %v5319_v5, 6.0  ;;  %v5317_v56 = vadd.f32 3.0, %v5306_v21 }
0x25e5   : > { %v5328_v38 = vmul.f32 %v7624_v58, %v5324_v49  ;;  %v5322_v23 = vmax.f32 %v5318_v37, 0.0  ;;  %8149 = vpush %v8204_v32  ;;  %v6300_v37 = vrot.slane %v9257_v44, 4 }
0x25e6   : > { %v5327_v10 = vmul.f32 %v5323_v50, %v5296_v53  ;;  %v5321_v25 = vmax.f32 %v5317_v56, 0.0  ;;  %8151 = vpush %v5936_v20 }
0x25e7   : > { %v5332_v26 = vmul.f32 0.16666667, %v5328_v38  ;;  %v5326_v18 = vmin.f32 %v5322_v23, 6.0 }
0x25e8   : > { %v5331_v17 = vmul.f32 0.16666667, %v5327_v10  ;;  %v5325_v11 = vmin.f32 %v5321_v25, 6.0 }
0x25e9   : > { %v5330_v55 = vmul.f32 %v7627_v6, %v5326_v18 }
0x25ea   : > { %v7996_v62 = vpack.c.bf16 %v5332_v26, %v5331_v17  ;;  %v5329_v45 = vmul.f32 %v5325_v11, %v5306_v21  ;;  %v6301_v21 = vadd.f32 %v6300_v37, %v9257_v44 }
0x25eb   : > { %v5334_v43 = vmul.f32 0.16666667, %v5330_v55 }
0x25ec   : > { %v5333_v9 = vmul.f32 0.16666667, %v5329_v45  ;;  %7997 = vmatpush3.bf16.msra.mxu1 %v7996_v62  ;;  %v6302_v32 = vrot.slane %v6301_v21, 2 }
0x25ed   : > { %7998 = vmatprep.subr.bf16.mxu1 %v8242_v41 }
0x25ee   : > { %v7999_v35 = vpack.c.bf16 %v5334_v43, %v5333_v9  ;;  %v6303_v56 = vadd.f32 %v6302_v32, %v6301_v21 }
0x25f0   : > { %8000 = vmatpush3.bf16.msra.mxu1 %v7999_v35  ;;  %v6304_v10 = vrot.slane %v6303_v56, 1 }
0x25f2   : > { %v6305_v43 = vadd.f32 %v6304_v10, %v6303_v56 }
0x25f3   : > { %7637 = vmatmul.mubr.msk.f32.vlgmr.msra.gmra.mrb[76].mxu1 %vm859_vm3, %v9011_v27  ;;  %v9324_v27 = vld [vmem:[%s9473_s12] sm:$0xff] }
0x25f4   : > { %7661 = vmatprep.mubr.msk.f32.mxu1 %vm617_vm0, %v9315_v13 }
0x2616   : > { %s8150_s25 = spop %8149 }
0x2617   : > { %v5592_v47 = vstv %s8150_s25  ;;  %s8152_s26 = spop %8151 }
0x2618   : > { %v5593_v24 = vmul.f32 %v5592_v47, %v9233_v46  ;;  %v5594_v51 = vmul.f32 %v5592_v47, %v9236_v54  ;;  %s5938_s0 = smul.f32 0.015625, %s8152_s26 }
0x261a   : > { %v5595_v59 = vmul.f32 %v9324_v27, %v5593_v24  ;;  %v5596_v48 = vmul.f32 %v9330_v15, %v5594_v51  ;;  %v5939_v31 = vstv %s5938_s0 }
0x261b   : > { %v9334_v46 = vsub.f32 %v9181_v0, %v5939_v31  ;;  %v9337_v54 = vsub.f32 %v9178_v16, %v5939_v31 }
0x261c   : > { %v5597_v28 = vadd.f32 %v9342_v8, %v5595_v59  ;;  %v5598_v36 = vadd.f32 %v9348_v30, %v5596_v48 }
0x261d   : > { %v5942_v0 = vmul.f32 %v9334_v46, %v9334_v46  ;;  %v5943_v16 = vmul.f32 %v9337_v54, %v9337_v54 }
0x261e   : > { %v8012_v40 = vpack.c.bf16 %v5598_v36, %v5597_v28 }
0x261f   : > { %v5944_v29 = vsel %vm3695_vm4, %v5942_v0, 0.0  ;;  %v5945_v34 = vsel %vm3695_vm4, %v5943_v16, 0.0 }
0x2620   : > { %8013 = vmatprep.subr.bf16.mxu1 %v8012_v40  ;;  %v5946_v1 = vadd.f32 %v5945_v34, %v5944_v29  ;;  %v9391_v34 = vld [vmem:[%s9476_s15] sm:$0x1] }
0x2621   : > { %8015 = vmatpush3.bf16.msra.mxu1 %v8012_v40 }
0x2622   : > { %5947 = vadd.xlane.f32.xlu0 %v5946_v1  ;;  %8016 = vmatprep.subr.bf16.mxu1 %v8242_v41 }
0x2624   : > { %7662 = vmatmul.mubr.msk.f32.vlgmr.msra.gmra.mrb[78].mxu1 %vm617_vm0, %v9361_v39 }
0x2625   : > { %7664 = vmatprep.mubr.msk.f32.mxu1 %vm617_vm0, %v9368_v22 }
0x2628   : > { %7665 = vmatmul.mubr.msk.f32.gmra.mrb[80].mxu1 %vm617_vm0, %v9375_v63 }
0x2629   : > { %7675 = vmatprep.mubr.msk.f32.mxu1 %vm8243_vm2, %v8244_v60 }
0x26af   : > { %v5948_v7 = vpop.xlane.xlu0 %5947 }
0x26b0   : > { %v5949_v3 = vrot.slane %v5948_v7, 4 }
0x26b2   : > { %v5950_v58 = vadd.f32 %v5949_v3, %v5948_v7 }
0x26b4   : > { %v5951_v61 = vrot.slane %v5950_v58, 2 }
0x26b6   : > { %v5952_v53 = vadd.f32 %v5951_v61, %v5950_v58 }
0x26b8   : > { %v5953_v52 = vrot.slane %v5952_v53, 1 }
0x26ba   : > { %v5954_v4 = vadd.f32 %v5953_v52, %v5952_v53 }
0x26bc   : > { %8153 = vpush %v5954_v4 }
0x26c6   : > { %v5401_v2 = vpop.f32.mrb[76].mxu1 }
0x26c7   : > { %v5472_v5 = vadd.f32 %v9111_v42, %v5401_v2  ;;  %v7638_v6 = vpop.f32.mrb[77].mxu1 }
0x26c9   : > { %v5475_v49 = vadd.f32 %v5472_v5, %v9259_v57 }
0x26cb   : > { %5476 = vst.msk [vmem:[%s9275_s1 + $0x4] sm:$0x1] %vm3999_vm6, %v5475_v49 }
0x26ed   : > { %s8154_s28 = spop %8153 }
0x26ee   : > { %s5956_s21 = smul.f32 0.015625, %s8154_s28 }
0x26f0   : > { %s5957_s24 = sadd.f32 1e-05, %s5956_s21 }
0x26f2   : > { %v5958_v50 = vstv %s5957_s24 }
0x26f3   : > { %8205 = vrsqrt.f32 %v5958_v50 }
0x26f7   : > { %v7663_v20 = vpop.f32.mrb[78].mxu1 }
0x26f8   : > { %v5685_v38 = vadd.f32 3.0, %v7663_v20  ;;  %v5665_v23 = vpop.f32.mrb[79].mxu1 }
0x26f9   : > { %v5684_v42 = vadd.f32 3.0, %v5665_v23 }
0x26fa   : > { %v5689_v25 = vmax.f32 %v5685_v38, 0.0 }
0x26fb   : > { %v5688_v26 = vmax.f32 %v5684_v42, 0.0  ;;  %v7666_v18 = vpop.f32.mrb[80].mxu1 }
0x26fc   : > { %v5693_v17 = vmin.f32 %v5689_v25, 6.0  ;;  %v5687_v11 = vadd.f32 3.0, %v7666_v18  ;;  %v5675_v55 = vpop.f32.mrb[81].mxu1 }
0x26fd   : > { %v8206_v62 = vpop.eup %8205  ;;  %v5692_v44 = vmin.f32 %v5688_v26, 6.0  ;;  %v5686_v45 = vadd.f32 3.0, %v5675_v55 }
0x26fe   : > { %v5697_v9 = vmul.f32 %v7663_v20, %v5693_v17  ;;  %v5691_v35 = vmax.f32 %v5687_v11, 0.0  ;;  %8155 = vpush %v8206_v62 }
0x26ff   : > { %v5696_v47 = vmul.f32 %v5692_v44, %v5665_v23  ;;  %v5690_v24 = vmax.f32 %v5686_v45, 0.0  ;;  %8157 = vpush %v6305_v43 }
0x2700   : > { %v5701_v51 = vmul.f32 0.16666667, %v5697_v9  ;;  %v5695_v59 = vmin.f32 %v5691_v35, 6.0 }
0x2701   : > { %v5700_v48 = vmul.f32 0.16666667, %v5696_v47  ;;  %v5694_v31 = vmin.f32 %v5690_v24, 6.0 }
0x2702   : > { %v5699_v28 = vmul.f32 %v7666_v18, %v5695_v59 }
0x2703   : > { %v8017_v36 = vpack.c.bf16 %v5701_v51, %v5700_v48  ;;  %v5698_v0 = vmul.f32 %v5694_v31, %v5675_v55 }
0x2704   : > { %v5703_v16 = vmul.f32 0.16666667, %v5699_v28 }
0x2705   : > { %v5702_v40 = vmul.f32 0.16666667, %v5698_v0  ;;  %8018 = vmatpush3.bf16.msra.mxu1 %v8017_v36 }
0x2706   : > { %8019 = vmatprep.subr.bf16.mxu1 %v8242_v41 }
0x2707   : > { %v8020_v29 = vpack.c.bf16 %v5703_v16, %v5702_v40 }
0x2709   : > { %8021 = vmatpush3.bf16.msra.mxu1 %v8020_v29 }
0x270c   : > { %7676 = vmatmul.mubr.msk.f32.vlgmr.msra.gmra.mrb[82].mxu1 %vm859_vm3, %v9391_v34 }
0x270d   : > { %7700 = vmatprep.mubr.msk.f32.mxu1 %vm617_vm0, %v9315_v13 }
0x272f   : > { %s8156_s22 = spop %8155 }
0x2730   : > { %v5961_v1 = vstv %s8156_s22  ;;  %s8158_s23 = spop %8157 }
0x2731   : > { %v5962_v7 = vmul.f32 %v5961_v1, %v9334_v46  ;;  %v5963_v3 = vmul.f32 %v5961_v1, %v9337_v54  ;;  %s6307_s25 = smul.f32 0.015625, %s8158_s23 }
0x2733   : > { %v5964_v58 = vmul.f32 %v9324_v27, %v5962_v7  ;;  %v5965_v61 = vmul.f32 %v9330_v15, %v5963_v3  ;;  %v6308_v53 = vstv %s6307_s25 }
0x2734   : > { %v9402_v52 = vsub.f32 %v9218_v12, %v6308_v53  ;;  %v9405_v4 = vsub.f32 %v9215_v14, %v6308_v53 }
0x2735   : > { %v5966_v2 = vadd.f32 %v9342_v8, %v5964_v58  ;;  %v5967_v5 = vadd.f32 %v9348_v30, %v5965_v61 }
0x2736   : > { %v6311_v46 = vmul.f32 %v9402_v52, %v9402_v52  ;;  %v6312_v54 = vmul.f32 %v9405_v4, %v9405_v4 }
0x2737   : > { %v8033_v6 = vpack.c.bf16 %v5967_v5, %v5966_v2 }
0x2738   : > { %v6313_v49 = vsel %vm3695_vm4, %v6311_v46, 0.0  ;;  %v6314_v37 = vsel %vm3695_vm4, %v6312_v54, 0.0 }
0x2739   : > { %8034 = vmatprep.subr.bf16.mxu1 %v8033_v6  ;;  %v6315_v12 = vadd.f32 %v6314_v37, %v6313_v49 }
0x273a   : > { %8036 = vmatpush3.bf16.msra.mxu1 %v8033_v6 }
0x273b   : > { %6316 = vadd.xlane.f32.xlu0 %v6315_v12  ;;  %8037 = vmatprep.subr.bf16.mxu1 %v8242_v41 }
0x273d   : > { %7701 = vmatmul.mubr.msk.f32.vlgmr.msra.gmra.mrb[84].mxu1 %vm617_vm0, %v9361_v39 }
0x273e   : > { %7703 = vmatprep.mubr.msk.f32.mxu1 %vm617_vm0, %v9368_v22 }
0x2741   : > { %7704 = vmatmul.mubr.msk.f32.gmra.mrb[86].mxu1 %vm617_vm0, %v9375_v63 }
0x2742   : > { %7714 = vmatprep.mubr.msk.f32.mxu1 %vm8243_vm2, %v8244_v60 }
0x27c8   : > { %v6317_v14 = vpop.xlane.xlu0 %6316 }
0x27c9   : > { %v6318_v21 = vrot.slane %v6317_v14, 4 }
0x27cb   : > { %v6319_v32 = vadd.f32 %v6318_v21, %v6317_v14 }
0x27cd   : > { %v6320_v50 = vrot.slane %v6319_v32, 2 }
0x27cf   : > { %v6321_v56 = vadd.f32 %v6320_v50, %v6319_v32 }
0x27d1   : > { %v6322_v20 = vrot.slane %v6321_v56, 1 }
0x27d3   : > { %v6323_v38 = vadd.f32 %v6322_v20, %v6321_v56 }
0x27d5   : > { %8159 = vpush %v6323_v38 }
0x27df   : > { %v5770_v23 = vpop.f32.mrb[82].mxu1 }
0x27e0   : > { %v5841_v42 = vadd.f32 %v9173_v19, %v5770_v23  ;;  %v7677_v10 = vpop.f32.mrb[83].mxu1 }
0x27e2   : > { %v5844_v25 = vadd.f32 %v5841_v42, %v9259_v57 }
0x27e4   : > { %5845 = vst.msk [vmem:[%s9275_s1 + $0x5] sm:$0x1] %vm3999_vm6, %v5844_v25 }
0x2806   : > { %s8160_s26 = spop %8159 }
0x2807   : > { %s6325_s0 = smul.f32 0.015625, %s8160_s26 }
0x2809   : > { %s6326_s30 = sadd.f32 1e-05, %s6325_s0 }
0x280b   : > { %v6327_v26 = vstv %s6326_s30 }
0x280c   : > { %8207 = vrsqrt.f32 %v6327_v26 }
0x2810   : > { %v7702_v18 = vpop.f32.mrb[84].mxu1 }
0x2811   : > { %v6054_v17 = vadd.f32 3.0, %v7702_v18  ;;  %v6034_v11 = vpop.f32.mrb[85].mxu1 }
0x2812   : > { %v6053_v55 = vadd.f32 3.0, %v6034_v11 }
0x2813   : > { %v6058_v62 = vmax.f32 %v6054_v17, 0.0 }
0x2814   : > { %v6057_v44 = vmax.f32 %v6053_v55, 0.0  ;;  %v7705_v45 = vpop.f32.mrb[86].mxu1 }
0x2815   : > { %v6062_v43 = vmin.f32 %v6058_v62, 6.0  ;;  %v6056_v9 = vadd.f32 3.0, %v7705_v45  ;;  %v6044_v19 = vpop.f32.mrb[87].mxu1  ;;  %v6578_v62 = vpop.f32.mrb[62].mxu0 }
0x2816   : > { %v8208_v35 = vpop.eup %8207  ;;  %v6061_v47 = vmin.f32 %v6057_v44, 6.0  ;;  %v6055_v24 = vadd.f32 3.0, %v6044_v19  ;;  %v7762_v44 = vpop.f32.mrb[63].mxu0 }
0x2817   : > { %v6066_v51 = vmul.f32 %v7702_v18, %v6062_v43  ;;  %v6060_v59 = vmax.f32 %v6056_v9, 0.0  ;;  %8161 = vpush %v8208_v35 }
0x2818   : > { %v6065_v48 = vmul.f32 %v6061_v47, %v6034_v11  ;;  %v6059_v31 = vmax.f32 %v6055_v24, 0.0 }
0x2819   : > { %v6070_v28 = vmul.f32 0.16666667, %v6066_v51  ;;  %v6064_v36 = vmin.f32 %v6060_v59, 6.0 }
0x281a   : > { %v6069_v0 = vmul.f32 0.16666667, %v6065_v48  ;;  %v6063_v16 = vmin.f32 %v6059_v31, 6.0 }
0x281b   : > { %v6068_v40 = vmul.f32 %v7705_v45, %v6064_v36 }
0x281c   : > { %v8038_v29 = vpack.c.bf16 %v6070_v28, %v6069_v0  ;;  %v6067_v1 = vmul.f32 %v6063_v16, %v6044_v19 }
0x281d   : > { %v6072_v7 = vmul.f32 0.16666667, %v6068_v40 }
0x281e   : > { %v6071_v3 = vmul.f32 0.16666667, %v6067_v1  ;;  %8039 = vmatpush3.bf16.msra.mxu1 %v8038_v29 }
0x281f   : > { %8040 = vmatprep.subr.bf16.mxu1 %v8242_v41 }
0x2820   : > { %v8041_v58 = vpack.c.bf16 %v6072_v7, %v6071_v3 }
0x2822   : > { %8042 = vmatpush3.bf16.msra.mxu1 %v8041_v58 }
0x2825   : > { %7715 = vmatmul.mubr.msk.f32.vlgmr.msra.gmra.mrb[88].mxu1 %vm859_vm3, %v9391_v34 }
0x2826   : > { %7739 = vmatprep.mubr.msk.f32.mxu1 %vm617_vm0, %v9315_v13 }
0x2848   : > { %s8162_s19 = spop %8161 }
0x2849   : > { %v6330_v61 = vstv %s8162_s19 }
0x284a   : > { %v6331_v53 = vmul.f32 %v6330_v61, %v9402_v52  ;;  %v6332_v2 = vmul.f32 %v6330_v61, %v9405_v4 }
0x284c   : > { %v6333_v5 = vmul.f32 %v9324_v27, %v6331_v53  ;;  %v6334_v46 = vmul.f32 %v9330_v15, %v6332_v2 }
0x284e   : > { %v6335_v54 = vadd.f32 %v9342_v8, %v6333_v5  ;;  %v6336_v6 = vadd.f32 %v9348_v30, %v6334_v46 }
0x2850   : > { %v8054_v49 = vpack.c.bf16 %v6336_v6, %v6335_v54 }
0x2852   : > { %8055 = vmatprep.subr.bf16.mxu1 %v8054_v49 }
0x2853   : > { %8057 = vmatpush3.bf16.msra.mxu1 %v8054_v49 }
0x2854   : > { %8058 = vmatprep.subr.bf16.mxu1 %v8242_v41 }
0x2856   : > { %7740 = vmatmul.mubr.msk.f32.vlgmr.msra.gmra.mrb[90].mxu1 %vm617_vm0, %v9361_v39 }
0x2857   : > { %7742 = vmatprep.mubr.msk.f32.mxu1 %vm617_vm0, %v9368_v22 }
0x285a   : > { %7743 = vmatmul.mubr.msk.f32.gmra.mrb[92].mxu1 %vm617_vm0, %v9375_v63 }
0x285b   : > { %7753 = vmatprep.mubr.msk.f32.mxu1 %vm8243_vm2, %v8244_v60 }
0x28f8   : > { %v6139_v13 = vpop.f32.mrb[88].mxu1 }
0x28f9   : > { %v6210_v27 = vadd.f32 %v9212_v33, %v6139_v13  ;;  %v7716_v15 = vpop.f32.mrb[89].mxu1 }
0x28fb   : > { %v6213_v8 = vadd.f32 %v6210_v27, %v9259_v57 }
0x28fd   : > { %6214 = vst.msk [vmem:[%s9275_s1 + $0x6] sm:$0x1] %vm3999_vm6, %v6213_v8 }
0x2929   : > { %v7741_v30 = vpop.f32.mrb[90].mxu1 }
0x292a   : > { %v6423_v52 = vadd.f32 3.0, %v7741_v30  ;;  %v6403_v39 = vpop.f32.mrb[91].mxu1 }
0x292b   : > { %v6422_v4 = vadd.f32 3.0, %v6403_v39 }
0x292c   : > { %v6427_v37 = vmax.f32 %v6423_v52, 0.0 }
0x292d   : > { %v6426_v22 = vmax.f32 %v6422_v4, 0.0  ;;  %v7744_v12 = vpop.f32.mrb[92].mxu1 }
0x292e   : > { %v6431_v14 = vmin.f32 %v6427_v37, 6.0  ;;  %v6425_v63 = vadd.f32 3.0, %v7744_v12  ;;  %v6413_v21 = vpop.f32.mrb[93].mxu1 }
0x292f   : > { %v6430_v32 = vmin.f32 %v6426_v22, 6.0  ;;  %v6424_v60 = vadd.f32 3.0, %v6413_v21 }
0x2930   : > { %v6435_v50 = vmul.f32 %v7741_v30, %v6431_v14  ;;  %v6429_v56 = vmax.f32 %v6425_v63, 0.0 }
0x2931   : > { %v6434_v33 = vmul.f32 %v6430_v32, %v6403_v39  ;;  %v6428_v20 = vmax.f32 %v6424_v60, 0.0 }
0x2932   : > { %v6439_v38 = vmul.f32 0.16666667, %v6435_v50  ;;  %v6433_v23 = vmin.f32 %v6429_v56, 6.0 }
0x2933   : > { %v6438_v42 = vmul.f32 0.16666667, %v6434_v33  ;;  %v6432_v10 = vmin.f32 %v6428_v20, 6.0 }
0x2934   : > { %v6437_v25 = vmul.f32 %v7744_v12, %v6433_v23 }
0x2935   : > { %v8059_v26 = vpack.c.bf16 %v6439_v38, %v6438_v42  ;;  %v6436_v18 = vmul.f32 %v6432_v10, %v6413_v21 }
0x2936   : > { %v6441_v17 = vmul.f32 0.16666667, %v6437_v25 }
0x2937   : > { %v6440_v11 = vmul.f32 0.16666667, %v6436_v18  ;;  %8060 = vmatpush3.bf16.msra.mxu1 %v8059_v26 }
0x2938   : > { %8061 = vmatprep.subr.bf16.mxu1 %v8242_v41 }
0x2939   : > { %v8062_v55 = vpack.c.bf16 %v6441_v17, %v6440_v11 }
0x293b   : > { %8063 = vmatpush3.bf16.msra.mxu1 %v8062_v55 }
0x293e   : > { %7754 = vmatmul.mubr.msk.f32.vlgmr.msra.gmra.mrb[94].mxu1 %vm859_vm3, %v9391_v34 }
0x2a11   : > { %v6508_v45 = vpop.f32.mrb[94].mxu1 }
0x2a12   : > { %v6579_v43 = vadd.f32 %v6578_v62, %v6508_v45  ;;  %v7755_v9 = vpop.f32.mrb[95].mxu1 }
0x2a14   : > { %v6582_v19 = vadd.f32 %v6579_v43, %v9259_v57 }
0x2a16   : > { %6583 = vst.msk [vmem:[%s9275_s1 + $0x7] sm:$0x1] %vm3999_vm6, %v6582_v19 }
0x2a17 PF: > { %s30_s27 = sadd.s32 1, %s8239_s27  }
0x2a18   : > { %p27_p5 = scmp.ge.s32.totalorder %s30_s27, 4  }
0x2a1a   :  { %29 = sbr.rel (!%p27_p5) target bundleno = 10 (0xa), region = 143 }

</bundles_post_ra>
